<compile_context>
chip_gen: v7x
topology: tpu7x:2x2x1
jax: 0.10.0
libtpu: 0.0.40
codegen_flags: <defaults>
</compile_context>

<pallas_src>
import functools

import numpy as np
import jax
import jax.numpy as jnp
from jax.experimental import pallas as pl
from jax.experimental.pallas import tpu as pltpu


def _round_up(x, m):
    return (x + m - 1) // m * m


# ----------------------------------------------------------------------------
# Kernel: one (TM, C) row tile x the fused (C, L*32) head weights on the MXU,
# then a per-row level select (VPU) and the split into bbox / class / ldm
# outputs.  Optionally applies the eval-phase 2-class softmax in the epilogue.
# ----------------------------------------------------------------------------
def _fused_heads_kernel(x_ref, lvl_ref, w_ref, b_ref,
                        bbox_ref, cls_ref, ldm_ref,
                        *, num_levels, o_fused, anchor_num, apply_softmax):
    x = x_ref[...]                                        # (TM, C)
    w = w_ref[...]                                        # (C, L*o_fused)
    y = jnp.dot(x, w, preferred_element_type=jnp.float32)  # (TM, L*o_fused)
    y = y + b_ref[...]                                    # bias in f32

    # Per-row level select: pick that row's 32-column window.  All three
    # levels' matmuls were done in one MXU pass (MXU is idle in this
    # mem-bound kernel); the selects run on the otherwise-idle VPU.
    lvl = lvl_ref[...]                                    # (TM, 1) int32
    sel = y[:, (num_levels - 1) * o_fused:num_levels * o_fused]
    for l in range(num_levels - 2, -1, -1):
        sel = jnp.where(lvl == l, y[:, l * o_fused:(l + 1) * o_fused], sel)

    nb = anchor_num * 4
    nc = anchor_num * 2

    bbox_ref[...] = sel[:, :nb].astype(bbox_ref.dtype)

    cls = sel[:, nb:nb + nc]
    if apply_softmax:
        # 2-class softmax per anchor, fused into the kernel epilogue
        # (exp on the EUP, approximate reciprocal -> essentially free).
        cols = []
        for a in range(anchor_num):
            l0 = cls[:, 2 * a:2 * a + 1]
            l1 = cls[:, 2 * a + 1:2 * a + 2]
            m = jnp.maximum(l0, l1)
            e0 = jnp.exp(l0 - m)
            e1 = jnp.exp(l1 - m)
            inv = pl.reciprocal(e0 + e1, approx=True)
            cols += [e0 * inv, e1 * inv]
        cls = jnp.concatenate(cols, axis=1)
    cls_ref[...] = cls.astype(cls_ref.dtype)

    ldm_ref[...] = sel[:, nb + nc:].astype(ldm_ref.dtype)


# ----------------------------------------------------------------------------
# One-time parameter prep (hoisted out of the forward): fuse the 3 heads x 3
# levels into one (C, L*32) weight matrix and a (1, L*32) bias row.
# Column layout per level: [bbox (4A) | class (2A) | landmark (10A)].
# ----------------------------------------------------------------------------
def fuse_retinaface_head_params(params):
    num_levels = len(params["bbox"])
    w_levels, b_levels = [], []
    for i in range(num_levels):
        w_cat = jnp.concatenate(
            [params["bbox"][i]["w"], params["class"][i]["w"],
             params["ldm"][i]["w"]], axis=0)              # (o_fused, C)
        b_cat = jnp.concatenate(
            [params["bbox"][i]["b"], params["class"][i]["b"],
             params["ldm"][i]["b"]], axis=0)              # (o_fused,)
        w_levels.append(w_cat.T)                          # (C, o_fused)
        b_levels.append(b_cat)
    w_all = jnp.concatenate(w_levels, axis=1).astype(jnp.float32)
    b_all = jnp.concatenate(b_levels, axis=0)[None, :].astype(jnp.float32)
    return {"w": w_all, "b": b_all}


# ----------------------------------------------------------------------------
# Wrapper: fused forward of all 9 heads across the 3 FPN levels.
# ----------------------------------------------------------------------------
def retinaface_heads_forward(features, w_fused, b_fused, *, anchor_num=2,
                             phase="train", tm=4096,
                             compute_dtype=jnp.float32):
    """RetinaFace forward from the SSH features onward.

    features: list of NCHW feature maps (one per FPN level), same channels C.
    w_fused/b_fused: from fuse_retinaface_head_params (precomputed once).
    Returns (bbox_regressions, classifications, ldm_regressions); the
    classifications carry the 2-class softmax iff phase != 'train'.
    """
    num_levels = len(features)
    B, C = features[0].shape[0], features[0].shape[1]
    o_fused = anchor_num * (4 + 2 + 10)                   # 32 for anchor_num=2
    assert w_fused.shape == (C, num_levels * o_fused)

    hw_sizes = [int(f.shape[2] * f.shape[3]) for f in features]
    total_hw = sum(hw_sizes)

    # --- single XLA layout pass: NCHW -> (B, HW, C), concat levels, flatten.
    # Rows end up batch-major (b, level, h, w) so the final per-head concat
    # over levels is a pure reshape.
    x_levels = [jnp.transpose(f, (0, 2, 3, 1)).reshape(B, -1, C)
                for f in features]
    x_all = jnp.concatenate(x_levels, axis=1).reshape(B * total_hw, C)
    x_all = x_all.astype(compute_dtype)

    # Per-row level ids (constant pattern per batch element; tiny int32 read).
    lvl_pattern = np.concatenate(
        [np.full((hw,), i, np.int32) for i, hw in enumerate(hw_sizes)])
    lvl_all = jnp.asarray(np.tile(lvl_pattern, B)[:, None])   # (B*total_hw, 1)

    m_valid = B * total_hw
    align = 8 if jnp.dtype(compute_dtype).itemsize == 4 else 16
    tm_eff = min(int(tm), _round_up(m_valid, align))
    tm_eff = max(align, tm_eff - tm_eff % align)
    m_pad = _round_up(m_valid, tm_eff)
    if m_pad > m_valid:
        x_all = jnp.pad(x_all, ((0, m_pad - m_valid), (0, 0)))
        lvl_all = jnp.pad(lvl_all, ((0, m_pad - m_valid), (0, 0)))

    num_tiles = m_pad // tm_eff
    nb, nc, nl = anchor_num * 4, anchor_num * 2, anchor_num * 10

    kernel = functools.partial(
        _fused_heads_kernel,
        num_levels=num_levels, o_fused=o_fused, anchor_num=anchor_num,
        apply_softmax=(phase != "train"))

    bbox_f, cls_f, ldm_f = pl.pallas_call(
        kernel,
        out_shape=(
            jax.ShapeDtypeStruct((m_pad, nb), jnp.float32),
            jax.ShapeDtypeStruct((m_pad, nc), jnp.float32),
            jax.ShapeDtypeStruct((m_pad, nl), jnp.float32),
        ),
        grid=(num_tiles,),
        in_specs=[
            pl.BlockSpec((tm_eff, C), lambda i: (i, 0)),
            pl.BlockSpec((tm_eff, 1), lambda i: (i, 0)),
            # Fused weights/bias: full block, constant index -> DMA'd once and
            # resident in VMEM for the whole grid (~25 KB).
            pl.BlockSpec((C, num_levels * o_fused), lambda i: (0, 0)),
            pl.BlockSpec((1, num_levels * o_fused), lambda i: (0, 0)),
        ],
        out_specs=(
            pl.BlockSpec((tm_eff, nb), lambda i: (i, 0)),
            pl.BlockSpec((tm_eff, nc), lambda i: (i, 0)),
            pl.BlockSpec((tm_eff, nl), lambda i: (i, 0)),
        ),
        compiler_params=pltpu.CompilerParams(
            dimension_semantics=("parallel",),
            vmem_limit_bytes=32 * 1024 * 1024),
    )(x_all, lvl_all, w_fused.astype(compute_dtype), b_fused)

    # Rows are already ordered (batch, level, h, w): PyTorch's per-head
    # torch.cat over levels (dim=1) is just a reshape here.
    bbox = bbox_f[:m_valid].reshape(B, total_hw * anchor_num, 4)
    cls = cls_f[:m_valid].reshape(B, total_hw * anchor_num, 2)
    ldm = ldm_f[:m_valid].reshape(B, total_hw * anchor_num, 10)
    return bbox, cls, ldm


# ----------------------------------------------------------------------------
# Parameter init with the shapes RetinaFace.__init__ creates.
# ----------------------------------------------------------------------------
def init_retinaface_head_params(key, out_channel=64, anchor_num=2, fpn_num=3):
    params = {"bbox": [], "class": [], "ldm": []}
    sizes = {"bbox": 4, "class": 2, "ldm": 10}
    for name, k in sizes.items():
        for _ in range(fpn_num):
            key, kw, kb = jax.random.split(key, 3)
            O = anchor_num * k
            w = jax.random.normal(kw, (O, out_channel), jnp.float32) * 0.05
            b = jax.random.normal(kb, (O,), jnp.float32) * 0.01
            params[name].append({"w": w, "b": b})
    return params


def _reference_head(x_nchw, w_oc, b_o, k):
    """Pure-JAX reference for one head (matches PyTorch permute/view)."""
    B, C, H, W = x_nchw.shape
    O = w_oc.shape[0]
    y = jnp.einsum("bchw,oc->bhwo", x_nchw, w_oc) + b_o
    return y.reshape(B, H * W * (O // k), k)


if __name__ == "__main__":
    key = jax.random.PRNGKey(0)
    B = 2
    out_channel = 64       # cfg['out_channel']
    anchor_num = 2
    spatials = [16, 8, 4]  # three FPN / SSH levels

    # Synthetic SSH feature maps (stand-in for backbone -> FPN -> SSH output).
    feats = []
    for s in spatials:
        key, sub = jax.random.split(key)
        feats.append(jax.random.normal(sub, (B, out_channel, s, s),
                                       jnp.float32))

    key, pkey = jax.random.split(key)
    params = init_retinaface_head_params(pkey, out_channel, anchor_num)
    fused = fuse_retinaface_head_params(params)          # hoisted, done once

    fwd_train = jax.jit(functools.partial(
        retinaface_heads_forward, anchor_num=anchor_num, phase="train",
        tm=4096))
    fwd_eval = jax.jit(functools.partial(
        retinaface_heads_forward, anchor_num=anchor_num, phase="test",
        tm=4096))

    bbox_regressions, classifications, ldm_regressions = jax.block_until_ready(
        fwd_train(feats, fused["w"], fused["b"]))

    n_anchors_total = sum(s * s * anchor_num for s in spatials)
    assert bbox_regressions.shape == (B, n_anchors_total, 4)
    assert classifications.shape == (B, n_anchors_total, 2)
    assert ldm_regressions.shape == (B, n_anchors_total, 10)

    # Numerical check against a pure-JAX reference (same math as PyTorch).
    ref_bbox = jnp.concatenate(
        [_reference_head(f, params["bbox"][i]["w"], params["bbox"][i]["b"], 4)
         for i, f in enumerate(feats)], axis=1)
    ref_cls = jnp.concatenate(
        [_reference_head(f, params["class"][i]["w"], params["class"][i]["b"], 2)
         for i, f in enumerate(feats)], axis=1)
    ref_ldm = jnp.concatenate(
        [_reference_head(f, params["ldm"][i]["w"], params["ldm"][i]["b"], 10)
         for i, f in enumerate(feats)], axis=1)

    assert jnp.allclose(bbox_regressions, ref_bbox, atol=1e-3, rtol=1e-3)
    assert jnp.allclose(classifications, ref_cls, atol=1e-3, rtol=1e-3)
    assert jnp.allclose(ldm_regressions, ref_ldm, atol=1e-3, rtol=1e-3)

    # Eval phase: fused in-kernel softmax (approximate reciprocal -> slightly
    # looser tolerance on the probabilities).
    bbox_e, cls_e, ldm_e = jax.block_until_ready(
        fwd_eval(feats, fused["w"], fused["b"]))
    assert jnp.allclose(bbox_e, ref_bbox, atol=1e-3, rtol=1e-3)
    assert jnp.allclose(ldm_e, ref_ldm, atol=1e-3, rtol=1e-3)
    assert jnp.allclose(cls_e, jax.nn.softmax(ref_cls, axis=-1),
                        atol=5e-3, rtol=5e-3)

    print("KERNEL_OK")
</pallas_src>

<mosaic_0001>
module attributes {stable_mosaic.version = 11 : i64} {
  func.func @_fused_heads_kernel(%arg0: i32, %arg1: memref<672x64xf32, #tpu.memory_space<vmem>>, %arg2: memref<672x1xi32, #tpu.memory_space<vmem>>, %arg3: memref<64x96xf32, #tpu.memory_space<vmem>>, %arg4: memref<1x96xf32, #tpu.memory_space<vmem>>, %arg5: memref<672x8xf32, #tpu.memory_space<vmem>>, %arg6: memref<672x4xf32, #tpu.memory_space<vmem>>, %arg7: memref<672x20xf32, #tpu.memory_space<vmem>>) attributes {dimension_semantics = [#tpu.dimension_semantics<parallel>], iteration_bounds = array<i64: 1>, scalar_prefetch = 0 : i64, scratch_operands = 0 : i64, tpu.core_type = #tpu.core_type<tc>, window_params = [{transform_indices = @transform_0, window_bounds = array<i64: 672, 64>}, {transform_indices = @transform_1, window_bounds = array<i64: 672, 1>}, {pipeline_mode = #tpu.pipeline_mode<synchronous>, transform_indices = @transform_2, window_bounds = array<i64: 64, 96>}, {pipeline_mode = #tpu.pipeline_mode<synchronous>, transform_indices = @transform_3, window_bounds = array<i64: 1, 96>}, {transform_indices = @transform_4, window_bounds = array<i64: 672, 8>}, {transform_indices = @transform_5, window_bounds = array<i64: 672, 4>}, {transform_indices = @transform_6, window_bounds = array<i64: 672, 20>}]} {
    %c0 = arith.constant 0 : index
    %c0_0 = arith.constant 0 : index
    %0 = vector.load %arg1[%c0, %c0_0] : memref<672x64xf32, #tpu.memory_space<vmem>>, vector<672x64xf32>
    %c0_1 = arith.constant 0 : index
    %c0_2 = arith.constant 0 : index
    %1 = vector.load %arg3[%c0_1, %c0_2] : memref<64x96xf32, #tpu.memory_space<vmem>>, vector<64x96xf32>
    %cst = arith.constant dense<0.000000e+00> : vector<672x96xf32>
    %2 = tpu.matmul %0, %1, %cst {dimension_numbers = #tpu.dot_dimension_numbers<[1], [0], [0], [1], [0, 0, 1, 1], [], []>} : vector<672x64xf32>, vector<64x96xf32>, vector<672x96xf32> -> vector<672x96xf32>
    %c0_3 = arith.constant 0 : index
    %c0_4 = arith.constant 0 : index
    %3 = vector.load %arg4[%c0_3, %c0_4] : memref<1x96xf32, #tpu.memory_space<vmem>>, vector<1x96xf32>
    %4 = vector.broadcast %3 : vector<1x96xf32> to vector<672x96xf32>
    %5 = arith.addf %2, %4 : vector<672x96xf32>
    %c0_5 = arith.constant 0 : index
    %c0_6 = arith.constant 0 : index
    %6 = vector.load %arg2[%c0_5, %c0_6] : memref<672x1xi32, #tpu.memory_space<vmem>>, vector<672x1xi32>
    %7 = vector.extract_strided_slice %5 {offsets = [0, 64], sizes = [672, 32], strides = [1, 1]} : vector<672x96xf32> to vector<672x32xf32>
    %c1_i32 = arith.constant 1 : i32
    %8 = vector.broadcast %c1_i32 : i32 to vector<672x1xi32>
    %9 = arith.cmpi eq, %6, %8 : vector<672x1xi32>
    %10 = vector.extract_strided_slice %5 {offsets = [0, 32], sizes = [672, 32], strides = [1, 1]} : vector<672x96xf32> to vector<672x32xf32>
    %11 = vector.shape_cast %9 : vector<672x1xi1> to vector<672x1xi1>
    %12 = vector.broadcast %11 : vector<672x1xi1> to vector<672x32xi1>
    %13 = arith.select %12, %10, %7 : vector<672x32xi1>, vector<672x32xf32>
    %c0_i32 = arith.constant 0 : i32
    %14 = vector.broadcast %c0_i32 : i32 to vector<672x1xi32>
    %15 = arith.cmpi eq, %6, %14 : vector<672x1xi32>
    %16 = vector.extract_strided_slice %5 {offsets = [0, 0], sizes = [672, 32], strides = [1, 1]} : vector<672x96xf32> to vector<672x32xf32>
    %17 = vector.shape_cast %15 : vector<672x1xi1> to vector<672x1xi1>
    %18 = vector.broadcast %17 : vector<672x1xi1> to vector<672x32xi1>
    %19 = arith.select %18, %16, %13 : vector<672x32xi1>, vector<672x32xf32>
    %20 = vector.extract_strided_slice %19 {offsets = [0, 0], sizes = [672, 8], strides = [1, 1]} : vector<672x32xf32> to vector<672x8xf32>
    %c0_7 = arith.constant 0 : index
    %c0_8 = arith.constant 0 : index
    %21 = vector.load %arg5[%c0_7, %c0_8] : memref<672x8xf32, #tpu.memory_space<vmem>>, vector<672x8xf32>
    tpu.vector_store %arg5[%c0_7, %c0_8], %20 {strides = array<i32>} : memref<672x8xf32, #tpu.memory_space<vmem>>, vector<672x8xf32>,
    %22 = vector.extract_strided_slice %19 {offsets = [0, 8], sizes = [672, 4], strides = [1, 1]} : vector<672x32xf32> to vector<672x4xf32>
    %c0_9 = arith.constant 0 : index
    %c0_10 = arith.constant 0 : index
    %23 = vector.load %arg6[%c0_9, %c0_10] : memref<672x4xf32, #tpu.memory_space<vmem>>, vector<672x4xf32>
    tpu.vector_store %arg6[%c0_9, %c0_10], %22 {strides = array<i32>} : memref<672x4xf32, #tpu.memory_space<vmem>>, vector<672x4xf32>,
    %24 = vector.extract_strided_slice %19 {offsets = [0, 12], sizes = [672, 20], strides = [1, 1]} : vector<672x32xf32> to vector<672x20xf32>
    %c0_11 = arith.constant 0 : index
    %c0_12 = arith.constant 0 : index
    %25 = vector.load %arg7[%c0_11, %c0_12] : memref<672x20xf32, #tpu.memory_space<vmem>>, vector<672x20xf32>
    tpu.vector_store %arg7[%c0_11, %c0_12], %24 {strides = array<i32>} : memref<672x20xf32, #tpu.memory_space<vmem>>, vector<672x20xf32>,
    return
  }
  func.func @transform_0(%arg0: i32) -> (i32, i32) {
    %c0_i32 = arith.constant 0 : i32
    %c0_i32_0 = arith.constant 0 : i32
    return %arg0, %c0_i32 : i32, i32
  }
  func.func @transform_1(%arg0: i32) -> (i32, i32) {
    %c0_i32 = arith.constant 0 : i32
    %c0_i32_0 = arith.constant 0 : i32
    return %arg0, %c0_i32 : i32, i32
  }
  func.func @transform_2(%arg0: i32) -> (i32, i32) {
    %c0_i32 = arith.constant 0 : i32
    %c0_i32_0 = arith.constant 0 : i32
    %c0_i32_1 = arith.constant 0 : i32
    return %c0_i32, %c0_i32_0 : i32, i32
  }
  func.func @transform_3(%arg0: i32) -> (i32, i32) {
    %c0_i32 = arith.constant 0 : i32
    %c0_i32_0 = arith.constant 0 : i32
    %c0_i32_1 = arith.constant 0 : i32
    return %c0_i32, %c0_i32_0 : i32, i32
  }
  func.func @transform_4(%arg0: i32) -> (i32, i32) {
    %c0_i32 = arith.constant 0 : i32
    %c0_i32_0 = arith.constant 0 : i32
    return %arg0, %c0_i32 : i32, i32
  }
  func.func @transform_5(%arg0: i32) -> (i32, i32) {
    %c0_i32 = arith.constant 0 : i32
    %c0_i32_0 = arith.constant 0 : i32
    return %arg0, %c0_i32 : i32, i32
  }
  func.func @transform_6(%arg0: i32) -> (i32, i32) {
    %c0_i32 = arith.constant 0 : i32
    %c0_i32_0 = arith.constant 0 : i32
    return %arg0, %c0_i32 : i32, i32
  }
}

</mosaic_0001>

<bundles_post_ra>
// kernel: retinaface_heads_forward.1
= control target key start
LH: loop header
LB: loop body
LE: loop exit
PB: predicated region body
PF: predicated region fallthrough
CT: control target
= control target key end

     0   :  { %v8348_v0 = vmov 0   ;;  %vm119_vm2 = vcmask 523264   ;;  %s4078_s23 = smov 96   ;;  %s4079_s21 = smov 120   ;;  %s8341_s2 = inlined_call_operand.vmem [shape: f32[64,96], index: 2, kind: input, shape index: {}]   ;;  %s8342_s1 = inlined_call_operand.vmem [shape: s32[672,1], index: 1, kind: input, shape index: {}]   ;;  %s8343_s0 = inlined_call_operand.vmem [shape: f32[672,64], index: 0, kind: input, shape index: {}]   ;;  %s8344_s3 = inlined_call_operand.vmem [shape: f32[1,96], index: 3, kind: input, shape index: {}]   ;;  %s8345_s4 = inlined_call_operand.vmem [shape: f32[672,8], index: 4, kind: output, shape index: {0}]   ;;  %s8346_s5 = inlined_call_operand.vmem [shape: f32[672,4], index: 5, kind: output, shape index: {1}]   ;;  %s8347_s6 = inlined_call_operand.vmem [shape: f32[672,20], index: 6, kind: output, shape index: {2}]  }
   0x1   :  { %3992 = vset.pattern.permute.xlu1 %v8348_v0  ;;  %3991 = vset.pattern.permute.xlu0 %v8348_v0  ;;  %v104_v1 = vld [vmem:[%s8341_s2] sm:$0xff]  ;;  %v105_v2 = vld [vmem:[%s8341_s2 + $0x8] sm:$0xff]  ;;  %v859_v3 = vld [vmem:[%s8342_s1 + $0x10] sm:$0xff]  ;;  %s4080_s27 = smov 116  }
   0x2   :  { %v3963_v4 = vpack.c.bf16 %v105_v2, %v104_v1  ;;  %vm943_vm0 = vcmp.eq.s32.totalorder %v859_v3, 1  ;;  %v857_v5 = vld [vmem:[%s8342_s1] sm:$0xff]  ;;  %v106_v6 = vld [vmem:[%s8341_s2 + $0x10] sm:$0xff]  ;;  %v107_v7 = vld [vmem:[%s8341_s2 + $0x18] sm:$0xff] }
   0x3   :  { %v1027_v8 = vsel %vm943_vm0, 1, %v8348_v0  ;;  %vm941_vm1 = vcmp.eq.s32.totalorder %v857_v5, 1  ;;  %v3967_v9 = vpack.c.bf16 %v107_v7, %v106_v6  ;;  %v860_v10 = vld [vmem:[%s8342_s1 + $0x18] sm:$0xff]  ;;  %v858_v11 = vld [vmem:[%s8342_s1 + $0x8] sm:$0xff]  ;;  %v108_v12 = vld [vmem:[%s8341_s2 + $0x20] sm:$0xff] }
   0x4   :  { %3964 = vmatprep.subr.bf16.mxu0 %v3963_v4  ;;  %1116 = vperm.xlu1 %3992, %v1027_v8   ;;  %v1025_v13 = vsel %vm941_vm1, 1, %v8348_v0  ;;  %vm944_vm3 = vcmp.eq.s32.totalorder %v860_v10, 1  ;;  %vm942_vm4 = vcmp.eq.s32.totalorder %v858_v11, 1  ;;  %v109_v14 = vld [vmem:[%s8341_s2 + $0x28] sm:$0xff]  ;;  %v861_v16 = vld [vmem:[%s8342_s1 + $0x20] sm:$0xff]  ;;  %v110_v21 = vld [vmem:[%s8341_s2 + $0x30] sm:$0xff] }
   0x5   :  { %v862_v15 = vld [vmem:[%s8342_s1 + $0x28] sm:$0xff]  ;;  %1110 = vperm.xlu0 %3991, %v1025_v13   ;;  %3966 = vmatpush3.bf16.msra.mxu0 %v3963_v4  ;;  %v1028_v17 = vsel %vm944_vm3, 1, %v8348_v0  ;;  %v1026_v18 = vsel %vm942_vm4, 1, %v8348_v0  ;;  %v3971_v19 = vpack.c.bf16 %v109_v14, %v108_v12  ;;  %v20_v20 = vld [vmem:[%s8343_s0] sm:$0xff]  ;;  %vm945_vm6 = vcmp.eq.s32.totalorder %v861_v16, 1  ;;  %v111_v22 = vld [vmem:[%s8341_s2 + $0x38] sm:$0xff] }
   0x6   :  { %3979 = vmatprep.subr.bf16.mxu1 %v3963_v4  ;;  %3968 = vmatprep.subr.bf16.mxu0 %v3967_v9  ;;  %vm946_vm5 = vcmp.eq.s32.totalorder %v862_v15, 1  ;;  %v864_v23 = vld [vmem:[%s8342_s1 + $0x38] sm:$0xff]  ;;  %v863_v24 = vld [vmem:[%s8342_s1 + $0x30] sm:$0xff]  ;;  %v1029_v27 = vsel %vm945_vm6, 1, %v8348_v0  ;;  %v3975_v28 = vpack.c.bf16 %v111_v22, %v110_v21  ;;  %v866_v29 = vld [vmem:[%s8342_s1 + $0x48] sm:$0xff] }
   0x7   :  { %3983 = vmatpush3.bf16.msra.mxu1 %v3963_v4  ;;  %3837 = vmatprep.mubr.msk.f32.mxu0 %vm119_vm2, %v20_v20  ;;  %v62_v25 = vld [vmem:[%s8343_s0 + $0x150] sm:$0xff]  ;;  %v1030_v26 = vsel %vm946_vm5, 1, %v8348_v0  ;;  %vm948_vm7 = vcmp.eq.s32.totalorder %v864_v23, 1  ;;  %vm947_vm8 = vcmp.eq.s32.totalorder %v863_v24, 1  ;;  %v865_v30 = vld [vmem:[%s8342_s1 + $0x40] sm:$0xff]  ;;  %vm950_vm9 = vcmp.eq.s32.totalorder %v866_v29, 1 }
   0x8   :  { %1119 = vperm.xlu1 %3992, %v1028_v17   ;;  %3980 = vmatprep.subr.bf16.mxu1 %v3967_v9  ;;  %v1032_v31 = vsel %vm948_vm7, 1, %v8348_v0  ;;  %v1031_v32 = vsel %vm947_vm8, 1, %v8348_v0  ;;  %vm949_vm10 = vcmp.eq.s32.totalorder %v865_v30, 1  ;;  %v868_v33 = vld [vmem:[%s8342_s1 + $0x58] sm:$0xff]  ;;  %v867_v34 = vld [vmem:[%s8342_s1 + $0x50] sm:$0xff]  ;;  %v1034_v35 = vsel %vm950_vm9, 1, %v8348_v0 }
   0x9   :  { %1113 = vperm.xlu0 %3991, %v1026_v18   ;;  %3970 = vmatpush3.bf16.msra.mxu0 %v3967_v9  ;;  %v21_v36 = vld [vmem:[%s8343_s0 + $0x8] sm:$0xff]  ;;  %v1033_v37 = vsel %vm949_vm10, 1, %v8348_v0  ;;  %vm952_vm11 = vcmp.eq.s32.totalorder %v868_v33, 1  ;;  %v22_v38 = vld [vmem:[%s8343_s0 + $0x10] sm:$0xff]  ;;  %v63_v39 = vld [vmem:[%s8343_s0 + $0x158] sm:$0xff]  ;;  %vm951_vm12 = vcmp.eq.s32.totalorder %v867_v34, 1 }
   0xa   :  { %3972 = vmatprep.subr.bf16.mxu0 %v3971_v19  ;;  %3900 = vmatprep.mubr.msk.f32.mxu1 %vm119_vm2, %v62_v25  ;;  %v870_v40 = vld [vmem:[%s8342_s1 + $0x68] sm:$0xff]  ;;  %v869_v41 = vld [vmem:[%s8342_s1 + $0x60] sm:$0xff]  ;;  %v1036_v43 = vsel %vm952_vm11, 1, %v8348_v0  ;;  %v23_v44 = vld [vmem:[%s8343_s0 + $0x18] sm:$0xff]  ;;  %v1035_v45 = vsel %vm951_vm12, 1, %v8348_v0 }
   0xb   :  { %3984 = vmatpush3.bf16.msra.mxu1 %v3967_v9  ;;  %v64_v42 = vld [vmem:[%s8343_s0 + $0x160] sm:$0xff]  ;;  %vm954_vm13 = vcmp.eq.s32.totalorder %v870_v40, 1  ;;  %vm953_vm14 = vcmp.eq.s32.totalorder %v869_v41, 1  ;;  %v65_v47 = vld [vmem:[%s8343_s0 + $0x168] sm:$0xff]  ;;  %v872_v48 = vld [vmem:[%s8342_s1 + $0x78] sm:$0xff] }
   0xc   :  { %1125 = vperm.xlu1 %3992, %v1030_v26   ;;  %3981 = vmatprep.subr.bf16.mxu1 %v3971_v19  ;;  %v24_v46 = vld [vmem:[%s8343_s0 + $0x20] sm:$0xff]  ;;  %v871_v49 = vld [vmem:[%s8342_s1 + $0x70] sm:$0xff]  ;;  %v1038_v51 = vsel %vm954_vm13, 1, %v8348_v0  ;;  %v25_v52 = vld [vmem:[%s8343_s0 + $0x28] sm:$0xff]  ;;  %v1037_v53 = vsel %vm953_vm14, 1, %v8348_v0  ;;  %vm956_vm15 = vcmp.eq.s32.totalorder %v872_v48, 1 }
   0xd   :  { %1122 = vperm.xlu0 %3991, %v1029_v27   ;;  %3974 = vmatpush3.bf16.msra.mxu0 %v3971_v19  ;;  %v66_v50 = vld [vmem:[%s8343_s0 + $0x170] sm:$0xff]  ;;  %vm955_vm0 = vcmp.eq.s32.totalorder %v871_v49, 1  ;;  %v874_v55 = vld [vmem:[%s8342_s1 + $0x88] sm:$0xff]  ;;  %v67_v56 = vld [vmem:[%s8343_s0 + $0x178] sm:$0xff]  ;;  %v1040_v59 = vsel %vm956_vm15, 1, %v8348_v0 }
   0xe   :  { %3976 = vmatprep.subr.bf16.mxu0 %v3975_v28  ;;  %v26_v54 = vld [vmem:[%s8343_s0 + $0x30] sm:$0xff]  ;;  %v873_v57 = vld [vmem:[%s8342_s1 + $0x80] sm:$0xff]  ;;  %v27_v60 = vld [vmem:[%s8343_s0 + $0x38] sm:$0xff]  ;;  %v1039_v61 = vsel %vm955_vm0, 1, %v8348_v0  ;;  %vm958_vm1 = vcmp.eq.s32.totalorder %v874_v55, 1 }
   0xf   :  { %3985 = vmatpush3.bf16.msra.mxu1 %v3971_v19  ;;  %v68_v58 = vld [vmem:[%s8343_s0 + $0x180] sm:$0xff]  ;;  %vm957_vm3 = vcmp.eq.s32.totalorder %v873_v57, 1  ;;  %v876_v63 = vld [vmem:[%s8342_s1 + $0x98] sm:$0xff]  ;;  %v69_v1 = vld [vmem:[%s8343_s0 + $0x188] sm:$0xff]  ;;  %v1042_v4 = vsel %vm958_vm1, 1, %v8348_v0 }
  0x10   :  { %1131 = vperm.xlu1 %3992, %v1032_v31   ;;  %3982 = vmatprep.subr.bf16.mxu1 %v3975_v28  ;;  %v28_v62 = vld [vmem:[%s8343_s0 + $0x40] sm:$0xff]  ;;  %v875_v2 = vld [vmem:[%s8342_s1 + $0x90] sm:$0xff]  ;;  %v29_v5 = vld [vmem:[%s8343_s0 + $0x48] sm:$0xff]  ;;  %v1041_v6 = vsel %vm957_vm3, 1, %v8348_v0  ;;  %vm960_vm4 = vcmp.eq.s32.totalorder %v876_v63, 1 }
  0x11   :  { %1128 = vperm.xlu0 %3991, %v1031_v32   ;;  %3978 = vmatpush3.bf16.msra.mxu0 %v3975_v28  ;;  %v70_v3 = vld [vmem:[%s8343_s0 + $0x190] sm:$0xff]  ;;  %vm959_vm5 = vcmp.eq.s32.totalorder %v875_v2, 1  ;;  %v878_v8 = vld [vmem:[%s8342_s1 + $0xa8] sm:$0xff]  ;;  %v71_v9 = vld [vmem:[%s8343_s0 + $0x198] sm:$0xff]  ;;  %v1044_v12 = vsel %vm960_vm4, 1, %v8348_v0 }
  0x12   :  { %v30_v7 = vld [vmem:[%s8343_s0 + $0x50] sm:$0xff]  ;;  %v877_v10 = vld [vmem:[%s8342_s1 + $0xa0] sm:$0xff]  ;;  %v31_v13 = vld [vmem:[%s8343_s0 + $0x58] sm:$0xff]  ;;  %v1043_v14 = vsel %vm959_vm5, 1, %v8348_v0  ;;  %vm962_vm6 = vcmp.eq.s32.totalorder %v878_v8, 1 }
  0x13   :  { %3986 = vmatpush3.bf16.msra.mxu1 %v3975_v28  ;;  %v72_v11 = vld [vmem:[%s8343_s0 + $0x1a0] sm:$0xff]  ;;  %vm961_vm7 = vcmp.eq.s32.totalorder %v877_v10, 1  ;;  %v880_v16 = vld [vmem:[%s8342_s1 + $0xb8] sm:$0xff]  ;;  %v73_v17 = vld [vmem:[%s8343_s0 + $0x1a8] sm:$0xff]  ;;  %v1046_v20 = vsel %vm962_vm6, 1, %v8348_v0 }
  0x14   :  { %1137 = vperm.xlu1 %3992, %v1034_v35   ;;  %3838 = vmatmul.mubr.msk.f32.vlgmr.msra.gmra.mrb[0].mxu0 %vm119_vm2, %v21_v36  ;;  %v32_v15 = vld [vmem:[%s8343_s0 + $0x60] sm:$0xff]  ;;  %v879_v18 = vld [vmem:[%s8342_s1 + $0xb0] sm:$0xff]  ;;  %v33_v21 = vld [vmem:[%s8343_s0 + $0x68] sm:$0xff]  ;;  %v1045_v22 = vsel %vm961_vm7, 1, %v8348_v0  ;;  %vm964_vm8 = vcmp.eq.s32.totalorder %v880_v16, 1 }
  0x15   :  { %1134 = vperm.xlu0 %3991, %v1033_v37   ;;  %3840 = vmatprep.mubr.msk.f32.mxu0 %vm119_vm2, %v22_v38  ;;  %v74_v19 = vld [vmem:[%s8343_s0 + $0x1b0] sm:$0xff]  ;;  %vm963_vm9 = vcmp.eq.s32.totalorder %v879_v18, 1  ;;  %v882_v24 = vld [vmem:[%s8342_s1 + $0xc8] sm:$0xff]  ;;  %v75_v25 = vld [vmem:[%s8343_s0 + $0x1b8] sm:$0xff]  ;;  %v1048_v28 = vsel %vm964_vm8, 1, %v8348_v0 }
  0x16   :  { %3901 = vmatmul.mubr.msk.f32.vlgmr.msra.gmra.mrb[0].mxu1 %vm119_vm2, %v63_v39  ;;  %v34_v23 = vld [vmem:[%s8343_s0 + $0x70] sm:$0xff]  ;;  %v881_v26 = vld [vmem:[%s8342_s1 + $0xc0] sm:$0xff]  ;;  %v35_v29 = vld [vmem:[%s8343_s0 + $0x78] sm:$0xff]  ;;  %v1047_v30 = vsel %vm963_vm9, 1, %v8348_v0  ;;  %vm966_vm10 = vcmp.eq.s32.totalorder %v882_v24, 1 }
  0x17   :  { %3903 = vmatprep.mubr.msk.f32.mxu1 %vm119_vm2, %v64_v42  ;;  %v76_v27 = vld [vmem:[%s8343_s0 + $0x1c0] sm:$0xff]  ;;  %vm965_vm11 = vcmp.eq.s32.totalorder %v881_v26, 1  ;;  %v884_v32 = vld [vmem:[%s8342_s1 + $0xd8] sm:$0xff]  ;;  %v77_v33 = vld [vmem:[%s8343_s0 + $0x1c8] sm:$0xff]  ;;  %v1050_v36 = vsel %vm966_vm10, 1, %v8348_v0 }
  0x18   :  { %1143 = vperm.xlu1 %3992, %v1036_v43   ;;  %3841 = vmatmul.mubr.msk.f32.gmra.mrb[2].mxu0 %vm119_vm2, %v23_v44  ;;  %v36_v31 = vld [vmem:[%s8343_s0 + $0x80] sm:$0xff]  ;;  %v883_v34 = vld [vmem:[%s8342_s1 + $0xd0] sm:$0xff]  ;;  %v37_v37 = vld [vmem:[%s8343_s0 + $0x88] sm:$0xff]  ;;  %v1049_v38 = vsel %vm965_vm11, 1, %v8348_v0  ;;  %vm968_vm12 = vcmp.eq.s32.totalorder %v884_v32, 1 }
  0x19   :  { %1140 = vperm.xlu0 %3991, %v1035_v45   ;;  %3843 = vmatprep.mubr.msk.f32.mxu0 %vm119_vm2, %v24_v46  ;;  %v78_v35 = vld [vmem:[%s8343_s0 + $0x1d0] sm:$0xff]  ;;  %vm967_vm13 = vcmp.eq.s32.totalorder %v883_v34, 1  ;;  %v886_v40 = vld [vmem:[%s8342_s1 + $0xe8] sm:$0xff]  ;;  %v79_v41 = vld [vmem:[%s8343_s0 + $0x1d8] sm:$0xff]  ;;  %v1052_v44 = vsel %vm968_vm12, 1, %v8348_v0 }
  0x1a   :  { %3904 = vmatmul.mubr.msk.f32.gmra.mrb[2].mxu1 %vm119_vm2, %v65_v47  ;;  %v38_v39 = vld [vmem:[%s8343_s0 + $0x90] sm:$0xff]  ;;  %v885_v42 = vld [vmem:[%s8342_s1 + $0xe0] sm:$0xff]  ;;  %v39_v45 = vld [vmem:[%s8343_s0 + $0x98] sm:$0xff]  ;;  %v1051_v46 = vsel %vm967_vm13, 1, %v8348_v0  ;;  %vm970_vm14 = vcmp.eq.s32.totalorder %v886_v40, 1 }
  0x1b   :  { %3906 = vmatprep.mubr.msk.f32.mxu1 %vm119_vm2, %v66_v50  ;;  %v80_v43 = vld [vmem:[%s8343_s0 + $0x1e0] sm:$0xff]  ;;  %vm969_vm15 = vcmp.eq.s32.totalorder %v885_v42, 1  ;;  %v888_v48 = vld [vmem:[%s8342_s1 + $0xf8] sm:$0xff]  ;;  %v81_v49 = vld [vmem:[%s8343_s0 + $0x1e8] sm:$0xff] }
  0x1c   :  { %1149 = vperm.xlu1 %3992, %v1038_v51   ;;  %3844 = vmatmul.mubr.msk.f32.gmra.mrb[4].mxu0 %vm119_vm2, %v25_v52  ;;  %v40_v47 = vld [vmem:[%s8343_s0 + $0xa0] sm:$0xff]  ;;  %v887_v50 = vld [vmem:[%s8342_s1 + $0xf0] sm:$0xff]  ;;  %v1054_v52 = vsel %vm970_vm14, 1, %v8348_v0  ;;  %vm972_vm0 = vcmp.eq.s32.totalorder %v888_v48, 1  ;;  %v83_v57 = vld [vmem:[%s8343_s0 + $0x1f8] sm:$0xff] }
  0x1d   :  { %1146 = vperm.xlu0 %3991, %v1037_v53   ;;  %3846 = vmatprep.mubr.msk.f32.mxu0 %vm119_vm2, %v26_v54  ;;  %v82_v51 = vld [vmem:[%s8343_s0 + $0x1f0] sm:$0xff]  ;;  %v41_v53 = vld [vmem:[%s8343_s0 + $0xa8] sm:$0xff]  ;;  %v1053_v54 = vsel %vm969_vm15, 1, %v8348_v0  ;;  %vm971_vm1 = vcmp.eq.s32.totalorder %v887_v50, 1  ;;  %v44_v63 = vld [vmem:[%s8343_s0 + $0xc0] sm:$0xff] }
  0x1e   :  { %3907 = vmatmul.mubr.msk.f32.gmra.mrb[4].mxu1 %vm119_vm2, %v67_v56  ;;  %v42_v55 = vld [vmem:[%s8343_s0 + $0xb0] sm:$0xff]  ;;  %v890_v56 = vld [vmem:[%s8342_s1 + $0x108] sm:$0xff]  ;;  %v87_v10 = vld [vmem:[%s8343_s0 + $0x218] sm:$0xff] }
  0x1f   :  { %3909 = vmatprep.mubr.msk.f32.mxu1 %vm119_vm2, %v68_v58  ;;  %v889_v58 = vld [vmem:[%s8342_s1 + $0x100] sm:$0xff]  ;;  %vm974_vm3 = vcmp.eq.s32.totalorder %v890_v56, 1  ;;  %v85_v2 = vld [vmem:[%s8343_s0 + $0x208] sm:$0xff]  ;;  %v46_v8 = vld [vmem:[%s8343_s0 + $0xd0] sm:$0xff] }
  0x20   :  { %1155 = vperm.xlu1 %3992, %v1040_v59   ;;  %3847 = vmatmul.mubr.msk.f32.gmra.mrb[6].mxu0 %vm119_vm2, %v27_v60  ;;  %v84_v59 = vld [vmem:[%s8343_s0 + $0x200] sm:$0xff]  ;;  %v1056_v60 = vsel %vm972_vm0, 1, %v8348_v0  ;;  %vm973_vm4 = vcmp.eq.s32.totalorder %v889_v58, 1  ;;  %v89_v18 = vld [vmem:[%s8343_s0 + $0x228] sm:$0xff]  ;;  %v50_v24 = vld [vmem:[%s8343_s0 + $0xf0] sm:$0xff] }
  0x21   :  { %1152 = vperm.xlu0 %3991, %v1039_v61   ;;  %3849 = vmatprep.mubr.msk.f32.mxu0 %vm119_vm2, %v28_v62  ;;  %v43_v61 = vld [vmem:[%s8343_s0 + $0xb8] sm:$0xff]  ;;  %v1055_v62 = vsel %vm971_vm1, 1, %v8348_v0  ;;  %v48_v16 = vld [vmem:[%s8343_s0 + $0xe0] sm:$0xff]  ;;  %v93_v34 = vld [vmem:[%s8343_s0 + $0x248] sm:$0xff] }
  0x22   :  { %3910 = vmatmul.mubr.msk.f32.gmra.mrb[6].mxu1 %vm119_vm2, %v69_v1  ;;  %v892_v1 = vld [vmem:[%s8342_s1 + $0x118] sm:$0xff]  ;;  %v52_v32 = vld [vmem:[%s8343_s0 + $0x100] sm:$0xff]  ;;  %v54_v40 = vld [vmem:[%s8343_s0 + $0x110] sm:$0xff] }
  0x23   :  { %3912 = vmatprep.mubr.msk.f32.mxu1 %vm119_vm2, %v70_v3  ;;  %v891_v3 = vld [vmem:[%s8342_s1 + $0x110] sm:$0xff]  ;;  %vm976_vm5 = vcmp.eq.s32.totalorder %v892_v1, 1  ;;  %v91_v26 = vld [vmem:[%s8343_s0 + $0x238] sm:$0xff]  ;;  %v56_v48 = vld [vmem:[%s8343_s0 + $0x120] sm:$0xff] }
  0x24   :  { %1161 = vperm.xlu1 %3992, %v1042_v4   ;;  %3850 = vmatmul.mubr.msk.f32.gmra.mrb[8].mxu0 %vm119_vm2, %v29_v5  ;;  %v86_v4 = vld [vmem:[%s8343_s0 + $0x210] sm:$0xff]  ;;  %v1058_v5 = vsel %vm974_vm3, 1, %v8348_v0  ;;  %vm975_vm6 = vcmp.eq.s32.totalorder %v891_v3, 1  ;;  %v95_v42 = vld [vmem:[%s8343_s0 + $0x258] sm:$0xff]  ;;  %v97_v50 = vld [vmem:[%s8343_s0 + $0x268] sm:$0xff] }
  0x25   :  { %1158 = vperm.xlu0 %3991, %v1041_v6   ;;  %3852 = vmatprep.mubr.msk.f32.mxu0 %vm119_vm2, %v30_v7  ;;  %v45_v6 = vld [vmem:[%s8343_s0 + $0xc8] sm:$0xff]  ;;  %v1057_v7 = vsel %vm973_vm4, 1, %v8348_v0  ;;  %v58_v56 = vld [vmem:[%s8343_s0 + $0x130] sm:$0xff]  ;;  %v99_v58 = vld [vmem:[%s8343_s0 + $0x278] sm:$0xff] }
  0x26   :  { %3913 = vmatmul.mubr.msk.f32.gmra.mrb[8].mxu1 %vm119_vm2, %v71_v9  ;;  %v894_v9 = vld [vmem:[%s8342_s1 + $0x128] sm:$0xff]  ;;  %v60_v1 = vld [vmem:[%s8343_s0 + $0x140] sm:$0xff] }
  0x27   :  { %3915 = vmatprep.mubr.msk.f32.mxu1 %vm119_vm2, %v72_v11  ;;  %v893_v11 = vld [vmem:[%s8342_s1 + $0x120] sm:$0xff]  ;;  %vm978_vm7 = vcmp.eq.s32.totalorder %v894_v9, 1  ;;  %v101_v3 = vld [vmem:[%s8343_s0 + $0x288] sm:$0xff] }
  0x28   :  { %1167 = vperm.xlu1 %3992, %v1044_v12   ;;  %3853 = vmatmul.mubr.msk.f32.gmra.mrb[10].mxu0 %vm119_vm2, %v31_v13  ;;  %v88_v12 = vld [vmem:[%s8343_s0 + $0x220] sm:$0xff]  ;;  %v1060_v13 = vsel %vm976_vm5, 1, %v8348_v0  ;;  %vm977_vm8 = vcmp.eq.s32.totalorder %v893_v11, 1  ;;  %v910_v9 = vld [vmem:[%s8342_s1 + $0x1a8] sm:$0xff] }
  0x29   :  { %1164 = vperm.xlu0 %3991, %v1043_v14   ;;  %3855 = vmatprep.mubr.msk.f32.mxu0 %vm119_vm2, %v32_v15  ;;  %v47_v14 = vld [vmem:[%s8343_s0 + $0xd8] sm:$0xff]  ;;  %v1059_v15 = vsel %vm975_vm6, 1, %v8348_v0  ;;  %v909_v11 = vld [vmem:[%s8342_s1 + $0x1a0] sm:$0xff] }
  0x2a   :  { %3916 = vmatmul.mubr.msk.f32.gmra.mrb[10].mxu1 %vm119_vm2, %v73_v17  ;;  %v896_v17 = vld [vmem:[%s8342_s1 + $0x138] sm:$0xff] }
  0x2b   :  { %3918 = vmatprep.mubr.msk.f32.mxu1 %vm119_vm2, %v74_v19  ;;  %v895_v19 = vld [vmem:[%s8342_s1 + $0x130] sm:$0xff]  ;;  %vm980_vm9 = vcmp.eq.s32.totalorder %v896_v17, 1 }
  0x2c   :  { %1173 = vperm.xlu1 %3992, %v1046_v20   ;;  %3856 = vmatmul.mubr.msk.f32.gmra.mrb[12].mxu0 %vm119_vm2, %v33_v21  ;;  %v90_v20 = vld [vmem:[%s8343_s0 + $0x230] sm:$0xff]  ;;  %v1062_v21 = vsel %vm978_vm7, 1, %v8348_v0  ;;  %vm979_vm10 = vcmp.eq.s32.totalorder %v895_v19, 1  ;;  %v913_v19 = vld [vmem:[%s8342_s1 + $0x1c0] sm:$0xff] }
  0x2d   :  { %1170 = vperm.xlu0 %3991, %v1045_v22   ;;  %3858 = vmatprep.mubr.msk.f32.mxu0 %vm119_vm2, %v34_v23  ;;  %v49_v22 = vld [vmem:[%s8343_s0 + $0xe8] sm:$0xff]  ;;  %v1061_v23 = vsel %vm977_vm8, 1, %v8348_v0  ;;  %vm994_vm8 = vcmp.eq.s32.totalorder %v910_v9, 1 }
  0x2e   :  { %3919 = vmatmul.mubr.msk.f32.gmra.mrb[12].mxu1 %vm119_vm2, %v75_v25  ;;  %v898_v25 = vld [vmem:[%s8342_s1 + $0x148] sm:$0xff] }
  0x2f   :  { %3921 = vmatprep.mubr.msk.f32.mxu1 %vm119_vm2, %v76_v27  ;;  %v897_v27 = vld [vmem:[%s8342_s1 + $0x140] sm:$0xff]  ;;  %vm982_vm11 = vcmp.eq.s32.totalorder %v898_v25, 1 }
  0x30   :  { %1179 = vperm.xlu1 %3992, %v1048_v28   ;;  %3859 = vmatmul.mubr.msk.f32.gmra.mrb[14].mxu0 %vm119_vm2, %v35_v29  ;;  %v92_v28 = vld [vmem:[%s8343_s0 + $0x240] sm:$0xff]  ;;  %v1064_v29 = vsel %vm980_vm9, 1, %v8348_v0  ;;  %vm981_vm12 = vcmp.eq.s32.totalorder %v897_v27, 1  ;;  %vm993_vm9 = vcmp.eq.s32.totalorder %v909_v11, 1 }
  0x31   :  { %1176 = vperm.xlu0 %3991, %v1047_v30   ;;  %3861 = vmatprep.mubr.msk.f32.mxu0 %vm119_vm2, %v36_v31  ;;  %v51_v30 = vld [vmem:[%s8343_s0 + $0xf8] sm:$0xff]  ;;  %v1063_v31 = vsel %vm979_vm10, 1, %v8348_v0  ;;  %v1077_v17 = vsel %vm993_vm9, 1, %v8348_v0  ;;  %v917_v27 = vld [vmem:[%s8342_s1 + $0x1e0] sm:$0xff] }
  0x32   :  { %3922 = vmatmul.mubr.msk.f32.gmra.mrb[14].mxu1 %vm119_vm2, %v77_v33  ;;  %v900_v33 = vld [vmem:[%s8342_s1 + $0x158] sm:$0xff] }
  0x33   :  { %3924 = vmatprep.mubr.msk.f32.mxu1 %vm119_vm2, %v78_v35  ;;  %v899_v35 = vld [vmem:[%s8342_s1 + $0x150] sm:$0xff]  ;;  %vm984_vm13 = vcmp.eq.s32.totalorder %v900_v33, 1 }
  0x34   :  { %1185 = vperm.xlu1 %3992, %v1050_v36   ;;  %3862 = vmatmul.mubr.msk.f32.gmra.mrb[16].mxu0 %vm119_vm2, %v37_v37  ;;  %v94_v36 = vld [vmem:[%s8343_s0 + $0x250] sm:$0xff]  ;;  %v1066_v37 = vsel %vm982_vm11, 1, %v8348_v0  ;;  %vm983_vm14 = vcmp.eq.s32.totalorder %v899_v35, 1  ;;  %v921_v35 = vld [vmem:[%s8342_s1 + $0x200] sm:$0xff] }
  0x35   :  { %1182 = vperm.xlu0 %3991, %v1049_v38   ;;  %3864 = vmatprep.mubr.msk.f32.mxu0 %vm119_vm2, %v38_v39  ;;  %v53_v38 = vld [vmem:[%s8343_s0 + $0x108] sm:$0xff]  ;;  %v1065_v39 = vsel %vm981_vm12, 1, %v8348_v0  ;;  %vm997_vm12 = vcmp.eq.s32.totalorder %v913_v19, 1 }
  0x36   :  { %3925 = vmatmul.mubr.msk.f32.gmra.mrb[16].mxu1 %vm119_vm2, %v79_v41  ;;  %v902_v41 = vld [vmem:[%s8342_s1 + $0x168] sm:$0xff]  ;;  %v1081_v25 = vsel %vm997_vm12, 1, %v8348_v0 }
  0x37   :  { %3927 = vmatprep.mubr.msk.f32.mxu1 %vm119_vm2, %v80_v43  ;;  %v901_v43 = vld [vmem:[%s8342_s1 + $0x160] sm:$0xff]  ;;  %vm986_vm15 = vcmp.eq.s32.totalorder %v902_v41, 1 }
  0x38   :  { %1191 = vperm.xlu1 %3992, %v1052_v44   ;;  %3865 = vmatmul.mubr.msk.f32.gmra.mrb[18].mxu0 %vm119_vm2, %v39_v45  ;;  %v96_v44 = vld [vmem:[%s8343_s0 + $0x260] sm:$0xff]  ;;  %v1068_v45 = vsel %vm984_vm13, 1, %v8348_v0  ;;  %vm985_vm0 = vcmp.eq.s32.totalorder %v901_v43, 1  ;;  %v926_v43 = vld [vmem:[%s8342_s1 + $0x228] sm:$0xff] }
  0x39   :  { %1188 = vperm.xlu0 %3991, %v1051_v46   ;;  %3867 = vmatprep.mubr.msk.f32.mxu0 %vm119_vm2, %v40_v47  ;;  %v55_v46 = vld [vmem:[%s8343_s0 + $0x118] sm:$0xff]  ;;  %v1067_v47 = vsel %vm983_vm14, 1, %v8348_v0 }
  0x3a   :  { %3928 = vmatmul.mubr.msk.f32.gmra.mrb[18].mxu1 %vm119_vm2, %v81_v49  ;;  %v904_v49 = vld [vmem:[%s8342_s1 + $0x178] sm:$0xff] }
  0x3b   :  { %3930 = vmatprep.mubr.msk.f32.mxu1 %vm119_vm2, %v82_v51  ;;  %v903_v51 = vld [vmem:[%s8342_s1 + $0x170] sm:$0xff]  ;;  %vm988_vm1 = vcmp.eq.s32.totalorder %v904_v49, 1  ;;  %v928_v49 = vld [vmem:[%s8342_s1 + $0x238] sm:$0xff] }
  0x3c   :  { %1197 = vperm.xlu1 %3992, %v1054_v52   ;;  %3868 = vmatmul.mubr.msk.f32.gmra.mrb[20].mxu0 %vm119_vm2, %v41_v53  ;;  %v98_v52 = vld [vmem:[%s8343_s0 + $0x270] sm:$0xff]  ;;  %v1070_v53 = vsel %vm986_vm15, 1, %v8348_v0  ;;  %vm987_vm3 = vcmp.eq.s32.totalorder %v903_v51, 1 }
  0x3d   :  { %1194 = vperm.xlu0 %3991, %v1053_v54   ;;  %3870 = vmatprep.mubr.msk.f32.mxu0 %vm119_vm2, %v42_v55  ;;  %v57_v54 = vld [vmem:[%s8343_s0 + $0x128] sm:$0xff]  ;;  %v1069_v55 = vsel %vm985_vm0, 1, %v8348_v0  ;;  %vm1001_vm0 = vcmp.eq.s32.totalorder %v917_v27, 1  ;;  %v927_v51 = vld [vmem:[%s8342_s1 + $0x230] sm:$0xff] }
  0x3e   :  { %3931 = vmatmul.mubr.msk.f32.gmra.mrb[20].mxu1 %vm119_vm2, %v83_v57  ;;  %v906_v57 = vld [vmem:[%s8342_s1 + $0x188] sm:$0xff]  ;;  %v1085_v33 = vsel %vm1001_vm0, 1, %v8348_v0 }
  0x3f   :  { %3933 = vmatprep.mubr.msk.f32.mxu1 %vm119_vm2, %v84_v59  ;;  %v905_v59 = vld [vmem:[%s8342_s1 + $0x180] sm:$0xff]  ;;  %vm990_vm4 = vcmp.eq.s32.totalorder %v906_v57, 1 }
  0x40   :  { %1203 = vperm.xlu1 %3992, %v1056_v60   ;;  %3871 = vmatmul.mubr.msk.f32.gmra.mrb[22].mxu0 %vm119_vm2, %v43_v61  ;;  %v100_v60 = vld [vmem:[%s8343_s0 + $0x280] sm:$0xff]  ;;  %v1072_v61 = vsel %vm988_vm1, 1, %v8348_v0  ;;  %vm989_vm5 = vcmp.eq.s32.totalorder %v905_v59, 1 }
  0x41   :  { %1200 = vperm.xlu0 %3991, %v1055_v62   ;;  %3873 = vmatprep.mubr.msk.f32.mxu0 %vm119_vm2, %v44_v63  ;;  %v59_v62 = vld [vmem:[%s8343_s0 + $0x138] sm:$0xff]  ;;  %v1071_v63 = vsel %vm987_vm3, 1, %v8348_v0  ;;  %v929_v57 = vld [vmem:[%s8342_s1 + $0x240] sm:$0xff] }
  0x42   :  { %3934 = vmatmul.mubr.msk.f32.gmra.mrb[22].mxu1 %vm119_vm2, %v85_v2  ;;  %v908_v2 = vld [vmem:[%s8342_s1 + $0x198] sm:$0xff]  ;;  %vm1013_vm12 = vcmp.eq.s32.totalorder %v929_v57, 1 }
  0x43   :  { %3936 = vmatprep.mubr.msk.f32.mxu1 %vm119_vm2, %v86_v4  ;;  %v907_v4 = vld [vmem:[%s8342_s1 + $0x190] sm:$0xff]  ;;  %vm992_vm6 = vcmp.eq.s32.totalorder %v908_v2, 1  ;;  %v1097_v2 = vsel %vm1013_vm12, 1, %v8348_v0 }
  0x44   :  { %1209 = vperm.xlu1 %3992, %v1058_v5   ;;  %3874 = vmatmul.mubr.msk.f32.gmra.mrb[24].mxu0 %vm119_vm2, %v45_v6  ;;  %v102_v5 = vld [vmem:[%s8343_s0 + $0x290] sm:$0xff]  ;;  %v1074_v6 = vsel %vm990_vm4, 1, %v8348_v0  ;;  %vm991_vm7 = vcmp.eq.s32.totalorder %v907_v4, 1  ;;  %v934_v4 = vld [vmem:[%s8342_s1 + $0x268] sm:$0xff] }
  0x45   :  { %1206 = vperm.xlu0 %3991, %v1057_v7   ;;  %3876 = vmatprep.mubr.msk.f32.mxu0 %vm119_vm2, %v46_v8  ;;  %v61_v7 = vld [vmem:[%s8343_s0 + $0x148] sm:$0xff]  ;;  %v1073_v8 = vsel %vm989_vm5, 1, %v8348_v0  ;;  %vm1005_vm5 = vcmp.eq.s32.totalorder %v921_v35, 1 }
  0x46   :  { %3937 = vmatmul.mubr.msk.f32.gmra.mrb[24].mxu1 %vm119_vm2, %v87_v10  ;;  %v103_v10 = vld [vmem:[%s8343_s0 + $0x298] sm:$0xff]  ;;  %v1089_v41 = vsel %vm1005_vm5, 1, %v8348_v0 }
  0x47   :  { %3939 = vmatprep.mubr.msk.f32.mxu1 %vm119_vm2, %v88_v12  ;;  %v1076_v12 = vsel %vm992_vm6, 1, %v8348_v0 }
  0x48   :  { %1215 = vperm.xlu1 %3992, %v1060_v13   ;;  %3877 = vmatmul.mubr.msk.f32.gmra.mrb[26].mxu0 %vm119_vm2, %v47_v14  ;;  %v1075_v13 = vsel %vm991_vm7, 1, %v8348_v0  ;;  %v912_v14 = vld [vmem:[%s8342_s1 + $0x1b8] sm:$0xff] }
  0x49   :  { %1212 = vperm.xlu0 %3991, %v1059_v15   ;;  %3879 = vmatprep.mubr.msk.f32.mxu0 %vm119_vm2, %v48_v16  ;;  %v911_v15 = vld [vmem:[%s8342_s1 + $0x1b0] sm:$0xff]  ;;  %v1078_v16 = vsel %vm994_vm8, 1, %v8348_v0  ;;  %vm996_vm10 = vcmp.eq.s32.totalorder %v912_v14, 1  ;;  %vm1010_vm8 = vcmp.eq.s32.totalorder %v926_v43, 1 }
  0x4a   :  { %3940 = vmatmul.mubr.msk.f32.gmra.mrb[26].mxu1 %vm119_vm2, %v89_v18  ;;  %vm995_vm11 = vcmp.eq.s32.totalorder %v911_v15, 1  ;;  %v914_v18 = vld [vmem:[%s8342_s1 + $0x1c8] sm:$0xff] }
  0x4b   :  { %3942 = vmatprep.mubr.msk.f32.mxu1 %vm119_vm2, %v90_v20  ;;  %v1080_v20 = vsel %vm996_vm10, 1, %v8348_v0  ;;  %vm1012_vm10 = vcmp.eq.s32.totalorder %v928_v49, 1 }
  0x4c   :  { %1221 = vperm.xlu1 %3992, %v1062_v21   ;;  %3880 = vmatmul.mubr.msk.f32.gmra.mrb[28].mxu0 %vm119_vm2, %v49_v22  ;;  %v1079_v21 = vsel %vm995_vm11, 1, %v8348_v0  ;;  %v916_v22 = vld [vmem:[%s8342_s1 + $0x1d8] sm:$0xff]  ;;  %vm1011_vm11 = vcmp.eq.s32.totalorder %v927_v51, 1 }
  0x4d   :  { %1218 = vperm.xlu0 %3991, %v1061_v23   ;;  %3882 = vmatprep.mubr.msk.f32.mxu0 %vm119_vm2, %v50_v24  ;;  %v915_v23 = vld [vmem:[%s8342_s1 + $0x1d0] sm:$0xff]  ;;  %vm1000_vm13 = vcmp.eq.s32.totalorder %v916_v22, 1  ;;  %v1095_v59 = vsel %vm1011_vm11, 1, %v8348_v0  ;;  %v940_v22 = vld [vmem:[%s8342_s1 + $0x298] sm:$0xff] }
  0x4e   :  { %3943 = vmatmul.mubr.msk.f32.gmra.mrb[28].mxu1 %vm119_vm2, %v91_v26  ;;  %vm999_vm14 = vcmp.eq.s32.totalorder %v915_v23, 1  ;;  %v918_v26 = vld [vmem:[%s8342_s1 + $0x1e8] sm:$0xff] }
  0x4f   :  { %3945 = vmatprep.mubr.msk.f32.mxu1 %vm119_vm2, %v92_v28  ;;  %v1084_v28 = vsel %vm1000_vm13, 1, %v8348_v0  ;;  %vm1002_vm15 = vcmp.eq.s32.totalorder %v918_v26, 1 }
  0x50   :  { %1227 = vperm.xlu1 %3992, %v1064_v29   ;;  %3883 = vmatmul.mubr.msk.f32.gmra.mrb[30].mxu0 %vm119_vm2, %v51_v30  ;;  %v1083_v29 = vsel %vm999_vm14, 1, %v8348_v0  ;;  %v920_v30 = vld [vmem:[%s8342_s1 + $0x1f8] sm:$0xff] }
  0x51   :  { %1224 = vperm.xlu0 %3991, %v1063_v31   ;;  %3885 = vmatprep.mubr.msk.f32.mxu0 %vm119_vm2, %v52_v32  ;;  %v919_v31 = vld [vmem:[%s8342_s1 + $0x1f0] sm:$0xff]  ;;  %v1086_v32 = vsel %vm1002_vm15, 1, %v8348_v0  ;;  %vm1004_vm1 = vcmp.eq.s32.totalorder %v920_v30, 1  ;;  %vm1018_vm15 = vcmp.eq.s32.totalorder %v934_v4, 1 }
  0x52   :  { %3946 = vmatmul.mubr.msk.f32.gmra.mrb[30].mxu1 %vm119_vm2, %v93_v34  ;;  %vm1003_vm3 = vcmp.eq.s32.totalorder %v919_v31, 1  ;;  %v922_v34 = vld [vmem:[%s8342_s1 + $0x208] sm:$0xff] }
  0x53   :  { %3948 = vmatprep.mubr.msk.f32.mxu1 %vm119_vm2, %v94_v36  ;;  %v1088_v36 = vsel %vm1004_vm1, 1, %v8348_v0  ;;  %vm1006_vm4 = vcmp.eq.s32.totalorder %v922_v34, 1 }
  0x54   :  { %1233 = vperm.xlu1 %3992, %v1066_v37   ;;  %3886 = vmatmul.mubr.msk.f32.gmra.mrb[32].mxu0 %vm119_vm2, %v53_v38  ;;  %v1087_v37 = vsel %vm1003_vm3, 1, %v8348_v0  ;;  %v924_v38 = vld [vmem:[%s8342_s1 + $0x218] sm:$0xff] }
  0x55   :  { %1230 = vperm.xlu0 %3991, %v1065_v39   ;;  %3888 = vmatprep.mubr.msk.f32.mxu0 %vm119_vm2, %v54_v40  ;;  %v923_v39 = vld [vmem:[%s8342_s1 + $0x210] sm:$0xff]  ;;  %v1090_v40 = vsel %vm1006_vm4, 1, %v8348_v0  ;;  %vm1008_vm6 = vcmp.eq.s32.totalorder %v924_v38, 1 }
  0x56   :  { %3949 = vmatmul.mubr.msk.f32.gmra.mrb[32].mxu1 %vm119_vm2, %v95_v42  ;;  %vm1007_vm7 = vcmp.eq.s32.totalorder %v923_v39, 1 }
  0x57   :  { %3951 = vmatprep.mubr.msk.f32.mxu1 %vm119_vm2, %v96_v44 }
  0x58   :  { %1239 = vperm.xlu1 %3992, %v1068_v45   ;;  %3889 = vmatmul.mubr.msk.f32.gmra.mrb[34].mxu0 %vm119_vm2, %v55_v46  ;;  %v925_v45 = vld [vmem:[%s8342_s1 + $0x220] sm:$0xff]  ;;  %v1092_v46 = vsel %vm1008_vm6, 1, %v8348_v0  ;;  %vm1024_vm6 = vcmp.eq.s32.totalorder %v940_v22, 1 }
  0x59   :  { %1236 = vperm.xlu0 %3991, %v1067_v47   ;;  %3891 = vmatprep.mubr.msk.f32.mxu0 %vm119_vm2, %v56_v48  ;;  %v1091_v47 = vsel %vm1007_vm7, 1, %v8348_v0  ;;  %vm1009_vm9 = vcmp.eq.s32.totalorder %v925_v45, 1 }
  0x5a   :  { %3952 = vmatmul.mubr.msk.f32.gmra.mrb[34].mxu1 %vm119_vm2, %v97_v50 }
  0x5b   :  { %3954 = vmatprep.mubr.msk.f32.mxu1 %vm119_vm2, %v98_v52  ;;  %v1094_v52 = vsel %vm1010_vm8, 1, %v8348_v0 }
  0x5c   :  { %1245 = vperm.xlu1 %3992, %v1070_v53   ;;  %3892 = vmatmul.mubr.msk.f32.gmra.mrb[36].mxu0 %vm119_vm2, %v57_v54  ;;  %v1093_v53 = vsel %vm1009_vm9, 1, %v8348_v0 }
  0x5d   :  { %1242 = vperm.xlu0 %3991, %v1069_v55   ;;  %3894 = vmatprep.mubr.msk.f32.mxu0 %vm119_vm2, %v58_v56  ;;  %v930_v55 = vld [vmem:[%s8342_s1 + $0x248] sm:$0xff] }
  0x5e   :  { %3955 = vmatmul.mubr.msk.f32.gmra.mrb[36].mxu1 %vm119_vm2, %v99_v58  ;;  %v1096_v58 = vsel %vm1012_vm10, 1, %v8348_v0 }
  0x5f   :  { %3957 = vmatprep.mubr.msk.f32.mxu1 %vm119_vm2, %v100_v60 }
  0x60   :  { %1251 = vperm.xlu1 %3992, %v1072_v61   ;;  %3895 = vmatmul.mubr.msk.f32.gmra.mrb[38].mxu0 %vm119_vm2, %v59_v62  ;;  %v932_v61 = vld [vmem:[%s8342_s1 + $0x258] sm:$0xff] }
  0x61   :  { %1248 = vperm.xlu0 %3991, %v1071_v63   ;;  %3897 = vmatprep.mubr.msk.f32.mxu0 %vm119_vm2, %v60_v1  ;;  %v931_v63 = vld [vmem:[%s8342_s1 + $0x250] sm:$0xff]  ;;  %vm1016_vm13 = vcmp.eq.s32.totalorder %v932_v61, 1 }
  0x62   :  { %3958 = vmatmul.mubr.msk.f32.gmra.mrb[38].mxu1 %vm119_vm2, %v101_v3  ;;  %vm1015_vm14 = vcmp.eq.s32.totalorder %v931_v63, 1 }
  0x63   :  { %3960 = vmatprep.mubr.msk.f32.mxu1 %vm119_vm2, %v102_v5 }
  0x64   :  { %1257 = vperm.xlu1 %3992, %v1074_v6   ;;  %3898 = vmatmul.mubr.msk.f32.gmra.mrb[40].mxu0 %vm119_vm2, %v61_v7  ;;  %v933_v6 = vld [vmem:[%s8342_s1 + $0x260] sm:$0xff]  ;;  %v1100_v7 = vsel %vm1016_vm13, 1, %v8348_v0 }
  0x65   :  { %1254 = vperm.xlu0 %3991, %v1073_v8   ;;  %v1099_v8 = vsel %vm1015_vm14, 1, %v8348_v0  ;;  %vm1017_vm0 = vcmp.eq.s32.totalorder %v933_v6, 1 }
  0x66   :  { %3961 = vmatmul.mubr.msk.f32.gmra.mrb[40].mxu1 %vm119_vm2, %v103_v10  ;;  %vm998_vm2 = vcmp.eq.s32.totalorder %v914_v18, 1  ;;  %v936_v10 = vld [vmem:[%s8342_s1 + $0x278] sm:$0xff]  ;;  %v1101_v14 = vsel %vm1017_vm0, 1, %v8348_v0  ;;  %v937_v18 = vld [vmem:[%s8342_s1 + $0x280] sm:$0xff] }
  0x67   :  { %v1082_v24 = vsel %vm998_vm2, 1, %v8348_v0  ;;  %vm1014_vm2 = vcmp.eq.s32.totalorder %v930_v55, 1  ;;  %vm1020_vm1 = vcmp.eq.s32.totalorder %v936_v10, 1  ;;  %vm1021_vm5 = vcmp.eq.s32.totalorder %v937_v18, 1 }
  0x68   :  { %1263 = vperm.xlu1 %3992, %v1076_v12   ;;  %v1098_v1 = vsel %vm1014_vm2, 1, %v8348_v0  ;;  %v935_v12 = vld [vmem:[%s8342_s1 + $0x270] sm:$0xff]  ;;  %v1104_v19 = vsel %vm1020_vm1, 1, %v8348_v0  ;;  %v1105_v26 = vsel %vm1021_vm5, 1, %v8348_v0 }
  0x69   :  { %1260 = vperm.xlu0 %3991, %v1075_v13   ;;  %v1102_v13 = vsel %vm1018_vm15, 1, %v8348_v0  ;;  %vm1019_vm3 = vcmp.eq.s32.totalorder %v935_v12, 1 }
  0x6c   :  { %1269 = vperm.xlu1 %3992, %v1078_v16   ;;  %v938_v16 = vld [vmem:[%s8342_s1 + $0x288] sm:$0xff] }
  0x6d   :  { %1266 = vperm.xlu0 %3991, %v1077_v17   ;;  %vm1022_vm4 = vcmp.eq.s32.totalorder %v938_v16, 1 }
  0x70   :  { %1275 = vperm.xlu1 %3992, %v1080_v20   ;;  %v1103_v20 = vsel %vm1019_vm3, 1, %v8348_v0 }
  0x71   :  { %1272 = vperm.xlu0 %3991, %v1079_v21  }
  0x74   :  { %1281 = vperm.xlu1 %3992, %v1082_v24   ;;  %v939_v24 = vld [vmem:[%s8342_s1 + $0x290] sm:$0xff] }
  0x75   :  { %1278 = vperm.xlu0 %3991, %v1081_v25   ;;  %v1106_v25 = vsel %vm1022_vm4, 1, %v8348_v0  ;;  %vm1023_vm7 = vcmp.eq.s32.totalorder %v939_v24, 1 }
  0x76   :  { %v1107_v30 = vsel %vm1023_vm7, 1, %v8348_v0 }
  0x78   :  { %1287 = vperm.xlu1 %3992, %v1084_v28  }
  0x79   :  { %1284 = vperm.xlu0 %3991, %v1083_v29   ;;  %v1108_v29 = vsel %vm1024_vm6, 1, %v8348_v0 }
  0x7c   :  { %1293 = vperm.xlu1 %3992, %v1086_v32  }
  0x7d   :  { %1290 = vperm.xlu0 %3991, %v1085_v33  }
  0x80   :  { %1299 = vperm.xlu1 %3992, %v1088_v36  }
  0x81   :  { %1296 = vperm.xlu0 %3991, %v1087_v37  }
  0x83   :  { %v4748_v42 = vpop.permute.xlu1 %1116 }
  0x84   :  { %v4753_v44 = vpop.permute.xlu0 %1110  ;;  %1305 = vperm.xlu1 %3992, %v1090_v40  }
  0x85   :  { %1302 = vperm.xlu0 %3991, %v1089_v41  }
  0x87   :  { %v4760_v48 = vpop.permute.xlu1 %1119 }
  0x88   :  { %v4765_v50 = vpop.permute.xlu0 %1113  ;;  %1311 = vperm.xlu1 %3992, %v1092_v46  }
  0x89   :  { %1308 = vperm.xlu0 %3991, %v1091_v47  }
  0x8b   :  { %v4772_v54 = vpop.permute.xlu1 %1125 }
  0x8c   :  { %v4777_v56 = vpop.permute.xlu0 %1122  ;;  %1317 = vperm.xlu1 %3992, %v1094_v52  }
  0x8d   :  { %1314 = vperm.xlu0 %3991, %v1093_v53  }
  0x8f   :  { %v4784_v60 = vpop.permute.xlu1 %1131 }
  0x90   :  { %v4789_v62 = vpop.permute.xlu0 %1128  ;;  %1323 = vperm.xlu1 %3992, %v1096_v58  }
  0x91   :  { %1320 = vperm.xlu0 %3991, %v1095_v59  }
  0x93   :  { %v4796_v3 = vpop.permute.xlu1 %1137 }
  0x94   :  { %8514 = vst [vmem:[#allocation2_spill] sm:$0xff] %v4796_v3  ;;  %v4801_v5 = vpop.permute.xlu0 %1134  ;;  %1329 = vperm.xlu1 %3992, %v1098_v1  }
  0x95   :  { %8515 = vst [vmem:[#allocation3_spill] sm:$0xff] %v4801_v5  ;;  %1326 = vperm.xlu0 %3991, %v1097_v2   ;;  %v4905_v2 = vld [vmem:[%s8344_s3] ss:$0 sm:$0xff] }
  0x97   :  { %v4808_v9 = vpop.permute.xlu1 %1143 }
  0x98   :  { %8516 = vst [vmem:[#allocation4_spill] sm:$0xff] %v4808_v9  ;;  %v4813_v11 = vpop.permute.xlu0 %1140  ;;  %1335 = vperm.xlu1 %3992, %v1100_v7  }
  0x99   :  { %8517 = vst [vmem:[#allocation5_spill] sm:$0xff] %v4813_v11  ;;  %1332 = vperm.xlu0 %3991, %v1099_v8  }
  0x9b   :  { %v4820_v15 = vpop.permute.xlu1 %1149 }
  0x9c   :  { %8518 = vst [vmem:[#allocation6_spill] sm:$0xff] %v4820_v15  ;;  %v4825_v17 = vpop.permute.xlu0 %1146  ;;  %1341 = vperm.xlu1 %3992, %v1102_v13  }
  0x9d   :  { %8519 = vst [vmem:[#allocation7_spill] sm:$0xff] %v4825_v17  ;;  %1338 = vperm.xlu0 %3991, %v1101_v14  }
  0x9f   :  { %v4832_v21 = vpop.permute.xlu1 %1155 }
  0xa0   :  { %8520 = vst [vmem:[#allocation8_spill] sm:$0xff] %v4832_v21  ;;  %v4837_v23 = vpop.permute.xlu0 %1152  ;;  %1347 = vperm.xlu1 %3992, %v1104_v19  }
  0xa1   :  { %8521 = vst [vmem:[#allocation9_spill] sm:$0xff] %v4837_v23  ;;  %1344 = vperm.xlu0 %3991, %v1103_v20  }
  0xa3   :  { %v4844_v27 = vpop.permute.xlu1 %1161 }
  0xa4   :  { %8522 = vst [vmem:[#allocation10_spill] sm:$0xff] %v4844_v27  ;;  %v4846_v28 = vpop.permute.xlu0 %1158  ;;  %1353 = vperm.xlu1 %3992, %v1106_v25  }
  0xa5   :  { %8523 = vst [vmem:[#allocation11_spill] sm:$0xff] %v4846_v28  ;;  %1350 = vperm.xlu0 %3991, %v1105_v26  }
  0xa7   :  { %v4850_v31 = vpop.permute.xlu1 %1167 }
  0xa8   :  { %8524 = vst [vmem:[#allocation12_spill] sm:$0xff] %v4850_v31  ;;  %v4852_v32 = vpop.permute.xlu0 %1164  ;;  %1359 = vperm.xlu1 %3992, %v1108_v29  }
  0xa9   :  { %8525 = vst [vmem:[#allocation13_spill] sm:$0xff] %v4852_v32  ;;  %1356 = vperm.xlu0 %3991, %v1107_v30  }
  0xab   :  { %v4854_v33 = vpop.permute.xlu1 %1173 }
  0xac   :  { %8526 = vst [vmem:[#allocation14_spill] sm:$0xff] %v4854_v33  ;;  %v4856_v34 = vpop.permute.xlu0 %1170 }
  0xad   :  { %8527 = vst [vmem:[#allocation15_spill] sm:$0xff] %v4856_v34 }
  0xaf   :  { %v4858_v35 = vpop.permute.xlu1 %1179 }
  0xb0   :  { %8528 = vst [vmem:[#allocation16_spill] sm:$0xff] %v4858_v35  ;;  %v4860_v36 = vpop.permute.xlu0 %1176 }
  0xb1   :  { %8529 = vst [vmem:[#allocation17_spill] sm:$0xff] %v4860_v36 }
  0xb3   :  { %v4862_v37 = vpop.permute.xlu1 %1185 }
  0xb4   :  { %8530 = vst [vmem:[#allocation18_spill] sm:$0xff] %v4862_v37  ;;  %v4864_v38 = vpop.permute.xlu0 %1182 }
  0xb5   :  { %8531 = vst [vmem:[#allocation19_spill] sm:$0xff] %v4864_v38 }
  0xb7   :  { %v4866_v39 = vpop.permute.xlu1 %1191 }
  0xb8   :  { %8532 = vst [vmem:[#allocation20_spill] sm:$0xff] %v4866_v39  ;;  %v4868_v40 = vpop.permute.xlu0 %1188 }
  0xb9   :  { %8533 = vst [vmem:[#allocation21_spill] sm:$0xff] %v4868_v40 }
  0xbb   :  { %v4870_v41 = vpop.permute.xlu1 %1197 }
  0xbc   :  { %8534 = vst [vmem:[#allocation22_spill] sm:$0xff] %v4870_v41  ;;  %v4872_v43 = vpop.permute.xlu0 %1194 }
  0xbd   :  { %8535 = vst [vmem:[#allocation23_spill] sm:$0xff] %v4872_v43 }
  0xbf   :  { %v4874_v45 = vpop.permute.xlu1 %1203 }
  0xc0   :  { %8536 = vst [vmem:[#allocation24_spill] sm:$0xff] %v4874_v45  ;;  %v4876_v46 = vpop.permute.xlu0 %1200 }
  0xc1   :  { %8537 = vst [vmem:[#allocation25_spill] sm:$0xff] %v4876_v46 }
  0xc3   :  { %v4878_v47 = vpop.permute.xlu1 %1209 }
  0xc4   :  { %8538 = vst [vmem:[#allocation26_spill] sm:$0xff] %v4878_v47  ;;  %v4880_v49 = vpop.permute.xlu0 %1206 }
  0xc5   :  { %8539 = vst [vmem:[#allocation27_spill] sm:$0xff] %v4880_v49 }
  0xc7   :  { %v4882_v51 = vpop.permute.xlu1 %1215 }
  0xc8   :  { %8540 = vst [vmem:[#allocation28_spill] sm:$0xff] %v4882_v51  ;;  %v4884_v52 = vpop.permute.xlu0 %1212 }
  0xc9   :  { %8541 = vst [vmem:[#allocation29_spill] sm:$0xff] %v4884_v52 }
  0xcb   :  { %v4886_v53 = vpop.permute.xlu1 %1221 }
  0xcc   :  { %8542 = vst [vmem:[#allocation30_spill] sm:$0xff] %v4886_v53  ;;  %v4888_v55 = vpop.permute.xlu0 %1218 }
  0xcd   :  { %8543 = vst [vmem:[#allocation31_spill] sm:$0xff] %v4888_v55 }
  0xcf   :  { %v4890_v57 = vpop.permute.xlu1 %1227 }
  0xd0   :  { %8544 = vst [vmem:[#allocation32_spill] sm:$0xff] %v4890_v57  ;;  %v4892_v58 = vpop.permute.xlu0 %1224 }
  0xd1   :  { %8545 = vst [vmem:[#allocation33_spill] sm:$0xff] %v4892_v58 }
  0xd3   :  { %v4894_v59 = vpop.permute.xlu1 %1233 }
  0xd4   :  { %8546 = vst [vmem:[#allocation34_spill] sm:$0xff] %v4894_v59  ;;  %v4896_v61 = vpop.permute.xlu0 %1230 }
  0xd5   :  { %8547 = vst [vmem:[#allocation35_spill] sm:$0xff] %v4896_v61 }
  0xd7   :  { %v4898_v63 = vpop.permute.xlu1 %1239 }
  0xd8   :  { %8548 = vst [vmem:[#allocation36_spill] sm:$0xff] %v4898_v63  ;;  %v4900_v1 = vpop.permute.xlu0 %1236 }
  0xd9   :  { %8549 = vst [vmem:[#allocation37_spill] sm:$0xff] %v4900_v1 }
  0xdb   :  { %v4907_v4 = vpop.permute.xlu1 %1245 }
  0xdc   :  { %8550 = vst [vmem:[#allocation38_spill] sm:$0xff] %v4907_v4  ;;  %v4909_v6 = vpop.permute.xlu0 %1242 }
  0xdd   :  { %8551 = vst [vmem:[#allocation39_spill] sm:$0xff] %v4909_v6 }
  0xdf   :  { %v4927_v20 = vpop.permute.xlu1 %1251 }
  0xe0   :  { %8554 = vst [vmem:[#allocation42_spill] sm:$0xff] %v4927_v20  ;;  %v4929_v24 = vpop.permute.xlu0 %1248 }
  0xe1   :  { %8555 = vst [vmem:[#allocation43_spill] sm:$0xff] %v4929_v24 }
  0xe4   :  { %v4948_v24 = vpop.permute.xlu0 %1254 }
  0xe5   :  { %8558 = vst [vmem:[#allocation46_spill] sm:$0xff] %v4948_v24 }
  0xe7   :  { %v3839_v7 = vpop.f32.mrb[0].mxu0 }
  0xe8   :  { %v4912_v8 = vadd.f32 %v3839_v7, %v4905_v2  ;;  %v438_v10 = vpop.f32.mrb[1].mxu0  ;;  %v4967_v1 = vpop.permute.xlu0 %1260 }
  0xe9   :  { %v4915_v12 = vadd.f32 %v4905_v2, %v438_v10  ;;  %v3902_v13 = vpop.f32.mrb[0].mxu1  ;;  %8561 = vst [vmem:[#allocation49_spill] sm:$0xff] %v4967_v1 }
  0xea   :  { %v4918_v14 = vadd.f32 %v3902_v13, %v4905_v2  ;;  %1531 = vrot.lane.b32.xlu1 %v4912_v8, %s4078_s23  ;;  %v648_v16 = vpop.f32.mrb[1].mxu1 }
  0xeb   :  { %v4923_v18 = vadd.f32 %v4905_v2, %v648_v16  ;;  %1529 = vrot.lane.b32.xlu0 %v4915_v12, %s4078_s23  ;;  %v3842_v19 = vpop.f32.mrb[2].mxu0  ;;  %v4941_v16 = vpop.permute.xlu1 %1257 }
  0xec   :  { %8552 = vst [vmem:[#allocation40_spill] sm:$0xff] %v4918_v14  ;;  %v448_v22 = vpop.f32.mrb[3].mxu0  ;;  %v4934_v26 = vadd.f32 %v3842_v19, %v4905_v2  ;;  %8556 = vst [vmem:[#allocation44_spill] sm:$0xff] %v4941_v16  ;;  %v4986_v58 = vpop.permute.xlu0 %1266 }
  0xed   :  { %8553 = vst [vmem:[#allocation41_spill] sm:$0xff] %v4923_v18  ;;  %v3905_v25 = vpop.f32.mrb[2].mxu1  ;;  %v4937_v30 = vadd.f32 %v4905_v2, %v448_v22  ;;  %8565 = vst [vmem:[#allocation53_spill] sm:$0xff] %v4986_v58 }
  0xee   :  { %1615 = vrot.lane.b32.xlu1 %v4918_v14, %s4078_s23  ;;  %v658_v29 = vpop.f32.mrb[3].mxu1  ;;  %v4944_v0 = vadd.f32 %v3905_v25, %v4905_v2 }
  0xef   :  { %1613 = vrot.lane.b32.xlu0 %v4923_v18, %s4078_s23  ;;  %v3845_v7 = vpop.f32.mrb[4].mxu0  ;;  %v4951_v22 = vadd.f32 %v4905_v2, %v658_v29  ;;  %v4965_v24 = vpop.permute.xlu1 %1263 }
  0xf0   :  { %v458_v10 = vpop.f32.mrb[5].mxu0  ;;  %8557 = vst [vmem:[#allocation45_spill] sm:$0xff] %v4944_v0  ;;  %v4958_v25 = vadd.f32 %v3845_v7, %v4905_v2  ;;  %8560 = vst [vmem:[#allocation48_spill] sm:$0xff] %v4965_v24  ;;  %v5005_v52 = vpop.permute.xlu0 %1272 }
  0xf1   :  { %v3908_v13 = vpop.f32.mrb[4].mxu1  ;;  %8559 = vst [vmem:[#allocation47_spill] sm:$0xff] %v4951_v22  ;;  %v4961_v18 = vadd.f32 %v4905_v2, %v458_v10  ;;  %8570 = vst [vmem:[#allocation58_spill] sm:$0xff] %v5005_v52 }
  0xf2   :  { %1535 = vrot.lane.b32.xlu1 %v4934_v26, %s4078_s23  ;;  %v668_v19 = vpop.f32.mrb[5].mxu1  ;;  %v4970_v61 = vadd.f32 %v3908_v13, %v4905_v2 }
  0xf3   :  { %1533 = vrot.lane.b32.xlu0 %v4937_v30, %s4078_s23  ;;  %v3848_v20 = vpop.f32.mrb[6].mxu0  ;;  %v4975_v10 = vadd.f32 %v4905_v2, %v668_v19  ;;  %v4979_v59 = vpop.permute.xlu1 %1269 }
  0xf4   :  { %v468_v6 = vpop.f32.mrb[7].mxu0  ;;  %8562 = vst [vmem:[#allocation50_spill] sm:$0xff] %v4970_v61  ;;  %8564 = vst [vmem:[#allocation52_spill] sm:$0xff] %v4979_v59  ;;  %v4984_v13 = vadd.f32 %v3848_v20, %v4905_v2 }
  0xf5   :  { %v3911_v4 = vpop.f32.mrb[6].mxu1  ;;  %8563 = vst [vmem:[#allocation51_spill] sm:$0xff] %v4975_v10  ;;  %v4989_v19 = vadd.f32 %v4905_v2, %v468_v6 }
  0xf6   :  { %1619 = vrot.lane.b32.xlu1 %v4944_v0, %s4078_s23  ;;  %v678_v16 = vpop.f32.mrb[7].mxu1  ;;  %v4994_v59 = vadd.f32 %v3911_v4, %v4905_v2 }
  0xf7   :  { %1617 = vrot.lane.b32.xlu0 %v4951_v22, %s4078_s23  ;;  %v3851_v29 = vpop.f32.mrb[8].mxu0  ;;  %8566 = vst [vmem:[#allocation54_spill] sm:$0xff] %v4989_v19  ;;  %v5003_v58 = vpop.permute.xlu1 %1275 }
  0xf8   :  { %v478_v14 = vpop.f32.mrb[9].mxu0  ;;  %8567 = vst [vmem:[#allocation55_spill] sm:$0xff] %v4994_v59  ;;  %8569 = vst [vmem:[#allocation57_spill] sm:$0xff] %v5003_v58  ;;  %v5012_v4 = vadd.f32 %v3851_v29, %v4905_v2 }
  0xf9   :  { %v3914_v63 = vpop.f32.mrb[8].mxu1 }
  0xfa   :  { %1539 = vrot.lane.b32.xlu1 %v4958_v25, %s4078_s23  ;;  %v688_v7 = vpop.f32.mrb[9].mxu1  ;;  %8571 = vst [vmem:[#allocation59_spill] sm:$0xff] %v5012_v4 }
  0xfb   :  { %1537 = vrot.lane.b32.xlu0 %v4961_v18, %s4078_s23  ;;  %v3854_v22 = vpop.f32.mrb[10].mxu0  ;;  %v5027_v46 = vpop.permute.xlu1 %1281 }
  0xfc   :  { %v488_v0 = vpop.f32.mrb[11].mxu0  ;;  %8573 = vst [vmem:[#allocation61_spill] sm:$0xff] %v5027_v46 }
  0xfd   :  { %v3917_v24 = vpop.f32.mrb[10].mxu1 }
  0xfe   :  { %1623 = vrot.lane.b32.xlu1 %v4970_v61, %s4078_s23  ;;  %v698_v1 = vpop.f32.mrb[11].mxu1  ;;  %v4999_v61 = vadd.f32 %v4905_v2, %v678_v16  ;;  %v5017_v16 = vadd.f32 %v4905_v2, %v478_v14  ;;  %v5036_v14 = vpop.permute.xlu0 %1278 }
  0xff   :  { %1621 = vrot.lane.b32.xlu0 %v4975_v10, %s4078_s23  ;;  %v3857_v57 = vpop.f32.mrb[12].mxu0  ;;  %8575 = vst [vmem:[#allocation63_spill] sm:$0xff] %v5036_v14  ;;  %v5063_v40 = vpop.permute.xlu1 %1287 }
 0x100   :  { %v498_v55 = vpop.f32.mrb[13].mxu0  ;;  %8568 = vst [vmem:[#allocation56_spill] sm:$0xff] %v4999_v61  ;;  %8572 = vst [vmem:[#allocation60_spill] sm:$0xff] %v5017_v16 }
 0x101   :  { %v3920_v53 = vpop.f32.mrb[12].mxu1  ;;  %8579 = vst [vmem:[#allocation67_spill] sm:$0xff] %v5063_v40  ;;  %v5101_v34 = vadd.f32 %v4905_v2, %v498_v55 }
 0x102   :  { %1543 = vrot.lane.b32.xlu1 %v4984_v13, %s4078_s23  ;;  %v708_v20 = vpop.f32.mrb[13].mxu1  ;;  %v5067_v38 = vpop.permute.xlu0 %1284 }
 0x103   :  { %1541 = vrot.lane.b32.xlu0 %v4989_v19, %s4078_s23  ;;  %v3860_v6 = vpop.f32.mrb[14].mxu0  ;;  %8580 = vst [vmem:[#allocation68_spill] sm:$0xff] %v5067_v38  ;;  %v5089_v36 = vpop.permute.xlu1 %1293  ;;  %8586 = vst [vmem:[#allocation74_spill] sm:$0xff] %v5101_v34  ;;  %v5119_v55 = vadd.f32 %v4905_v2, %v708_v20 }
 0x104   :  { %v508_v10 = vpop.f32.mrb[15].mxu0  ;;  %8583 = vst [vmem:[#allocation71_spill] sm:$0xff] %v5089_v36  ;;  %v5136_v27 = vadd.f32 %v3860_v6, %v4905_v2 }
 0x105   :  { %v5007_v51 = vpop.f32.mrb[14].mxu1  ;;  %8588 = vst [vmem:[#allocation76_spill] sm:$0xff] %v5119_v55  ;;  %v5141_v23 = vadd.f32 %v4905_v2, %v508_v10 }
 0x106   :  { %1627 = vrot.lane.b32.xlu1 %v4994_v59, %s4078_s23  ;;  %v5014_v49 = vpop.f32.mrb[15].mxu1  ;;  %v5030_v59 = vadd.f32 %v3914_v63, %v4905_v2  ;;  %v5052_v63 = vadd.f32 %v3854_v22, %v4905_v2  ;;  %v5072_v22 = vadd.f32 %v3917_v24, %v4905_v2  ;;  %v5094_v24 = vadd.f32 %v3857_v57, %v4905_v2 }
 0x107   :  { %1625 = vrot.lane.b32.xlu0 %v4999_v61, %s4078_s23  ;;  %v5021_v58 = vpop.f32.mrb[16].mxu0  ;;  %v5039_v61 = vadd.f32 %v4905_v2, %v688_v7  ;;  %v5057_v7 = vadd.f32 %v4905_v2, %v488_v0  ;;  %8591 = vst [vmem:[#allocation79_spill] sm:$0xff] %v5136_v27  ;;  %8592 = vst [vmem:[#allocation80_spill] sm:$0xff] %v5141_v23  ;;  %v5155_v6 = vadd.f32 %v5007_v51, %v4905_v2 }
 0x108   :  { %v5023_v47 = vpop.f32.mrb[17].mxu0  ;;  %8574 = vst [vmem:[#allocation62_spill] sm:$0xff] %v5030_v59  ;;  %8577 = vst [vmem:[#allocation65_spill] sm:$0xff] %v5052_v63 }
 0x109   :  { %v5025_v52 = vpop.f32.mrb[16].mxu1  ;;  %8576 = vst [vmem:[#allocation64_spill] sm:$0xff] %v5039_v61  ;;  %8578 = vst [vmem:[#allocation66_spill] sm:$0xff] %v5057_v7 }
 0x10a   :  { %1547 = vrot.lane.b32.xlu1 %v5012_v4, %s4078_s23  ;;  %v5034_v29 = vpop.f32.mrb[17].mxu1  ;;  %8581 = vst [vmem:[#allocation69_spill] sm:$0xff] %v5072_v22  ;;  %8584 = vst [vmem:[#allocation72_spill] sm:$0xff] %v5094_v24 }
 0x10b   :  { %1545 = vrot.lane.b32.xlu0 %v5017_v16, %s4078_s23  ;;  %v5043_v45 = vpop.f32.mrb[18].mxu0  ;;  %8594 = vst [vmem:[#allocation82_spill] sm:$0xff] %v5155_v6 }
 0x10c   :  { %v5045_v43 = vpop.f32.mrb[19].mxu0 }
 0x10d   :  { %v5047_v46 = vpop.f32.mrb[18].mxu1 }
 0x10e   :  { %1631 = vrot.lane.b32.xlu1 %v5030_v59, %s4078_s23  ;;  %v5054_v41 = vpop.f32.mrb[19].mxu1 }
 0x10f   :  { %1629 = vrot.lane.b32.xlu0 %v5039_v61, %s4078_s23  ;;  %v5061_v14 = vpop.f32.mrb[20].mxu0  ;;  %v5079_v61 = vadd.f32 %v4905_v2, %v698_v1  ;;  %v5098_v1 = vpop.permute.xlu0 %1290 }
 0x110   :  { %v5065_v39 = vpop.f32.mrb[21].mxu0  ;;  %8585 = vst [vmem:[#allocation73_spill] sm:$0xff] %v5098_v1 }
 0x111   :  { %v5069_v59 = vpop.f32.mrb[20].mxu1  ;;  %8582 = vst [vmem:[#allocation70_spill] sm:$0xff] %v5079_v61 }
 0x112   :  { %1551 = vrot.lane.b32.xlu1 %v5052_v63, %s4078_s23  ;;  %v5076_v0 = vpop.f32.mrb[21].mxu1 }
 0x113   :  { %1549 = vrot.lane.b32.xlu0 %v5057_v7, %s4078_s23  ;;  %v5083_v40 = vpop.f32.mrb[22].mxu0  ;;  %v5129_v28 = vpop.permute.xlu0 %1296 }
 0x114   :  { %v5085_v37 = vpop.f32.mrb[23].mxu0  ;;  %8590 = vst [vmem:[#allocation78_spill] sm:$0xff] %v5129_v28 }
 0x115   :  { %v5087_v38 = vpop.f32.mrb[22].mxu1 }
 0x116   :  { %1635 = vrot.lane.b32.xlu1 %v5072_v22, %s4078_s23  ;;  %v5096_v35 = vpop.f32.mrb[23].mxu1  ;;  %v5112_v22 = vadd.f32 %v3920_v53, %v4905_v2 }
 0x117   :  { %1633 = vrot.lane.b32.xlu0 %v5079_v61, %s4078_s23  ;;  %v5105_v33 = vpop.f32.mrb[24].mxu0  ;;  %v5125_v61 = vpop.permute.xlu1 %1299 }
 0x118   :  { %v5107_v32 = vpop.f32.mrb[25].mxu0  ;;  %8587 = vst [vmem:[#allocation75_spill] sm:$0xff] %v5112_v22  ;;  %8589 = vst [vmem:[#allocation77_spill] sm:$0xff] %v5125_v61 }
 0x119   :  { %v5109_v36 = vpop.f32.mrb[24].mxu1 }
 0x11a   :  { %1555 = vrot.lane.b32.xlu1 %v5094_v24, %s4078_s23  ;;  %v5116_v57 = vpop.f32.mrb[25].mxu1 }
 0x11b   :  { %1553 = vrot.lane.b32.xlu0 %v5101_v34, %s4078_s23  ;;  %v5123_v1 = vpop.f32.mrb[26].mxu0  ;;  %v5151_v34 = vpop.permute.xlu1 %1305 }
 0x11c   :  { %v5127_v31 = vpop.f32.mrb[27].mxu0  ;;  %8593 = vst [vmem:[#allocation81_spill] sm:$0xff] %v5151_v34 }
 0x11d   :  { %v5131_v53 = vpop.f32.mrb[26].mxu1 }
 0x11e   :  { %1639 = vrot.lane.b32.xlu1 %v5112_v22, %s4078_s23  ;;  %v5138_v20 = vpop.f32.mrb[27].mxu1  ;;  %v5161_v22 = vpop.permute.xlu0 %1302 }
 0x11f   :  { %1637 = vrot.lane.b32.xlu0 %v5119_v55, %s4078_s23  ;;  %v5145_v61 = vpop.f32.mrb[28].mxu0  ;;  %8595 = vst [vmem:[#allocation83_spill] sm:$0xff] %v5161_v22  ;;  %v5165_v55 = vadd.f32 %v4905_v2, %v5014_v49  ;;  %v5185_v49 = vadd.f32 %v4905_v2, %v5023_v47  ;;  %v5191_v17 = vpop.permute.xlu1 %1311 }
 0x120   :  { %v5147_v21 = vpop.f32.mrb[29].mxu0  ;;  %8599 = vst [vmem:[#allocation87_spill] sm:$0xff] %v5191_v17 }
 0x121   :  { %v5149_v28 = vpop.f32.mrb[28].mxu1  ;;  %8596 = vst [vmem:[#allocation84_spill] sm:$0xff] %v5165_v55  ;;  %8598 = vst [vmem:[#allocation86_spill] sm:$0xff] %v5185_v49 }
 0x122   :  { %1559 = vrot.lane.b32.xlu1 %v5136_v27, %s4078_s23  ;;  %v5159_v10 = vpop.f32.mrb[29].mxu1  ;;  %v5179_v27 = vadd.f32 %v5021_v58, %v4905_v2  ;;  %v5201_v58 = vadd.f32 %v5025_v52, %v4905_v2 }
 0x123   :  { %1557 = vrot.lane.b32.xlu0 %v5141_v23, %s4078_s23  ;;  %v5169_v24 = vpop.f32.mrb[30].mxu0  ;;  %v5219_v52 = vpop.permute.xlu1 %1317 }
 0x124   :  { %v5171_v34 = vpop.f32.mrb[31].mxu0  ;;  %8597 = vst [vmem:[#allocation85_spill] sm:$0xff] %v5179_v27  ;;  %8601 = vst [vmem:[#allocation89_spill] sm:$0xff] %v5201_v58 }
 0x125   :  { %v5173_v51 = vpop.f32.mrb[30].mxu1  ;;  %8603 = vst [vmem:[#allocation91_spill] sm:$0xff] %v5219_v52 }
 0x126   :  { %1643 = vrot.lane.b32.xlu1 %v5155_v6, %s4078_s23  ;;  %v5181_v22 = vpop.f32.mrb[31].mxu1  ;;  %v5195_v6 = vpop.permute.xlu0 %1308 }
 0x127   :  { %1641 = vrot.lane.b32.xlu0 %v5165_v55, %s4078_s23  ;;  %v5189_v23 = vpop.f32.mrb[32].mxu0  ;;  %8600 = vst [vmem:[#allocation88_spill] sm:$0xff] %v5195_v6  ;;  %v5209_v55 = vadd.f32 %v4905_v2, %v5034_v29  ;;  %v5259_v16 = vpop.permute.xlu1 %1323 }
 0x128   :  { %v5193_v15 = vpop.f32.mrb[33].mxu0  ;;  %8609 = vst [vmem:[#allocation97_spill] sm:$0xff] %v5259_v16 }
 0x129   :  { %v5197_v7 = vpop.f32.mrb[32].mxu1  ;;  %8602 = vst [vmem:[#allocation90_spill] sm:$0xff] %v5209_v55 }
 0x12a   :  { %1563 = vrot.lane.b32.xlu1 %v5179_v27, %s4078_s23  ;;  %v5205_v47 = vpop.f32.mrb[33].mxu1  ;;  %v5225_v27 = vadd.f32 %v5043_v45, %v4905_v2  ;;  %v5229_v11 = vpop.permute.xlu0 %1314  ;;  %v5245_v45 = vadd.f32 %v5047_v46, %v4905_v2 }
 0x12b   :  { %1561 = vrot.lane.b32.xlu0 %v5185_v49, %s4078_s23  ;;  %v5213_v17 = vpop.f32.mrb[34].mxu0  ;;  %8605 = vst [vmem:[#allocation93_spill] sm:$0xff] %v5229_v11  ;;  %v5233_v49 = vadd.f32 %v4905_v2, %v5045_v43  ;;  %v5253_v43 = vadd.f32 %v4905_v2, %v5054_v41  ;;  %v5271_v41 = vadd.f32 %v5061_v14, %v4905_v2 }
 0x12c   :  { %v5215_v6 = vpop.f32.mrb[35].mxu0  ;;  %8604 = vst [vmem:[#allocation92_spill] sm:$0xff] %v5225_v27  ;;  %8607 = vst [vmem:[#allocation95_spill] sm:$0xff] %v5245_v45  ;;  %v5291_v14 = vadd.f32 %v5069_v59, %v4905_v2  ;;  %v5309_v59 = vadd.f32 %v5083_v40, %v4905_v2  ;;  %v5329_v40 = vadd.f32 %v4905_v2, %v5096_v35 }
 0x12d   :  { %v5217_v63 = vpop.f32.mrb[34].mxu1  ;;  %8606 = vst [vmem:[#allocation94_spill] sm:$0xff] %v5233_v49  ;;  %8608 = vst [vmem:[#allocation96_spill] sm:$0xff] %v5253_v43  ;;  %v5351_v35 = vadd.f32 %v5109_v36, %v4905_v2  ;;  %v5369_v36 = vadd.f32 %v5123_v1, %v4905_v2  ;;  %v5389_v1 = vadd.f32 %v4905_v2, %v5138_v20 }
 0x12e   :  { %1647 = vrot.lane.b32.xlu1 %v5201_v58, %s4078_s23  ;;  %v5227_v29 = vpop.f32.mrb[35].mxu1  ;;  %v5263_v46 = vpop.permute.xlu0 %1320  ;;  %8613 = vst [vmem:[#allocation101_spill] sm:$0xff] %v5291_v14  ;;  %8619 = vst [vmem:[#allocation107_spill] sm:$0xff] %v5329_v40 }
 0x12f   :  { %1645 = vrot.lane.b32.xlu0 %v5209_v55, %s4078_s23  ;;  %v5237_v9 = vpop.f32.mrb[36].mxu0  ;;  %8610 = vst [vmem:[#allocation98_spill] sm:$0xff] %v5263_v46  ;;  %8622 = vst [vmem:[#allocation110_spill] sm:$0xff] %v5351_v35 }
 0x130   :  { %v5239_v52 = vpop.f32.mrb[37].mxu0  ;;  %8629 = vst [vmem:[#allocation117_spill] sm:$0xff] %v5389_v1 }
 0x131   :  { %v5241_v58 = vpop.f32.mrb[36].mxu1 }
 0x132   :  { %1567 = vrot.lane.b32.xlu1 %v5225_v27, %s4078_s23  ;;  %v5249_v11 = vpop.f32.mrb[37].mxu1  ;;  %v5297_v19 = vpop.permute.xlu0 %1326 }
 0x133   :  { %1565 = vrot.lane.b32.xlu0 %v5233_v49, %s4078_s23  ;;  %v5257_v55 = vpop.f32.mrb[38].mxu0  ;;  %v5277_v49 = vadd.f32 %v4905_v2, %v5065_v39  ;;  %8614 = vst [vmem:[#allocation102_spill] sm:$0xff] %v5297_v19 }
 0x134   :  { %v5261_v4 = vpop.f32.mrb[39].mxu0 }
 0x135   :  { %v5265_v5 = vpop.f32.mrb[38].mxu1  ;;  %8611 = vst [vmem:[#allocation99_spill] sm:$0xff] %v5277_v49 }
 0x136   :  { %1651 = vrot.lane.b32.xlu1 %v5245_v45, %s4078_s23  ;;  %v5273_v27 = vpop.f32.mrb[39].mxu1  ;;  %v5287_v45 = vpop.permute.xlu1 %1329 }
 0x137   :  { %1649 = vrot.lane.b32.xlu0 %v5253_v43, %s4078_s23  ;;  %v5281_v16 = vpop.f32.mrb[40].mxu0  ;;  %8612 = vst [vmem:[#allocation100_spill] sm:$0xff] %v5287_v45  ;;  %v5301_v43 = vadd.f32 %v4905_v2, %v5076_v0  ;;  %v5313_v45 = vadd.f32 %v4905_v2, %v5085_v37  ;;  %v5319_v0 = vpop.permute.xlu0 %1332 }
 0x138   :  { %v5283_v46 = vpop.f32.mrb[41].mxu0  ;;  %8617 = vst [vmem:[#allocation105_spill] sm:$0xff] %v5319_v0  ;;  %v5339_v0 = vadd.f32 %v5105_v33, %v4905_v2  ;;  %v5357_v33 = vadd.f32 %v4905_v2, %v5116_v57 }
 0x139   :  { %v5285_v3 = vpop.f32.mrb[40].mxu1  ;;  %8615 = vst [vmem:[#allocation103_spill] sm:$0xff] %v5301_v43 }
 0x13a   :  { %1571 = vrot.lane.b32.xlu1 %v5271_v41, %s4078_s23  ;;  %v5295_v39 = vpop.f32.mrb[41].mxu1  ;;  %v5317_v19 = vpop.permute.xlu1 %1335  ;;  %8623 = vst [vmem:[#allocation111_spill] sm:$0xff] %v5357_v33 }
 0x13b   :  { %1569 = vrot.lane.b32.xlu0 %v5277_v49, %s4078_s23  ;;  %8616 = vst [vmem:[#allocation104_spill] sm:$0xff] %v5317_v19  ;;  %v5323_v49 = vadd.f32 %v5087_v38, %v4905_v2  ;;  %v5341_v38 = vpop.permute.xlu0 %1338  ;;  %v5345_v19 = vadd.f32 %v4905_v2, %v5107_v32 }
 0x13c   :  { %8621 = vst [vmem:[#allocation109_spill] sm:$0xff] %v5341_v38 }
 0x13d   :  { %8618 = vst [vmem:[#allocation106_spill] sm:$0xff] %v5323_v49 }
 0x13e   :  { %1655 = vrot.lane.b32.xlu1 %v5291_v14, %s4078_s23  ;;  %v5333_v37 = vpop.permute.xlu1 %1341  ;;  %v5525_v14 = vadd.f32 %v5281_v16, %v4905_v2  ;;  %v5545_v16 = vadd.f32 %v4905_v2, %v5205_v47 }
 0x13f   :  { %1653 = vrot.lane.b32.xlu0 %v5301_v43, %s4078_s23  ;;  %8620 = vst [vmem:[#allocation108_spill] sm:$0xff] %v5333_v37  ;;  %v5363_v32 = vpop.permute.xlu0 %1344  ;;  %v5373_v37 = vadd.f32 %v4905_v2, %v5127_v31  ;;  %v5397_v31 = vadd.f32 %v5145_v61, %v4905_v2  ;;  %v5417_v61 = vadd.f32 %v4905_v2, %v5159_v10 }
 0x140   :  { %8625 = vst [vmem:[#allocation113_spill] sm:$0xff] %v5363_v32  ;;  %8653 = vst [vmem:[#allocation141_spill] sm:$0xff] %v5525_v14 }
 0x141   :  { %8634 = vst [vmem:[#allocation122_spill] sm:$0xff] %v5417_v61  ;;  %8658 = vst [vmem:[#allocation146_spill] sm:$0xff] %v5545_v16 }
 0x142   :  { %1575 = vrot.lane.b32.xlu1 %v5309_v59, %s4078_s23  ;;  %v5361_v38 = vpop.permute.xlu1 %1347 }
 0x143   :  { %1573 = vrot.lane.b32.xlu0 %v5313_v45, %s4078_s23  ;;  %8624 = vst [vmem:[#allocation112_spill] sm:$0xff] %v5361_v38  ;;  %v5381_v38 = vadd.f32 %v5131_v53, %v4905_v2  ;;  %v5385_v32 = vpop.permute.xlu0 %1350  ;;  %v5401_v53 = vadd.f32 %v4905_v2, %v5147_v21 }
 0x144   :  { %8628 = vst [vmem:[#allocation116_spill] sm:$0xff] %v5385_v32 }
 0x145   :  { %8627 = vst [vmem:[#allocation115_spill] sm:$0xff] %v5381_v38  ;;  %8630 = vst [vmem:[#allocation118_spill] sm:$0xff] %v5401_v53 }
 0x146   :  { %1659 = vrot.lane.b32.xlu1 %v5323_v49, %s4078_s23  ;;  %v5377_v57 = vpop.permute.xlu1 %1353  ;;  %v5509_v49 = vadd.f32 %v5257_v55, %v4905_v2  ;;  %v5529_v55 = vadd.f32 %v4905_v2, %v5283_v46 }
 0x147   :  { %1657 = vrot.lane.b32.xlu0 %v5329_v40, %s4078_s23  ;;  %8626 = vst [vmem:[#allocation114_spill] sm:$0xff] %v5377_v57  ;;  %v5407_v20 = vpop.permute.xlu0 %1356  ;;  %v5411_v57 = vadd.f32 %v5149_v28, %v4905_v2  ;;  %v5429_v28 = vadd.f32 %v5169_v24, %v4905_v2  ;;  %v5449_v24 = vadd.f32 %v4905_v2, %v5181_v22 }
 0x148   :  { %8632 = vst [vmem:[#allocation120_spill] sm:$0xff] %v5407_v20  ;;  %v5433_v20 = vadd.f32 %v4905_v2, %v5171_v34  ;;  %8651 = vst [vmem:[#allocation139_spill] sm:$0xff] %v5509_v49 }
 0x149   :  { %8633 = vst [vmem:[#allocation121_spill] sm:$0xff] %v5411_v57  ;;  %8635 = vst [vmem:[#allocation123_spill] sm:$0xff] %v5429_v28 }
 0x14a   :  { %1579 = vrot.lane.b32.xlu1 %v5339_v0, %s4078_s23  ;;  %v5405_v32 = vpop.permute.xlu1 %1359  ;;  %8636 = vst [vmem:[#allocation124_spill] sm:$0xff] %v5433_v20  ;;  %8640 = vst [vmem:[#allocation128_spill] sm:$0xff] %v5449_v24 }
 0x14b   :  { %1577 = vrot.lane.b32.xlu0 %v5345_v19, %s4078_s23  ;;  %8631 = vst [vmem:[#allocation119_spill] sm:$0xff] %v5405_v32  ;;  %8654 = vst [vmem:[#allocation142_spill] sm:$0xff] %v5529_v55 }
 0x14e   :  { %1663 = vrot.lane.b32.xlu1 %v5351_v35, %s4078_s23  ;;  %v5493_v35 = vadd.f32 %v5237_v9, %v4905_v2  ;;  %v5513_v9 = vadd.f32 %v4905_v2, %v5261_v4 }
 0x14f   :  { %1661 = vrot.lane.b32.xlu0 %v5357_v33, %s4078_s23 }
 0x150   :  { %8647 = vst [vmem:[#allocation135_spill] sm:$0xff] %v5493_v35  ;;  %8652 = vst [vmem:[#allocation140_spill] sm:$0xff] %v5513_v9 }
 0x152   :  { %1583 = vrot.lane.b32.xlu1 %v5369_v36, %s4078_s23 }
 0x153   :  { %1581 = vrot.lane.b32.xlu0 %v5373_v37, %s4078_s23 }
 0x156   :  { %1667 = vrot.lane.b32.xlu1 %v5381_v38, %s4078_s23  ;;  %v5443_v38 = vadd.f32 %v5173_v51, %v4905_v2  ;;  %v5461_v51 = vadd.f32 %v5189_v23, %v4905_v2  ;;  %v5481_v23 = vadd.f32 %v4905_v2, %v5215_v6 }
 0x157   :  { %1665 = vrot.lane.b32.xlu0 %v5389_v1, %s4078_s23 }
 0x158   :  { %8639 = vst [vmem:[#allocation127_spill] sm:$0xff] %v5443_v38  ;;  %8641 = vst [vmem:[#allocation129_spill] sm:$0xff] %v5461_v51 }
 0x159   :  { %8646 = vst [vmem:[#allocation134_spill] sm:$0xff] %v5481_v23 }
 0x15a   :  { %1587 = vrot.lane.b32.xlu1 %v5397_v31, %s4078_s23 }
 0x15b   :  { %1585 = vrot.lane.b32.xlu0 %v5401_v53, %s4078_s23 }
 0x15c   :  { %v5421_v21 = vpop.permute.xlu1 %1531 }
 0x15d   :  { %v5423_v1 = vpop.permute.xlu0 %1529 }
 0x15e   :  { %1671 = vrot.lane.b32.xlu1 %v5411_v57, %s4078_s23  ;;  %v5465_v57 = vadd.f32 %v4905_v2, %v5193_v15 }
 0x15f   :  { %1669 = vrot.lane.b32.xlu0 %v5417_v61, %s4078_s23 }
 0x160   :  { %v5437_v10 = vpop.permute.xlu1 %1615  ;;  %8642 = vst [vmem:[#allocation130_spill] sm:$0xff] %v5465_v57 }
 0x161   :  { %8637 = vst [vmem:[#allocation125_spill] sm:$0xff] %v5437_v10  ;;  %v5439_v32 = vpop.permute.xlu0 %1613  ;;  %v4004_v10 = vld [vmem:[%s8342_s1 + $0x50] sm:$0xff] }
 0x162   :  { %8638 = vst [vmem:[#allocation126_spill] sm:$0xff] %v5439_v32  ;;  %1591 = vrot.lane.b32.xlu1 %v5429_v28, %s4078_s23  ;;  %v4003_v32 = vld [vmem:[%s8342_s1 + $0x58] sm:$0xff]  ;;  %vm1875_vm3 = vcmp.eq.s32.totalorder %v4004_v10, 0  ;;  %v4028_v28 = vld [vmem:[%s8342_s1 + $0x110] sm:$0xff] }
 0x163   :  { %1589 = vrot.lane.b32.xlu0 %v5433_v20, %s4078_s23  ;;  %vm1876_vm1 = vcmp.eq.s32.totalorder %v4003_v32, 0  ;;  %v4027_v20 = vld [vmem:[%s8342_s1 + $0x118] sm:$0xff] }
 0x164   :  { %v5453_v34 = vpop.permute.xlu1 %1535 }
 0x165   :  { %v5455_v61 = vpop.permute.xlu0 %1533 }
 0x166   :  { %1675 = vrot.lane.b32.xlu1 %v5443_v38, %s4078_s23  ;;  %v5477_v38 = vadd.f32 %v5213_v17, %v4905_v2  ;;  %v5497_v17 = vadd.f32 %v4905_v2, %v5239_v52 }
 0x167   :  { %1673 = vrot.lane.b32.xlu0 %v5449_v24, %s4078_s23 }
 0x168   :  { %v5469_v22 = vpop.permute.xlu1 %1619  ;;  %8645 = vst [vmem:[#allocation133_spill] sm:$0xff] %v5477_v38  ;;  %8648 = vst [vmem:[#allocation136_spill] sm:$0xff] %v5497_v17 }
 0x169   :  { %8643 = vst [vmem:[#allocation131_spill] sm:$0xff] %v5469_v22  ;;  %v5471_v33 = vpop.permute.xlu0 %1617  ;;  %v5571_v22 = vadd.f32 %v5241_v58, %v4905_v2  ;;  %v5593_v58 = vadd.f32 %v4905_v2, %v5273_v27 }
 0x16a   :  { %8644 = vst [vmem:[#allocation132_spill] sm:$0xff] %v5471_v33  ;;  %1595 = vrot.lane.b32.xlu1 %v5461_v51, %s4078_s23  ;;  %v4024_v51 = vld [vmem:[%s8342_s1 + $0xf0] sm:$0xff] }
 0x16b   :  { %1593 = vrot.lane.b32.xlu0 %v5465_v57, %s4078_s23  ;;  %8663 = vst [vmem:[#allocation151_spill] sm:$0xff] %v5571_v22  ;;  %8666 = vst [vmem:[#allocation154_spill] sm:$0xff] %v5593_v58  ;;  %v4023_v57 = vld [vmem:[%s8342_s1 + $0xf8] sm:$0xff] }
 0x16c   :  { %v5485_v15 = vpop.permute.xlu1 %1539 }
 0x16d   :  { %v5487_v24 = vpop.permute.xlu0 %1537 }
 0x16e   :  { %1599 = vrot.lane.b32.xlu1 %v5477_v38, %s4078_s23  ;;  %v4020_v38 = vld [vmem:[%s8342_s1 + $0xd0] sm:$0xff] }
 0x16f   :  { %1597 = vrot.lane.b32.xlu0 %v5481_v23, %s4078_s23  ;;  %v4019_v23 = vld [vmem:[%s8342_s1 + $0xd8] sm:$0xff] }
 0x170   :  { %v5501_v6 = vpop.permute.xlu1 %1623 }
 0x171   :  { %8649 = vst [vmem:[#allocation137_spill] sm:$0xff] %v5501_v6  ;;  %v5503_v40 = vpop.permute.xlu0 %1621  ;;  %v5539_v6 = vadd.f32 %v5197_v7, %v4905_v2  ;;  %v5561_v7 = vadd.f32 %v4905_v2, %v5227_v29 }
 0x172   :  { %8650 = vst [vmem:[#allocation138_spill] sm:$0xff] %v5503_v40  ;;  %1603 = vrot.lane.b32.xlu1 %v5493_v35, %s4078_s23  ;;  %v4016_v35 = vld [vmem:[%s8342_s1 + $0xb0] sm:$0xff] }
 0x173   :  { %1601 = vrot.lane.b32.xlu0 %v5497_v17, %s4078_s23  ;;  %8657 = vst [vmem:[#allocation145_spill] sm:$0xff] %v5539_v6  ;;  %8660 = vst [vmem:[#allocation148_spill] sm:$0xff] %v5561_v7  ;;  %v4015_v17 = vld [vmem:[%s8342_s1 + $0xb8] sm:$0xff] }
 0x174   :  { %v5517_v52 = vpop.permute.xlu1 %1543 }
 0x175   :  { %v5519_v43 = vpop.permute.xlu0 %1541 }
 0x176   :  { %1607 = vrot.lane.b32.xlu1 %v5509_v49, %s4078_s23  ;;  %v4012_v49 = vld [vmem:[%s8342_s1 + $0x90] sm:$0xff] }
 0x177   :  { %1605 = vrot.lane.b32.xlu0 %v5513_v9, %s4078_s23  ;;  %v4011_v9 = vld [vmem:[%s8342_s1 + $0x98] sm:$0xff] }
 0x178   :  { %v5533_v4 = vpop.permute.xlu1 %1627 }
 0x179   :  { %8655 = vst [vmem:[#allocation143_spill] sm:$0xff] %v5533_v4  ;;  %v5535_v40 = vpop.permute.xlu0 %1625 }
 0x17a   :  { %8656 = vst [vmem:[#allocation144_spill] sm:$0xff] %v5535_v40  ;;  %1611 = vrot.lane.b32.xlu1 %v5525_v14, %s4078_s23  ;;  %v5555_v40 = vadd.f32 %v5217_v63, %v4905_v2  ;;  %v5577_v63 = vadd.f32 %v4905_v2, %v5249_v11  ;;  %v4008_v14 = vld [vmem:[%s8342_s1 + $0x70] sm:$0xff] }
 0x17b   :  { %1609 = vrot.lane.b32.xlu0 %v5529_v55, %s4078_s23  ;;  %v4007_v55 = vld [vmem:[%s8342_s1 + $0x78] sm:$0xff]  ;;  %vm1879_vm7 = vcmp.eq.s32.totalorder %v4008_v14, 0 }
 0x17c   :  { %v5549_v46 = vpop.permute.xlu1 %1547  ;;  %8659 = vst [vmem:[#allocation147_spill] sm:$0xff] %v5555_v40  ;;  %8664 = vst [vmem:[#allocation152_spill] sm:$0xff] %v5577_v63  ;;  %vm1880_vm6 = vcmp.eq.s32.totalorder %v4007_v55, 0 }
 0x17d   :  { %v5551_v33 = vpop.permute.xlu0 %1545 }
 0x17e   :  { %1679 = vrot.lane.b32.xlu1 %v5539_v6, %s4078_s23  ;;  %v5587_v6 = vadd.f32 %v5265_v5, %v4905_v2  ;;  %v5609_v5 = vadd.f32 %v4905_v2, %v5295_v39 }
 0x17f   :  { %1677 = vrot.lane.b32.xlu0 %v5545_v16, %s4078_s23 }
 0x180   :  { %v5565_v47 = vpop.permute.xlu1 %1631  ;;  %8665 = vst [vmem:[#allocation153_spill] sm:$0xff] %v5587_v6  ;;  %8670 = vst [vmem:[#allocation158_spill] sm:$0xff] %v5609_v5 }
 0x181   :  { %8661 = vst [vmem:[#allocation149_spill] sm:$0xff] %v5565_v47  ;;  %v5567_v4 = vpop.permute.xlu0 %1629  ;;  %v4000_v47 = vld [vmem:[%s8342_s1 + $0x30] sm:$0xff] }
 0x182   :  { %8662 = vst [vmem:[#allocation150_spill] sm:$0xff] %v5567_v4  ;;  %1683 = vrot.lane.b32.xlu1 %v5555_v40, %s4078_s23  ;;  %v5603_v40 = vadd.f32 %v5285_v3, %v4905_v2  ;;  %v3994_v3 = vld [vmem:[%s8342_s1] sm:$0xff]  ;;  %v8671_v2 = vmov 0   ;;  %v3999_v4 = vld [vmem:[%s8342_s1 + $0x38] sm:$0xff]  ;;  %vm1871_vm14 = vcmp.eq.s32.totalorder %v4000_v47, 0 }
 0x183   :  { %1681 = vrot.lane.b32.xlu0 %v5561_v7, %s4078_s23  ;;  %vm1865_vm9 = vcmp.eq.s32.totalorder %v3994_v3, 0  ;;  %v3996_v3 = vld [vmem:[%s8342_s1 + $0x10] sm:$0xff]  ;;  %vm1872_vm13 = vcmp.eq.s32.totalorder %v3999_v4, 0 }
 0x184   :  { %v5581_v29 = vpop.permute.xlu1 %1551  ;;  %8669 = vst [vmem:[#allocation157_spill] sm:$0xff] %v5603_v40  ;;  %vm1867_vm11 = vcmp.eq.s32.totalorder %v3996_v3, 0  ;;  %v3998_v3 = vld [vmem:[%s8342_s1 + $0x20] sm:$0xff] }
 0x185   :  { %v5583_v16 = vpop.permute.xlu0 %1549  ;;  %vm1869_vm12 = vcmp.eq.s32.totalorder %v3998_v3, 0  ;;  %v1955_v3 = vsel %vm1871_vm14, 1, %v8671_v2  ;;  %vm1887_vm14 = vcmp.eq.s32.totalorder %v4016_v35, 0 }
 0x186   :  { %1687 = vrot.lane.b32.xlu1 %v5571_v22, %s4078_s23  ;;  %v1949_v22 = vsel %vm1865_vm9, 1, %v8671_v2 }
 0x187   :  { %1685 = vrot.lane.b32.xlu0 %v5577_v63, %s4078_s23  ;;  %v3993_v63 = vld [vmem:[%s8342_s1 + $0x8] sm:$0xff] }
 0x188   :  { %v5597_v11 = vpop.permute.xlu1 %1635  ;;  %vm1866_vm8 = vcmp.eq.s32.totalorder %v3993_v63, 0  ;;  %v3995_v63 = vld [vmem:[%s8342_s1 + $0x18] sm:$0xff] }
 0x189   :  { %8667 = vst [vmem:[#allocation155_spill] sm:$0xff] %v5597_v11  ;;  %v5599_v7 = vpop.permute.xlu0 %1633  ;;  %v1950_v39 = vsel %vm1866_vm8, 1, %v8671_v2  ;;  %vm1868_vm10 = vcmp.eq.s32.totalorder %v3995_v63, 0  ;;  %v3997_v11 = vld [vmem:[%s8342_s1 + $0x28] sm:$0xff] }
 0x18a   :  { %8668 = vst [vmem:[#allocation156_spill] sm:$0xff] %v5599_v7  ;;  %1691 = vrot.lane.b32.xlu1 %v5587_v6, %s4078_s23  ;;  %vm1870_vm2 = vcmp.eq.s32.totalorder %v3997_v11, 0 }
 0x18b   :  { %1689 = vrot.lane.b32.xlu0 %v5593_v58, %s4078_s23 }
 0x18c   :  { %v5613_v27 = vpop.permute.xlu1 %1555 }
 0x18d   :  { %v5621_v6 = vpop.permute.xlu0 %1553 }
 0x18e   :  { %1695 = vrot.lane.b32.xlu1 %v5603_v40, %s4078_s23 }
 0x18f   :  { %1693 = vrot.lane.b32.xlu0 %v5609_v5, %s4078_s23  ;;  %v1952_v5 = vsel %vm1868_vm10, 1, %v8671_v2  ;;  %vm1884_vm10 = vcmp.eq.s32.totalorder %v4011_v9, 0 }
 0x190   :  { %v5628_v58 = vpop.permute.xlu1 %1639 }
 0x191   :  { %8672 = vst [vmem:[#allocation159_spill] sm:$0xff] %v5628_v58  ;;  %v5637_v40 = vpop.permute.xlu0 %1637  ;;  %v1951_v58 = vsel %vm1867_vm11, 1, %v8671_v2  ;;  %vm1883_vm11 = vcmp.eq.s32.totalorder %v4012_v49, 0 }
 0x192   :  { %8673 = vst [vmem:[#allocation160_spill] sm:$0xff] %v5637_v40  ;;  %2037 = vperm.xlu1 %3992, %v1950_v39   ;;  %v1953_v40 = vsel %vm1869_vm12, 1, %v8671_v2 }
 0x193   :  { %2034 = vperm.xlu0 %3991, %v1949_v22   ;;  %v1954_v22 = vsel %vm1870_vm2, 1, %v8671_v2 }
 0x194   :  { %v5640_v7 = vpop.permute.xlu1 %1559 }
 0x195   :  { %v5646_v63 = vpop.permute.xlu0 %1557 }
 0x196   :  { %2043 = vperm.xlu1 %3992, %v1952_v5  }
 0x197   :  { %2040 = vperm.xlu0 %3991, %v1951_v58   ;;  %v1956_v58 = vsel %vm1872_vm13, 1, %v8671_v2  ;;  %vm1888_vm13 = vcmp.eq.s32.totalorder %v4015_v17, 0 }
 0x198   :  { %v5652_v39 = vpop.permute.xlu1 %1643 }
 0x199   :  { %8674 = vst [vmem:[#allocation161_spill] sm:$0xff] %v5652_v39  ;;  %v5658_v11 = vpop.permute.xlu0 %1641  ;;  %v4001_v39 = vld [vmem:[%s8342_s1 + $0x48] sm:$0xff] }
 0x19a   :  { %8675 = vst [vmem:[#allocation162_spill] sm:$0xff] %v5658_v11  ;;  %2049 = vperm.xlu1 %3992, %v1954_v22   ;;  %vm1874_vm15 = vcmp.eq.s32.totalorder %v4001_v39, 0  ;;  %v4002_v11 = vld [vmem:[%s8342_s1 + $0x40] sm:$0xff] }
 0x19b   :  { %2046 = vperm.xlu0 %3991, %v1953_v40   ;;  %vm1873_vm0 = vcmp.eq.s32.totalorder %v4002_v11, 0  ;;  %v1958_v40 = vsel %vm1874_vm15, 1, %v8671_v2  ;;  %v1960_v11 = vsel %vm1876_vm1, 1, %v8671_v2  ;;  %vm1892_vm1 = vcmp.eq.s32.totalorder %v4019_v23, 0 }
 0x19c   :  { %v5664_v5 = vpop.permute.xlu1 %1563  ;;  %v1957_v22 = vsel %vm1873_vm0, 1, %v8671_v2 }
 0x19d   :  { %v5670_v4 = vpop.permute.xlu0 %1561 }
 0x19e   :  { %2055 = vperm.xlu1 %3992, %v1956_v58  }
 0x19f   :  { %2052 = vperm.xlu0 %3991, %v1955_v3   ;;  %v1959_v3 = vsel %vm1875_vm3, 1, %v8671_v2  ;;  %vm1891_vm3 = vcmp.eq.s32.totalorder %v4020_v38, 0 }
 0x1a0   :  { %v5676_v47 = vpop.permute.xlu1 %1647 }
 0x1a1   :  { %8676 = vst [vmem:[#allocation163_spill] sm:$0xff] %v5676_v47  ;;  %v5682_v39 = vpop.permute.xlu0 %1645  ;;  %v4005_v47 = vld [vmem:[%s8342_s1 + $0x68] sm:$0xff] }
 0x1a2   :  { %8677 = vst [vmem:[#allocation164_spill] sm:$0xff] %v5682_v39  ;;  %2061 = vperm.xlu1 %3992, %v1958_v40   ;;  %vm1878_vm4 = vcmp.eq.s32.totalorder %v4005_v47, 0  ;;  %v4006_v39 = vld [vmem:[%s8342_s1 + $0x60] sm:$0xff] }
 0x1a3   :  { %2058 = vperm.xlu0 %3991, %v1957_v22   ;;  %vm1877_vm5 = vcmp.eq.s32.totalorder %v4006_v39, 0  ;;  %v1962_v10 = vsel %vm1878_vm4, 1, %v8671_v2  ;;  %v1964_v39 = vsel %vm1880_vm6, 1, %v8671_v2  ;;  %vm1896_vm6 = vcmp.eq.s32.totalorder %v4023_v57, 0 }
 0x1a4   :  { %v5688_v58 = vpop.permute.xlu1 %1567  ;;  %v1961_v22 = vsel %vm1877_vm5, 1, %v8671_v2 }
 0x1a5   :  { %v5694_v32 = vpop.permute.xlu0 %1565 }
 0x1a6   :  { %2067 = vperm.xlu1 %3992, %v1960_v11  }
 0x1a7   :  { %2064 = vperm.xlu0 %3991, %v1959_v3   ;;  %v1963_v3 = vsel %vm1879_vm7, 1, %v8671_v2  ;;  %vm1895_vm7 = vcmp.eq.s32.totalorder %v4024_v51, 0 }
 0x1a8   :  { %v5700_v40 = vpop.permute.xlu1 %1651 }
 0x1a9   :  { %8678 = vst [vmem:[#allocation165_spill] sm:$0xff] %v5700_v40  ;;  %v5706_v47 = vpop.permute.xlu0 %1649  ;;  %v4009_v40 = vld [vmem:[%s8342_s1 + $0x88] sm:$0xff] }
 0x1aa   :  { %8679 = vst [vmem:[#allocation166_spill] sm:$0xff] %v5706_v47  ;;  %2073 = vperm.xlu1 %3992, %v1962_v10   ;;  %vm1882_vm8 = vcmp.eq.s32.totalorder %v4009_v40, 0  ;;  %v4010_v47 = vld [vmem:[%s8342_s1 + $0x80] sm:$0xff] }
 0x1ab   :  { %2070 = vperm.xlu0 %3991, %v1961_v22   ;;  %vm1881_vm9 = vcmp.eq.s32.totalorder %v4010_v47, 0  ;;  %v1966_v14 = vsel %vm1882_vm8, 1, %v8671_v2  ;;  %v1968_v47 = vsel %vm1884_vm10, 1, %v8671_v2  ;;  %vm1900_vm10 = vcmp.eq.s32.totalorder %v4027_v20, 0 }
 0x1ac   :  { %v5712_v11 = vpop.permute.xlu1 %1571  ;;  %v1965_v22 = vsel %vm1881_vm9, 1, %v8671_v2 }
 0x1ad   :  { %v5718_v55 = vpop.permute.xlu0 %1569 }
 0x1ae   :  { %2079 = vperm.xlu1 %3992, %v1964_v39  }
 0x1af   :  { %2076 = vperm.xlu0 %3991, %v1963_v3   ;;  %v1967_v3 = vsel %vm1883_vm11, 1, %v8671_v2  ;;  %vm1899_vm11 = vcmp.eq.s32.totalorder %v4028_v28, 0 }
 0x1b0   :  { %v5724_v10 = vpop.permute.xlu1 %1655 }
 0x1b1   :  { %8680 = vst [vmem:[#allocation167_spill] sm:$0xff] %v5724_v10  ;;  %v5730_v40 = vpop.permute.xlu0 %1653  ;;  %v4013_v10 = vld [vmem:[%s8342_s1 + $0xa8] sm:$0xff] }
 0x1b2   :  { %8681 = vst [vmem:[#allocation168_spill] sm:$0xff] %v5730_v40  ;;  %2085 = vperm.xlu1 %3992, %v1966_v14   ;;  %vm1886_vm2 = vcmp.eq.s32.totalorder %v4013_v10, 0  ;;  %v4014_v40 = vld [vmem:[%s8342_s1 + $0xa0] sm:$0xff] }
 0x1b3   :  { %2082 = vperm.xlu0 %3991, %v1965_v22   ;;  %vm1885_vm12 = vcmp.eq.s32.totalorder %v4014_v40, 0  ;;  %v1970_v49 = vsel %vm1886_vm2, 1, %v8671_v2  ;;  %v1972_v40 = vsel %vm1888_vm13, 1, %v8671_v2 }
 0x1b4   :  { %v5736_v39 = vpop.permute.xlu1 %1575  ;;  %v1969_v22 = vsel %vm1885_vm12, 1, %v8671_v2 }
 0x1b5   :  { %v5742_v9 = vpop.permute.xlu0 %1573 }
 0x1b6   :  { %2091 = vperm.xlu1 %3992, %v1968_v47  }
 0x1b7   :  { %2088 = vperm.xlu0 %3991, %v1967_v3   ;;  %v1971_v3 = vsel %vm1887_vm14, 1, %v8671_v2 }
 0x1b8   :  { %v5748_v14 = vpop.permute.xlu1 %1659 }
 0x1b9   :  { %8682 = vst [vmem:[#allocation169_spill] sm:$0xff] %v5748_v14  ;;  %v5754_v10 = vpop.permute.xlu0 %1657  ;;  %v4017_v14 = vld [vmem:[%s8342_s1 + $0xc8] sm:$0xff] }
 0x1ba   :  { %8683 = vst [vmem:[#allocation170_spill] sm:$0xff] %v5754_v10  ;;  %2097 = vperm.xlu1 %3992, %v1970_v49   ;;  %vm1890_vm15 = vcmp.eq.s32.totalorder %v4017_v14, 0  ;;  %v4018_v10 = vld [vmem:[%s8342_s1 + $0xc0] sm:$0xff] }
 0x1bb   :  { %2094 = vperm.xlu0 %3991, %v1969_v22   ;;  %vm1889_vm0 = vcmp.eq.s32.totalorder %v4018_v10, 0  ;;  %v1974_v35 = vsel %vm1890_vm15, 1, %v8671_v2  ;;  %v1976_v10 = vsel %vm1892_vm1, 1, %v8671_v2 }
 0x1bc   :  { %v5760_v47 = vpop.permute.xlu1 %1579  ;;  %v1973_v22 = vsel %vm1889_vm0, 1, %v8671_v2 }
 0x1bd   :  { %v5766_v17 = vpop.permute.xlu0 %1577 }
 0x1be   :  { %2103 = vperm.xlu1 %3992, %v1972_v40  }
 0x1bf   :  { %2100 = vperm.xlu0 %3991, %v1971_v3   ;;  %v1975_v3 = vsel %vm1891_vm3, 1, %v8671_v2 }
 0x1c0   :  { %v5772_v49 = vpop.permute.xlu1 %1663 }
 0x1c1   :  { %8684 = vst [vmem:[#allocation171_spill] sm:$0xff] %v5772_v49  ;;  %v5778_v14 = vpop.permute.xlu0 %1661  ;;  %v4021_v49 = vld [vmem:[%s8342_s1 + $0xe8] sm:$0xff] }
 0x1c2   :  { %8685 = vst [vmem:[#allocation172_spill] sm:$0xff] %v5778_v14  ;;  %2109 = vperm.xlu1 %3992, %v1974_v35   ;;  %vm1894_vm4 = vcmp.eq.s32.totalorder %v4021_v49, 0  ;;  %v4022_v14 = vld [vmem:[%s8342_s1 + $0xe0] sm:$0xff] }
 0x1c3   :  { %2106 = vperm.xlu0 %3991, %v1973_v22   ;;  %vm1893_vm5 = vcmp.eq.s32.totalorder %v4022_v14, 0  ;;  %v1978_v38 = vsel %vm1894_vm4, 1, %v8671_v2  ;;  %v1980_v14 = vsel %vm1896_vm6, 1, %v8671_v2 }
 0x1c4   :  { %v5784_v40 = vpop.permute.xlu1 %1583  ;;  %v1977_v22 = vsel %vm1893_vm5, 1, %v8671_v2 }
 0x1c5   :  { %v5790_v23 = vpop.permute.xlu0 %1581 }
 0x1c6   :  { %2115 = vperm.xlu1 %3992, %v1976_v10  }
 0x1c7   :  { %2112 = vperm.xlu0 %3991, %v1975_v3   ;;  %v1979_v3 = vsel %vm1895_vm7, 1, %v8671_v2 }
 0x1c8   :  { %v5796_v35 = vpop.permute.xlu1 %1667 }
 0x1c9   :  { %8686 = vst [vmem:[#allocation173_spill] sm:$0xff] %v5796_v35  ;;  %v5802_v49 = vpop.permute.xlu0 %1665  ;;  %v4025_v35 = vld [vmem:[%s8342_s1 + $0x108] sm:$0xff] }
 0x1ca   :  { %8687 = vst [vmem:[#allocation174_spill] sm:$0xff] %v5802_v49  ;;  %2121 = vperm.xlu1 %3992, %v1978_v38   ;;  %vm1898_vm8 = vcmp.eq.s32.totalorder %v4025_v35, 0  ;;  %v4026_v49 = vld [vmem:[%s8342_s1 + $0x100] sm:$0xff] }
 0x1cb   :  { %2118 = vperm.xlu0 %3991, %v1977_v22   ;;  %vm1897_vm9 = vcmp.eq.s32.totalorder %v4026_v49, 0  ;;  %v1982_v51 = vsel %vm1898_vm8, 1, %v8671_v2  ;;  %v1984_v49 = vsel %vm1900_vm10, 1, %v8671_v2 }
 0x1cc   :  { %v5808_v10 = vpop.permute.xlu1 %1587  ;;  %v1981_v22 = vsel %vm1897_vm9, 1, %v8671_v2 }
 0x1cd   :  { %v5814_v57 = vpop.permute.xlu0 %1585 }
 0x1ce   :  { %2127 = vperm.xlu1 %3992, %v1980_v14  }
 0x1cf   :  { %2124 = vperm.xlu0 %3991, %v1979_v3   ;;  %v1983_v3 = vsel %vm1899_vm11, 1, %v8671_v2 }
 0x1d0   :  { %v5820_v38 = vpop.permute.xlu1 %1671 }
 0x1d1   :  { %8688 = vst [vmem:[#allocation175_spill] sm:$0xff] %v5820_v38  ;;  %v5826_v35 = vpop.permute.xlu0 %1669  ;;  %v4029_v38 = vld [vmem:[%s8342_s1 + $0x128] sm:$0xff] }
 0x1d2   :  { %8689 = vst [vmem:[#allocation176_spill] sm:$0xff] %v5826_v35  ;;  %2133 = vperm.xlu1 %3992, %v1982_v51   ;;  %vm1902_vm2 = vcmp.eq.s32.totalorder %v4029_v38, 0  ;;  %v4030_v35 = vld [vmem:[%s8342_s1 + $0x120] sm:$0xff] }
 0x1d3   :  { %2130 = vperm.xlu0 %3991, %v1981_v22   ;;  %vm1901_vm12 = vcmp.eq.s32.totalorder %v4030_v35, 0  ;;  %v1986_v28 = vsel %vm1902_vm2, 1, %v8671_v2 }
 0x1d4   :  { %v5832_v14 = vpop.permute.xlu1 %1591  ;;  %v1985_v22 = vsel %vm1901_vm12, 1, %v8671_v2 }
 0x1d5   :  { %8690 = vst [vmem:[#allocation177_spill] sm:$0xff] %v5832_v14  ;;  %v5838_v20 = vpop.permute.xlu0 %1589  ;;  %v4031_v14 = vld [vmem:[%s8342_s1 + $0x138] sm:$0xff] }
 0x1d6   :  { %8691 = vst [vmem:[#allocation178_spill] sm:$0xff] %v5838_v20  ;;  %2139 = vperm.xlu1 %3992, %v1984_v49   ;;  %vm1904_vm13 = vcmp.eq.s32.totalorder %v4031_v14, 0  ;;  %v4032_v20 = vld [vmem:[%s8342_s1 + $0x130] sm:$0xff] }
 0x1d7   :  { %2136 = vperm.xlu0 %3991, %v1983_v3   ;;  %vm1903_vm14 = vcmp.eq.s32.totalorder %v4032_v20, 0  ;;  %v1988_v35 = vsel %vm1904_vm13, 1, %v8671_v2 }
 0x1d8   :  { %v5844_v51 = vpop.permute.xlu1 %1675  ;;  %v1987_v3 = vsel %vm1903_vm14, 1, %v8671_v2 }
 0x1d9   :  { %8692 = vst [vmem:[#allocation179_spill] sm:$0xff] %v5844_v51  ;;  %v5850_v38 = vpop.permute.xlu0 %1673  ;;  %v4033_v51 = vld [vmem:[%s8342_s1 + $0x148] sm:$0xff] }
 0x1da   :  { %8693 = vst [vmem:[#allocation180_spill] sm:$0xff] %v5850_v38  ;;  %2145 = vperm.xlu1 %3992, %v1986_v28   ;;  %vm1906_vm15 = vcmp.eq.s32.totalorder %v4033_v51, 0  ;;  %v4034_v38 = vld [vmem:[%s8342_s1 + $0x140] sm:$0xff] }
 0x1db   :  { %2142 = vperm.xlu0 %3991, %v1985_v22   ;;  %vm1905_vm0 = vcmp.eq.s32.totalorder %v4034_v38, 0  ;;  %v1990_v20 = vsel %vm1906_vm15, 1, %v8671_v2 }
 0x1dc   :  { %v5856_v49 = vpop.permute.xlu1 %1595  ;;  %v1989_v22 = vsel %vm1905_vm0, 1, %v8671_v2 }
 0x1dd   :  { %8694 = vst [vmem:[#allocation181_spill] sm:$0xff] %v5856_v49  ;;  %v5862_v14 = vpop.permute.xlu0 %1593  ;;  %v4035_v49 = vld [vmem:[%s8342_s1 + $0x158] sm:$0xff] }
 0x1de   :  { %8695 = vst [vmem:[#allocation182_spill] sm:$0xff] %v5862_v14  ;;  %2151 = vperm.xlu1 %3992, %v1988_v35   ;;  %vm1908_vm1 = vcmp.eq.s32.totalorder %v4035_v49, 0  ;;  %v4036_v14 = vld [vmem:[%s8342_s1 + $0x150] sm:$0xff] }
 0x1df   :  { %2148 = vperm.xlu0 %3991, %v1987_v3   ;;  %vm1907_vm3 = vcmp.eq.s32.totalorder %v4036_v14, 0  ;;  %v1992_v38 = vsel %vm1908_vm1, 1, %v8671_v2 }
 0x1e0   :  { %v5868_v28 = vpop.permute.xlu1 %1599  ;;  %v1991_v3 = vsel %vm1907_vm3, 1, %v8671_v2 }
 0x1e1   :  { %8696 = vst [vmem:[#allocation183_spill] sm:$0xff] %v5868_v28  ;;  %v5874_v51 = vpop.permute.xlu0 %1597  ;;  %v4037_v28 = vld [vmem:[%s8342_s1 + $0x168] sm:$0xff] }
 0x1e2   :  { %8697 = vst [vmem:[#allocation184_spill] sm:$0xff] %v5874_v51  ;;  %2157 = vperm.xlu1 %3992, %v1990_v20   ;;  %vm1910_vm4 = vcmp.eq.s32.totalorder %v4037_v28, 0  ;;  %v4038_v51 = vld [vmem:[%s8342_s1 + $0x160] sm:$0xff]  ;;  %v4040_v28 = vld [vmem:[%s8342_s1 + $0x170] sm:$0xff] }
 0x1e3   :  { %2154 = vperm.xlu0 %3991, %v1989_v22   ;;  %vm1909_vm5 = vcmp.eq.s32.totalorder %v4038_v51, 0  ;;  %v1994_v14 = vsel %vm1910_vm4, 1, %v8671_v2  ;;  %v4039_v22 = vld [vmem:[%s8342_s1 + $0x178] sm:$0xff]  ;;  %vm1911_vm7 = vcmp.eq.s32.totalorder %v4040_v28, 0 }
 0x1e4   :  { %v5880_v35 = vpop.permute.xlu1 %1603  ;;  %v1993_v20 = vsel %vm1909_vm5, 1, %v8671_v2  ;;  %vm1912_vm6 = vcmp.eq.s32.totalorder %v4039_v22, 0  ;;  %v4042_v22 = vld [vmem:[%s8342_s1 + $0x180] sm:$0xff] }
 0x1e5   :  { %8698 = vst [vmem:[#allocation185_spill] sm:$0xff] %v5880_v35  ;;  %v5886_v49 = vpop.permute.xlu0 %1601  ;;  %v1996_v51 = vsel %vm1912_vm6, 1, %v8671_v2  ;;  %vm1913_vm9 = vcmp.eq.s32.totalorder %v4042_v22, 0  ;;  %v4045_v22 = vld [vmem:[%s8342_s1 + $0x1a8] sm:$0xff] }
 0x1e6   :  { %8699 = vst [vmem:[#allocation186_spill] sm:$0xff] %v5886_v49  ;;  %2163 = vperm.xlu1 %3992, %v1992_v38   ;;  %v1995_v38 = vsel %vm1911_vm7, 1, %v8671_v2  ;;  %vm1918_vm2 = vcmp.eq.s32.totalorder %v4045_v22, 0  ;;  %v4048_v22 = vld [vmem:[%s8342_s1 + $0x1b0] sm:$0xff] }
 0x1e7   :  { %2160 = vperm.xlu0 %3991, %v1991_v3   ;;  %v4041_v3 = vld [vmem:[%s8342_s1 + $0x188] sm:$0xff]  ;;  %vm1919_vm14 = vcmp.eq.s32.totalorder %v4048_v22, 0  ;;  %v4051_v22 = vld [vmem:[%s8342_s1 + $0x1d8] sm:$0xff] }
 0x1e8   :  { %v5896_v35 = vpop.permute.xlu1 %1607  ;;  %vm1914_vm8 = vcmp.eq.s32.totalorder %v4041_v3, 0  ;;  %v4044_v3 = vld [vmem:[%s8342_s1 + $0x190] sm:$0xff]  ;;  %vm1924_vm1 = vcmp.eq.s32.totalorder %v4051_v22, 0  ;;  %v4054_v22 = vld [vmem:[%s8342_s1 + $0x1e0] sm:$0xff] }
 0x1e9   :  { %8700 = vst [vmem:[#allocation187_spill] sm:$0xff] %v5896_v35  ;;  %v5901_v49 = vpop.permute.xlu0 %1605  ;;  %v4043_v35 = vld [vmem:[%s8342_s1 + $0x198] sm:$0xff]  ;;  %vm1915_vm11 = vcmp.eq.s32.totalorder %v4044_v3, 0  ;;  %vm1925_vm5 = vcmp.eq.s32.totalorder %v4054_v22, 0  ;;  %v4057_v22 = vld [vmem:[%s8342_s1 + $0x208] sm:$0xff] }
 0x1ea   :  { %8701 = vst [vmem:[#allocation188_spill] sm:$0xff] %v5901_v49  ;;  %2169 = vperm.xlu1 %3992, %v1994_v14   ;;  %v1998_v14 = vsel %vm1914_vm8, 1, %v8671_v2  ;;  %v1997_v49 = vsel %vm1913_vm9, 1, %v8671_v2  ;;  %vm1916_vm10 = vcmp.eq.s32.totalorder %v4043_v35, 0  ;;  %v4046_v35 = vld [vmem:[%s8342_s1 + $0x1a0] sm:$0xff]  ;;  %v4047_v3 = vld [vmem:[%s8342_s1 + $0x1b8] sm:$0xff] }
 0x1eb   :  { %2166 = vperm.xlu0 %3991, %v1993_v20   ;;  %vm1917_vm12 = vcmp.eq.s32.totalorder %v4046_v35, 0  ;;  %vm1920_vm13 = vcmp.eq.s32.totalorder %v4047_v3, 0  ;;  %v4050_v3 = vld [vmem:[%s8342_s1 + $0x1c0] sm:$0xff]  ;;  %vm1930_vm8 = vcmp.eq.s32.totalorder %v4057_v22, 0 }
 0x1ec   :  { %v5911_v28 = vpop.permute.xlu1 %1611  ;;  %vm1921_vm0 = vcmp.eq.s32.totalorder %v4050_v3, 0  ;;  %v4053_v3 = vld [vmem:[%s8342_s1 + $0x1e8] sm:$0xff] }
 0x1ed   :  { %8702 = vst [vmem:[#allocation189_spill] sm:$0xff] %v5911_v28  ;;  %v5914_v20 = vpop.permute.xlu0 %1609  ;;  %vm1926_vm4 = vcmp.eq.s32.totalorder %v4053_v3, 0  ;;  %v4056_v3 = vld [vmem:[%s8342_s1 + $0x1f0] sm:$0xff] }
 0x1ee   :  { %2175 = vperm.xlu1 %3992, %v1996_v51   ;;  %8703 = vst [vmem:[#allocation190_spill] sm:$0xff] %v5914_v20  ;;  %v2000_v51 = vsel %vm1916_vm10, 1, %v8671_v2  ;;  %vm1927_vm7 = vcmp.eq.s32.totalorder %v4056_v3, 0  ;;  %v4059_v3 = vld [vmem:[%s8342_s1 + $0x218] sm:$0xff] }
 0x1ef   :  { %2172 = vperm.xlu0 %3991, %v1995_v38   ;;  %v1999_v38 = vsel %vm1915_vm11, 1, %v8671_v2  ;;  %vm1932_vm10 = vcmp.eq.s32.totalorder %v4059_v3, 0 }
 0x1f0   :  { %v5928_v20 = vpop.permute.xlu1 %1679 }
 0x1f1   :  { %8704 = vst [vmem:[#allocation191_spill] sm:$0xff] %v5928_v20  ;;  %v5933_v28 = vpop.permute.xlu0 %1677  ;;  %v4049_v20 = vld [vmem:[%s8342_s1 + $0x1c8] sm:$0xff] }
 0x1f2   :  { %2181 = vperm.xlu1 %3992, %v1998_v14   ;;  %8705 = vst [vmem:[#allocation192_spill] sm:$0xff] %v5933_v28  ;;  %v2001_v14 = vsel %vm1917_vm12, 1, %v8671_v2  ;;  %v2003_v28 = vsel %vm1919_vm14, 1, %v8671_v2  ;;  %vm1922_vm15 = vcmp.eq.s32.totalorder %v4049_v20, 0  ;;  %v4052_v20 = vld [vmem:[%s8342_s1 + $0x1d0] sm:$0xff] }
 0x1f3   :  { %2178 = vperm.xlu0 %3991, %v1997_v49   ;;  %v2002_v49 = vsel %vm1918_vm2, 1, %v8671_v2  ;;  %vm1923_vm3 = vcmp.eq.s32.totalorder %v4052_v20, 0 }
 0x1f4   :  { %v5943_v35 = vpop.permute.xlu1 %1683 }
 0x1f5   :  { %8706 = vst [vmem:[#allocation193_spill] sm:$0xff] %v5943_v35 }
 0x1f6   :  { %2187 = vperm.xlu1 %3992, %v2000_v51   ;;  %v2004_v51 = vsel %vm1920_vm13, 1, %v8671_v2 }
 0x1f7   :  { %2184 = vperm.xlu0 %3991, %v1999_v38   ;;  %v5946_v38 = vpop.permute.xlu0 %1681 }
 0x1f8   :  { %8707 = vst [vmem:[#allocation194_spill] sm:$0xff] %v5946_v38  ;;  %v5960_v38 = vpop.permute.xlu1 %1687 }
 0x1f9   :  { %8708 = vst [vmem:[#allocation195_spill] sm:$0xff] %v5960_v38  ;;  %v4055_v38 = vld [vmem:[%s8342_s1 + $0x1f8] sm:$0xff] }
 0x1fa   :  { %2193 = vperm.xlu1 %3992, %v2002_v49   ;;  %v2006_v49 = vsel %vm1922_vm15, 1, %v8671_v2  ;;  %vm1928_vm6 = vcmp.eq.s32.totalorder %v4055_v38, 0  ;;  %v4058_v38 = vld [vmem:[%s8342_s1 + $0x200] sm:$0xff] }
 0x1fb   :  { %2190 = vperm.xlu0 %3991, %v2001_v14   ;;  %v2005_v14 = vsel %vm1921_vm0, 1, %v8671_v2  ;;  %v5965_v35 = vpop.permute.xlu0 %1685  ;;  %vm1929_vm9 = vcmp.eq.s32.totalorder %v4058_v38, 0 }
 0x1fc   :  { %8709 = vst [vmem:[#allocation196_spill] sm:$0xff] %v5965_v35  ;;  %v5975_v20 = vpop.permute.xlu1 %1691  ;;  %v2009_v35 = vsel %vm1925_vm5, 1, %v8671_v2 }
 0x1fd   :  { %8710 = vst [vmem:[#allocation197_spill] sm:$0xff] %v5975_v20 }
 0x1fe   :  { %2199 = vperm.xlu1 %3992, %v2004_v51   ;;  %v2007_v51 = vsel %vm1923_vm3, 1, %v8671_v2 }
 0x1ff   :  { %2196 = vperm.xlu0 %3991, %v2003_v28   ;;  %v2008_v28 = vsel %vm1924_vm1, 1, %v8671_v2 }
 0x202   :  { %2205 = vperm.xlu1 %3992, %v2006_v49   ;;  %v2010_v49 = vsel %vm1926_vm4, 1, %v8671_v2 }
 0x203   :  { %2202 = vperm.xlu0 %3991, %v2005_v14   ;;  %v5978_v14 = vpop.permute.xlu0 %1689 }
 0x204   :  { %8711 = vst [vmem:[#allocation198_spill] sm:$0xff] %v5978_v14  ;;  %v5992_v14 = vpop.permute.xlu1 %1695 }
 0x205   :  { %8712 = vst [vmem:[#allocation199_spill] sm:$0xff] %v5992_v14  ;;  %v4060_v14 = vld [vmem:[%s8342_s1 + $0x210] sm:$0xff] }
 0x206   :  { %2211 = vperm.xlu1 %3992, %v2008_v28   ;;  %v2012_v28 = vsel %vm1928_vm6, 1, %v8671_v2  ;;  %vm1931_vm11 = vcmp.eq.s32.totalorder %v4060_v14, 0 }
 0x207   :  { %2208 = vperm.xlu0 %3991, %v2007_v51   ;;  %v2011_v51 = vsel %vm1927_vm7, 1, %v8671_v2  ;;  %v5997_v20 = vpop.permute.xlu0 %1693 }
 0x208   :  { %8713 = vst [vmem:[#allocation200_spill] sm:$0xff] %v5997_v20  ;;  %v4061_v20 = vld [vmem:[%s8342_s1 + $0x228] sm:$0xff] }
 0x209   :  { %vm1934_vm2 = vcmp.eq.s32.totalorder %v4061_v20, 0 }
 0x20a   :  { %2217 = vperm.xlu1 %3992, %v2010_v49   ;;  %v2013_v49 = vsel %vm1929_vm9, 1, %v8671_v2 }
 0x20b   :  { %2214 = vperm.xlu0 %3991, %v2009_v35   ;;  %v2014_v35 = vsel %vm1930_vm8, 1, %v8671_v2 }
 0x20e   :  { %2223 = vperm.xlu1 %3992, %v2012_v28   ;;  %v2016_v28 = vsel %vm1932_vm10, 1, %v8671_v2 }
 0x20f   :  { %2220 = vperm.xlu0 %3991, %v2011_v51   ;;  %v2015_v51 = vsel %vm1931_vm11, 1, %v8671_v2 }
 0x211   :  { %v6004_v22 = vpop.permute.xlu1 %2037 }
 0x212   :  { %8714 = vst [vmem:[#allocation201_spill] sm:$0xff] %v6004_v22  ;;  %2229 = vperm.xlu1 %3992, %v2014_v35   ;;  %v6009_v38 = vpop.permute.xlu0 %2034  ;;  %v4062_v22 = vld [vmem:[%s8342_s1 + $0x220] sm:$0xff]  ;;  %v2018_v35 = vsel %vm1934_vm2, 1, %v8671_v2  ;;  %vm1362_vm2 = vcmp.eq.s32.totalorder %v4765_v50, 1 }
 0x213   :  { %8715 = vst [vmem:[#allocation202_spill] sm:$0xff] %v6009_v38  ;;  %2226 = vperm.xlu0 %3991, %v2013_v49   ;;  %vm1933_vm12 = vcmp.eq.s32.totalorder %v4062_v22, 0  ;;  %v4063_v38 = vld [vmem:[%s8342_s1 + $0x238] sm:$0xff] }
 0x214   :  { %v2017_v49 = vsel %vm1933_vm12, 1, %v8671_v2  ;;  %vm1936_vm13 = vcmp.eq.s32.totalorder %v4063_v38, 0  ;;  %vm1361_vm12 = vcmp.eq.s32.totalorder %v4753_v44, 1 }
 0x215   :  { %v6016_v3 = vpop.permute.xlu1 %2043 }
 0x216   :  { %8716 = vst [vmem:[#allocation203_spill] sm:$0xff] %v6016_v3  ;;  %2235 = vperm.xlu1 %3992, %v2016_v28   ;;  %v6021_v14 = vpop.permute.xlu0 %2040  ;;  %v4064_v3 = vld [vmem:[%s8342_s1 + $0x230] sm:$0xff]  ;;  %v2020_v28 = vsel %vm1936_vm13, 1, %v8671_v2  ;;  %vm1364_vm13 = vcmp.eq.s32.totalorder %v4760_v48, 1 }
 0x217   :  { %8717 = vst [vmem:[#allocation204_spill] sm:$0xff] %v6021_v14  ;;  %2232 = vperm.xlu0 %3991, %v2015_v51   ;;  %vm1935_vm14 = vcmp.eq.s32.totalorder %v4064_v3, 0  ;;  %v4065_v14 = vld [vmem:[%s8342_s1 + $0x248] sm:$0xff]  ;;  %v1784_v44 = vsel %vm1364_vm13, %v4934_v26, %v5453_v34 }
 0x218   :  { %v2019_v51 = vsel %vm1935_vm14, 1, %v8671_v2  ;;  %vm1938_vm15 = vcmp.eq.s32.totalorder %v4065_v14, 0  ;;  %vm1363_vm14 = vcmp.eq.s32.totalorder %v4748_v42, 1 }
 0x219   :  { %v6028_v20 = vpop.permute.xlu1 %2049 }
 0x21a   :  { %8718 = vst [vmem:[#allocation205_spill] sm:$0xff] %v6028_v20  ;;  %2241 = vperm.xlu1 %3992, %v2018_v35   ;;  %v6033_v22 = vpop.permute.xlu0 %2046  ;;  %v4066_v20 = vld [vmem:[%s8342_s1 + $0x240] sm:$0xff]  ;;  %v2022_v35 = vsel %vm1938_vm15, 1, %v8671_v2  ;;  %vm1366_vm15 = vcmp.eq.s32.totalorder %v4772_v54, 1 }
 0x21b   :  { %8719 = vst [vmem:[#allocation206_spill] sm:$0xff] %v6033_v22  ;;  %2238 = vperm.xlu0 %3991, %v2017_v49   ;;  %vm1937_vm0 = vcmp.eq.s32.totalorder %v4066_v20, 0  ;;  %v4067_v22 = vld [vmem:[%s8342_s1 + $0x258] sm:$0xff]  ;;  %v1786_v42 = vsel %vm1366_vm15, %v4958_v25, %v5485_v15  ;;  %v8730_v15 = vld [vmem:[#allocation54_spill] sm:$0xff] }
 0x21c   :  { %v2021_v49 = vsel %vm1937_vm0, 1, %v8671_v2  ;;  %vm1940_vm1 = vcmp.eq.s32.totalorder %v4067_v22, 0  ;;  %vm1365_vm0 = vcmp.eq.s32.totalorder %v4777_v56, 1 }
 0x21d   :  { %v6040_v38 = vpop.permute.xlu1 %2055  ;;  %v1785_v34 = vsel %vm1365_vm0, %v4961_v18, %v5487_v24 }
 0x21e   :  { %8720 = vst [vmem:[#allocation207_spill] sm:$0xff] %v6040_v38  ;;  %2247 = vperm.xlu1 %3992, %v2020_v28   ;;  %v6045_v3 = vpop.permute.xlu0 %2052  ;;  %v4068_v38 = vld [vmem:[%s8342_s1 + $0x250] sm:$0xff]  ;;  %v2024_v28 = vsel %vm1940_vm1, 1, %v8671_v2  ;;  %vm1368_vm1 = vcmp.eq.s32.totalorder %v4784_v60, 1  ;;  %v8733_v60 = vld [vmem:[#allocation59_spill] sm:$0xff] }
 0x21f   :  { %8721 = vst [vmem:[#allocation208_spill] sm:$0xff] %v6045_v3  ;;  %2244 = vperm.xlu0 %3991, %v2019_v51   ;;  %vm1939_vm3 = vcmp.eq.s32.totalorder %v4068_v38, 0  ;;  %v4069_v3 = vld [vmem:[%s8342_s1 + $0x268] sm:$0xff]  ;;  %v1788_v54 = vsel %vm1368_vm1, %v4984_v13, %v5517_v52  ;;  %v8734_v52 = vld [vmem:[#allocation60_spill] sm:$0xff] }
 0x220   :  { %v2023_v51 = vsel %vm1939_vm3, 1, %v8671_v2  ;;  %vm1942_vm4 = vcmp.eq.s32.totalorder %v4069_v3, 0  ;;  %vm1367_vm3 = vcmp.eq.s32.totalorder %v4789_v62, 1 }
 0x221   :  { %v6052_v14 = vpop.permute.xlu1 %2061 }
 0x222   :  { %8722 = vst [vmem:[#allocation209_spill] sm:$0xff] %v6052_v14  ;;  %2253 = vperm.xlu1 %3992, %v2022_v35   ;;  %v6057_v20 = vpop.permute.xlu0 %2058  ;;  %v4070_v14 = vld [vmem:[%s8342_s1 + $0x260] sm:$0xff]  ;;  %v2026_v35 = vsel %vm1942_vm4, 1, %v8671_v2 }
 0x223   :  { %8723 = vst [vmem:[#allocation210_spill] sm:$0xff] %v6057_v20  ;;  %2250 = vperm.xlu0 %3991, %v2021_v49   ;;  %vm1941_vm5 = vcmp.eq.s32.totalorder %v4070_v14, 0  ;;  %v4071_v20 = vld [vmem:[%s8342_s1 + $0x278] sm:$0xff] }
 0x224   :  { %v2025_v49 = vsel %vm1941_vm5, 1, %v8671_v2  ;;  %vm1944_vm6 = vcmp.eq.s32.totalorder %v4071_v20, 0 }
 0x225   :  { %v6064_v22 = vpop.permute.xlu1 %2067 }
 0x226   :  { %8724 = vst [vmem:[#allocation211_spill] sm:$0xff] %v6064_v22  ;;  %2259 = vperm.xlu1 %3992, %v2024_v28   ;;  %v6069_v38 = vpop.permute.xlu0 %2064  ;;  %v4072_v22 = vld [vmem:[%s8342_s1 + $0x270] sm:$0xff]  ;;  %v2028_v28 = vsel %vm1944_vm6, 1, %v8671_v2 }
 0x227   :  { %8725 = vst [vmem:[#allocation212_spill] sm:$0xff] %v6069_v38  ;;  %2256 = vperm.xlu0 %3991, %v2023_v51   ;;  %vm1943_vm7 = vcmp.eq.s32.totalorder %v4072_v22, 0  ;;  %v4073_v38 = vld [vmem:[%s8342_s1 + $0x288] sm:$0xff] }
 0x228   :  { %v2027_v51 = vsel %vm1943_vm7, 1, %v8671_v2  ;;  %vm1946_vm8 = vcmp.eq.s32.totalorder %v4073_v38, 0 }
 0x229   :  { %v6076_v3 = vpop.permute.xlu1 %2073 }
 0x22a   :  { %8726 = vst [vmem:[#allocation213_spill] sm:$0xff] %v6076_v3  ;;  %2265 = vperm.xlu1 %3992, %v2026_v35   ;;  %v6081_v14 = vpop.permute.xlu0 %2070  ;;  %v4074_v3 = vld [vmem:[%s8342_s1 + $0x280] sm:$0xff]  ;;  %v2030_v35 = vsel %vm1946_vm8, 1, %v8671_v2 }
 0x22b   :  { %8727 = vst [vmem:[#allocation214_spill] sm:$0xff] %v6081_v14  ;;  %2262 = vperm.xlu0 %3991, %v2025_v49   ;;  %vm1945_vm9 = vcmp.eq.s32.totalorder %v4074_v3, 0  ;;  %v4075_v14 = vld [vmem:[%s8342_s1 + $0x298] sm:$0xff] }
 0x22c   :  { %v2029_v49 = vsel %vm1945_vm9, 1, %v8671_v2  ;;  %vm1948_vm10 = vcmp.eq.s32.totalorder %v4075_v14, 0  ;;  %v1782_v14 = vsel %vm1362_vm2, %v4912_v8, %v5421_v21  ;;  %v1783_v21 = vsel %vm1363_vm14, %v4937_v30, %v5455_v61 }
 0x22d   :  { %v6088_v20 = vpop.permute.xlu1 %2079 }
 0x22e   :  { %8728 = vst [vmem:[#allocation215_spill] sm:$0xff] %v6088_v20  ;;  %2271 = vperm.xlu1 %3992, %v2028_v28   ;;  %v6093_v22 = vpop.permute.xlu0 %2076  ;;  %v4076_v20 = vld [vmem:[%s8342_s1 + $0x290] sm:$0xff]  ;;  %v2032_v28 = vsel %vm1948_vm10, 1, %v8671_v2 }
 0x22f   :  { %8729 = vst [vmem:[#allocation216_spill] sm:$0xff] %v6093_v22  ;;  %2268 = vperm.xlu0 %3991, %v2027_v51   ;;  %vm1947_vm11 = vcmp.eq.s32.totalorder %v4076_v20, 0 }
 0x230   :  { %v2031_v51 = vsel %vm1947_vm11, 1, %v8671_v2 }
 0x231   :  { %v6100_v38 = vpop.permute.xlu1 %2085 }
 0x232   :  { %2277 = vperm.xlu1 %3992, %v2030_v35   ;;  %v6105_v3 = vpop.permute.xlu0 %2082  ;;  %v1781_v35 = vsel %vm1361_vm12, %v4915_v12, %v5423_v1 }
 0x233   :  { %2274 = vperm.xlu0 %3991, %v2029_v49   ;;  %v1787_v49 = vsel %vm1367_vm3, %v8730_v15, %v5519_v43 }
 0x235   :  { %v6109_v22 = vpop.permute.xlu1 %2091 }
 0x236   :  { %2283 = vperm.xlu1 %3992, %v2032_v28   ;;  %v6111_v53 = vpop.permute.xlu0 %2088  ;;  %v8731_v28 = vld [vmem:[#allocation2_spill] sm:$0xff] }
 0x237   :  { %2280 = vperm.xlu0 %3991, %v2031_v51   ;;  %vm1370_vm4 = vcmp.eq.s32.totalorder %v8731_v28, 1  ;;  %v8732_v51 = vld [vmem:[#allocation3_spill] sm:$0xff]  ;;  %v8740_v28 = vld [vmem:[#allocation6_spill] sm:$0xff] }
 0x238   :  { %vm1369_vm5 = vcmp.eq.s32.totalorder %v8732_v51, 1  ;;  %v1790_v62 = vsel %vm1370_vm4, %v8733_v60, %v5549_v46  ;;  %v8738_v46 = vld [vmem:[#allocation66_spill] sm:$0xff]  ;;  %vm1374_vm8 = vcmp.eq.s32.totalorder %v8740_v28, 1  ;;  %v8741_v51 = vld [vmem:[#allocation7_spill] sm:$0xff] }
 0x239   :  { %v6117_v20 = vpop.permute.xlu1 %2097  ;;  %vm1373_vm9 = vcmp.eq.s32.totalorder %v8741_v51, 1  ;;  %v8748_v28 = vld [vmem:[#allocation79_spill] sm:$0xff] }
 0x23a   :  { %2455 = vrot.lane.b32.xlu1 %v1782_v14, %s4078_s23  ;;  %v6122_v2 = vpop.permute.xlu0 %2094 }
 0x23b   :  { %2453 = vrot.lane.b32.xlu0 %v1781_v35, %s4078_s23  ;;  %v1789_v35 = vsel %vm1369_vm5, %v8734_v52, %v5551_v33 }
 0x23d   :  { %v6129_v50 = vpop.permute.xlu1 %2103 }
 0x23e   :  { %2459 = vrot.lane.b32.xlu1 %v1784_v44, %s4078_s23  ;;  %v6134_v1 = vpop.permute.xlu0 %2100  ;;  %v8735_v44 = vld [vmem:[#allocation4_spill] sm:$0xff] }
 0x23f   :  { %2457 = vrot.lane.b32.xlu0 %v1783_v21, %s4078_s23  ;;  %vm1372_vm6 = vcmp.eq.s32.totalorder %v8735_v44, 1  ;;  %v8736_v21 = vld [vmem:[#allocation5_spill] sm:$0xff] }
 0x240   :  { %vm1371_vm7 = vcmp.eq.s32.totalorder %v8736_v21, 1 }
 0x241   :  { %v6141_v48 = vpop.permute.xlu1 %2109 }
 0x242   :  { %2463 = vrot.lane.b32.xlu1 %v1786_v42, %s4078_s23  ;;  %v6146_v61 = vpop.permute.xlu0 %2106  ;;  %v8737_v42 = vld [vmem:[#allocation65_spill] sm:$0xff] }
 0x243   :  { %2461 = vrot.lane.b32.xlu0 %v1785_v34, %s4078_s23  ;;  %v1792_v34 = vsel %vm1372_vm6, %v8737_v42, %v5581_v29  ;;  %v8744_v29 = vld [vmem:[#allocation74_spill] sm:$0xff] }
 0x244   :  { %v1793_v21 = vsel %vm1373_vm9, %v8744_v29, %v5621_v6 }
 0x245   :  { %v6153_v56 = vpop.permute.xlu1 %2115 }
 0x246   :  { %2467 = vrot.lane.b32.xlu1 %v1788_v54, %s4078_s23  ;;  %v6158_v24 = vpop.permute.xlu0 %2112 }
 0x247   :  { %2465 = vrot.lane.b32.xlu0 %v1787_v49, %s4078_s23  ;;  %v1791_v49 = vsel %vm1371_vm7, %v8738_v46, %v5583_v16 }
 0x249   :  { %v6165_v14 = vpop.permute.xlu1 %2121 }
 0x24a   :  { %2471 = vrot.lane.b32.xlu1 %v1790_v62, %s4078_s23  ;;  %v6170_v43 = vpop.permute.xlu0 %2118  ;;  %v8742_v62 = vld [vmem:[#allocation72_spill] sm:$0xff] }
 0x24b   :  { %2469 = vrot.lane.b32.xlu0 %v1789_v35, %s4078_s23  ;;  %v1794_v35 = vsel %vm1374_vm8, %v8742_v62, %v5613_v27  ;;  %v8750_v27 = vld [vmem:[#allocation80_spill] sm:$0xff] }
 0x24d   :  { %v6177_v54 = vpop.permute.xlu1 %2127 }
 0x24e   :  { %2475 = vrot.lane.b32.xlu1 %v1792_v34, %s4078_s23  ;;  %v6182_v33 = vpop.permute.xlu0 %2124  ;;  %v8746_v34 = vld [vmem:[#allocation8_spill] sm:$0xff] }
 0x24f   :  { %8739 = vst [vmem:[#allocation54_spill] sm:$0xff] %v6182_v33  ;;  %2473 = vrot.lane.b32.xlu0 %v1791_v49, %s4078_s23  ;;  %vm1376_vm10 = vcmp.eq.s32.totalorder %v8746_v34, 1  ;;  %v8747_v49 = vld [vmem:[#allocation9_spill] sm:$0xff] }
 0x250   :  { %vm1375_vm11 = vcmp.eq.s32.totalorder %v8747_v49, 1  ;;  %v1796_v51 = vsel %vm1376_vm10, %v8748_v28, %v5640_v7  ;;  %v8754_v34 = vld [vmem:[#allocation85_spill] sm:$0xff]  ;;  %v8756_v7 = vld [vmem:[#allocation86_spill] sm:$0xff] }
 0x251   :  { %v6189_v44 = vpop.permute.xlu1 %2133 }
 0x252   :  { %8743 = vst [vmem:[#allocation2_spill] sm:$0xff] %v6189_v44  ;;  %2479 = vrot.lane.b32.xlu1 %v1794_v35, %s4078_s23  ;;  %v6194_v16 = vpop.permute.xlu0 %2130  ;;  %v1795_v44 = vsel %vm1375_vm11, %v8750_v27, %v5646_v63  ;;  %v8752_v35 = vld [vmem:[#allocation10_spill] sm:$0xff] }
 0x253   :  { %8745 = vst [vmem:[#allocation3_spill] sm:$0xff] %v6194_v16  ;;  %2477 = vrot.lane.b32.xlu0 %v1793_v21, %s4078_s23  ;;  %vm1378_vm2 = vcmp.eq.s32.totalorder %v8752_v35, 1  ;;  %v8753_v21 = vld [vmem:[#allocation11_spill] sm:$0xff]  ;;  %v8760_v35 = vld [vmem:[#allocation92_spill] sm:$0xff] }
 0x254   :  { %vm1377_vm12 = vcmp.eq.s32.totalorder %v8753_v21, 1  ;;  %v1798_v49 = vsel %vm1378_vm2, %v8754_v34, %v5664_v5  ;;  %v8762_v5 = vld [vmem:[#allocation94_spill] sm:$0xff] }
 0x255   :  { %v6201_v33 = vpop.permute.xlu1 %2139 }
 0x256   :  { %8749 = vst [vmem:[#allocation59_spill] sm:$0xff] %v6201_v33  ;;  %2483 = vrot.lane.b32.xlu1 %v1796_v51, %s4078_s23  ;;  %v6206_v6 = vpop.permute.xlu0 %2136  ;;  %v1797_v33 = vsel %vm1377_vm12, %v8756_v7, %v5670_v4  ;;  %v8758_v51 = vld [vmem:[#allocation12_spill] sm:$0xff] }
 0x257   :  { %8751 = vst [vmem:[#allocation60_spill] sm:$0xff] %v6206_v6  ;;  %2481 = vrot.lane.b32.xlu0 %v1795_v44, %s4078_s23  ;;  %vm1380_vm13 = vcmp.eq.s32.totalorder %v8758_v51, 1  ;;  %v8759_v44 = vld [vmem:[#allocation13_spill] sm:$0xff] }
 0x258   :  { %vm1379_vm14 = vcmp.eq.s32.totalorder %v8759_v44, 1  ;;  %v1800_v21 = vsel %vm1380_vm13, %v8760_v35, %v5688_v58  ;;  %v8767_v58 = vld [vmem:[#allocation99_spill] sm:$0xff] }
 0x259   :  { %v6213_v16 = vpop.permute.xlu1 %2145 }
 0x25a   :  { %8755 = vst [vmem:[#allocation4_spill] sm:$0xff] %v6213_v16  ;;  %2487 = vrot.lane.b32.xlu1 %v1798_v49, %s4078_s23  ;;  %v6218_v63 = vpop.permute.xlu0 %2142  ;;  %v1799_v16 = vsel %vm1379_vm14, %v8762_v5, %v5694_v32  ;;  %v8764_v49 = vld [vmem:[#allocation14_spill] sm:$0xff] }
 0x25b   :  { %8757 = vst [vmem:[#allocation5_spill] sm:$0xff] %v6218_v63  ;;  %2485 = vrot.lane.b32.xlu0 %v1797_v33, %s4078_s23  ;;  %vm1382_vm15 = vcmp.eq.s32.totalorder %v8764_v49, 1  ;;  %v8765_v33 = vld [vmem:[#allocation15_spill] sm:$0xff] }
 0x25c   :  { %vm1381_vm0 = vcmp.eq.s32.totalorder %v8765_v33, 1  ;;  %v1802_v51 = vsel %vm1382_vm15, %v5271_v41, %v5712_v11 }
 0x25d   :  { %v6225_v6 = vpop.permute.xlu1 %2151 }
 0x25e   :  { %8761 = vst [vmem:[#allocation65_spill] sm:$0xff] %v6225_v6  ;;  %2491 = vrot.lane.b32.xlu1 %v1800_v21, %s4078_s23  ;;  %v6230_v4 = vpop.permute.xlu0 %2148  ;;  %v1801_v6 = vsel %vm1381_vm0, %v8767_v58, %v5718_v55  ;;  %v8769_v21 = vld [vmem:[#allocation16_spill] sm:$0xff] }
 0x25f   :  { %8763 = vst [vmem:[#allocation66_spill] sm:$0xff] %v6230_v4  ;;  %2489 = vrot.lane.b32.xlu0 %v1799_v16, %s4078_s23  ;;  %vm1384_vm1 = vcmp.eq.s32.totalorder %v8769_v21, 1  ;;  %v8770_v16 = vld [vmem:[#allocation17_spill] sm:$0xff] }
 0x260   :  { %vm1383_vm3 = vcmp.eq.s32.totalorder %v8770_v16, 1  ;;  %v1804_v49 = vsel %vm1384_vm1, %v5309_v59, %v5736_v39 }
 0x261   :  { %v6237_v44 = vpop.permute.xlu1 %2157  ;;  %v1803_v11 = vsel %vm1383_vm3, %v5313_v45, %v5742_v9 }
 0x262   :  { %8766 = vst [vmem:[#allocation6_spill] sm:$0xff] %v6237_v44  ;;  %2495 = vrot.lane.b32.xlu1 %v1802_v51, %s4078_s23  ;;  %v6242_v32 = vpop.permute.xlu0 %2154  ;;  %v8773_v51 = vld [vmem:[#allocation18_spill] sm:$0xff] }
 0x263   :  { %8768 = vst [vmem:[#allocation7_spill] sm:$0xff] %v6242_v32  ;;  %2493 = vrot.lane.b32.xlu0 %v1801_v6, %s4078_s23  ;;  %vm1386_vm4 = vcmp.eq.s32.totalorder %v8773_v51, 1  ;;  %v8774_v6 = vld [vmem:[#allocation19_spill] sm:$0xff] }
 0x264   :  { %vm1385_vm5 = vcmp.eq.s32.totalorder %v8774_v6, 1  ;;  %v1806_v21 = vsel %vm1386_vm4, %v5339_v0, %v5760_v47 }
 0x265   :  { %v6249_v33 = vpop.permute.xlu1 %2163  ;;  %v1805_v39 = vsel %vm1385_vm5, %v5345_v19, %v5766_v17 }
 0x266   :  { %8771 = vst [vmem:[#allocation72_spill] sm:$0xff] %v6249_v33  ;;  %2499 = vrot.lane.b32.xlu1 %v1804_v49, %s4078_s23  ;;  %v6254_v55 = vpop.permute.xlu0 %2160  ;;  %v8777_v49 = vld [vmem:[#allocation20_spill] sm:$0xff] }
 0x267   :  { %8772 = vst [vmem:[#allocation74_spill] sm:$0xff] %v6254_v55  ;;  %2497 = vrot.lane.b32.xlu0 %v1803_v11, %s4078_s23  ;;  %vm1388_vm6 = vcmp.eq.s32.totalorder %v8777_v49, 1  ;;  %v8778_v11 = vld [vmem:[#allocation21_spill] sm:$0xff] }
 0x268   :  { %vm1387_vm7 = vcmp.eq.s32.totalorder %v8778_v11, 1  ;;  %v1808_v51 = vsel %vm1388_vm6, %v5369_v36, %v5784_v40  ;;  %v8784_v40 = vld [vmem:[#allocation118_spill] sm:$0xff] }
 0x269   :  { %v6261_v16 = vpop.permute.xlu1 %2169  ;;  %v1807_v47 = vsel %vm1387_vm7, %v5373_v37, %v5790_v23 }
 0x26a   :  { %8775 = vst [vmem:[#allocation8_spill] sm:$0xff] %v6261_v16  ;;  %2503 = vrot.lane.b32.xlu1 %v1806_v21, %s4078_s23  ;;  %v6266_v9 = vpop.permute.xlu0 %2166  ;;  %v8781_v21 = vld [vmem:[#allocation22_spill] sm:$0xff] }
 0x26b   :  { %8776 = vst [vmem:[#allocation9_spill] sm:$0xff] %v6266_v9  ;;  %2501 = vrot.lane.b32.xlu0 %v1805_v39, %s4078_s23  ;;  %vm1390_vm8 = vcmp.eq.s32.totalorder %v8781_v21, 1  ;;  %v8782_v39 = vld [vmem:[#allocation23_spill] sm:$0xff]  ;;  %v8788_v21 = vld [vmem:[#allocation177_spill] sm:$0xff] }
 0x26c   :  { %vm1389_vm9 = vcmp.eq.s32.totalorder %v8782_v39, 1  ;;  %v1810_v49 = vsel %vm1390_vm8, %v5397_v31, %v5808_v10  ;;  %v8789_v39 = vld [vmem:[#allocation123_spill] sm:$0xff]  ;;  %v8791_v10 = vld [vmem:[#allocation178_spill] sm:$0xff] }
 0x26d   :  { %v6273_v6 = vpop.permute.xlu1 %2175 }
 0x26e   :  { %8779 = vst [vmem:[#allocation79_spill] sm:$0xff] %v6273_v6  ;;  %2507 = vrot.lane.b32.xlu1 %v1808_v51, %s4078_s23  ;;  %v6278_v17 = vpop.permute.xlu0 %2172  ;;  %v1809_v6 = vsel %vm1389_vm9, %v8784_v40, %v5814_v57  ;;  %v8786_v51 = vld [vmem:[#allocation24_spill] sm:$0xff] }
 0x26f   :  { %8780 = vst [vmem:[#allocation80_spill] sm:$0xff] %v6278_v17  ;;  %2505 = vrot.lane.b32.xlu0 %v1807_v47, %s4078_s23  ;;  %vm1392_vm10 = vcmp.eq.s32.totalorder %v8786_v51, 1  ;;  %v8787_v47 = vld [vmem:[#allocation25_spill] sm:$0xff] }
 0x270   :  { %vm1391_vm11 = vcmp.eq.s32.totalorder %v8787_v47, 1  ;;  %v1812_v17 = vsel %vm1392_vm10, %v8789_v39, %v8788_v21  ;;  %v8796_v51 = vld [vmem:[#allocation181_spill] sm:$0xff]  ;;  %v8799_v21 = vld [vmem:[#allocation182_spill] sm:$0xff] }
 0x271   :  { %v6285_v11 = vpop.permute.xlu1 %2181  ;;  %v8797_v47 = vld [vmem:[#allocation129_spill] sm:$0xff] }
 0x272   :  { %8783 = vst [vmem:[#allocation10_spill] sm:$0xff] %v6285_v11  ;;  %2511 = vrot.lane.b32.xlu1 %v1810_v49, %s4078_s23  ;;  %v6290_v23 = vpop.permute.xlu0 %2178  ;;  %v8792_v11 = vld [vmem:[#allocation124_spill] sm:$0xff]  ;;  %v8794_v49 = vld [vmem:[#allocation26_spill] sm:$0xff] }
 0x273   :  { %8785 = vst [vmem:[#allocation11_spill] sm:$0xff] %v6290_v23  ;;  %2509 = vrot.lane.b32.xlu0 %v1809_v6, %s4078_s23  ;;  %v1811_v16 = vsel %vm1391_vm11, %v8792_v11, %v8791_v10  ;;  %vm1394_vm2 = vcmp.eq.s32.totalorder %v8794_v49, 1  ;;  %v8795_v6 = vld [vmem:[#allocation27_spill] sm:$0xff] }
 0x274   :  { %vm1393_vm12 = vcmp.eq.s32.totalorder %v8795_v6, 1  ;;  %v1814_v23 = vsel %vm1394_vm2, %v8797_v47, %v8796_v51  ;;  %v8804_v49 = vld [vmem:[#allocation183_spill] sm:$0xff]  ;;  %v8805_v6 = vld [vmem:[#allocation133_spill] sm:$0xff]  ;;  %v8807_v51 = vld [vmem:[#allocation184_spill] sm:$0xff] }
 0x275   :  { %v6297_v9 = vpop.permute.xlu1 %2187 }
 0x276   :  { %8790 = vst [vmem:[#allocation85_spill] sm:$0xff] %v6297_v9  ;;  %2515 = vrot.lane.b32.xlu1 %v1812_v17, %s4078_s23  ;;  %v6302_v57 = vpop.permute.xlu0 %2184  ;;  %v8800_v9 = vld [vmem:[#allocation130_spill] sm:$0xff]  ;;  %v8802_v17 = vld [vmem:[#allocation28_spill] sm:$0xff] }
 0x277   :  { %8793 = vst [vmem:[#allocation86_spill] sm:$0xff] %v6302_v57  ;;  %2513 = vrot.lane.b32.xlu0 %v1811_v16, %s4078_s23  ;;  %v1813_v33 = vsel %vm1393_vm12, %v8800_v9, %v8799_v21  ;;  %vm1396_vm13 = vcmp.eq.s32.totalorder %v8802_v17, 1  ;;  %v8803_v16 = vld [vmem:[#allocation29_spill] sm:$0xff] }
 0x278   :  { %vm1395_vm14 = vcmp.eq.s32.totalorder %v8803_v16, 1  ;;  %v1816_v57 = vsel %vm1396_vm13, %v8805_v6, %v8804_v49  ;;  %v8812_v17 = vld [vmem:[#allocation185_spill] sm:$0xff]  ;;  %v8813_v16 = vld [vmem:[#allocation135_spill] sm:$0xff]  ;;  %v8815_v49 = vld [vmem:[#allocation186_spill] sm:$0xff] }
 0x279   :  { %v6309_v55 = vpop.permute.xlu1 %2193 }
 0x27a   :  { %8798 = vst [vmem:[#allocation12_spill] sm:$0xff] %v6309_v55  ;;  %2519 = vrot.lane.b32.xlu1 %v1814_v23, %s4078_s23  ;;  %v6314_v10 = vpop.permute.xlu0 %2190  ;;  %v8808_v55 = vld [vmem:[#allocation134_spill] sm:$0xff] }
 0x27b   :  { %8801 = vst [vmem:[#allocation13_spill] sm:$0xff] %v6314_v10  ;;  %2517 = vrot.lane.b32.xlu0 %v1813_v33, %s4078_s23  ;;  %v1815_v44 = vsel %vm1395_vm14, %v8808_v55, %v8807_v51  ;;  %v8810_v23 = vld [vmem:[#allocation30_spill] sm:$0xff]  ;;  %v8811_v33 = vld [vmem:[#allocation31_spill] sm:$0xff] }
 0x27c   :  { %vm1398_vm15 = vcmp.eq.s32.totalorder %v8810_v23, 1  ;;  %vm1397_vm0 = vcmp.eq.s32.totalorder %v8811_v33, 1  ;;  %v8820_v23 = vld [vmem:[#allocation187_spill] sm:$0xff] }
 0x27d   :  { %v6321_v32 = vpop.permute.xlu1 %2199  ;;  %v1818_v10 = vsel %vm1398_vm15, %v8813_v16, %v8812_v17  ;;  %v8821_v33 = vld [vmem:[#allocation139_spill] sm:$0xff]  ;;  %v8823_v17 = vld [vmem:[#allocation188_spill] sm:$0xff] }
 0x27e   :  { %8806 = vst [vmem:[#allocation92_spill] sm:$0xff] %v6321_v32  ;;  %2523 = vrot.lane.b32.xlu1 %v1816_v57, %s4078_s23  ;;  %v6326_v21 = vpop.permute.xlu0 %2196  ;;  %v8816_v32 = vld [vmem:[#allocation136_spill] sm:$0xff] }
 0x27f   :  { %8809 = vst [vmem:[#allocation94_spill] sm:$0xff] %v6326_v21  ;;  %2521 = vrot.lane.b32.xlu0 %v1815_v44, %s4078_s23  ;;  %v1817_v63 = vsel %vm1397_vm0, %v8816_v32, %v8815_v49  ;;  %v8818_v57 = vld [vmem:[#allocation32_spill] sm:$0xff]  ;;  %v8819_v44 = vld [vmem:[#allocation33_spill] sm:$0xff] }
 0x280   :  { %vm1400_vm1 = vcmp.eq.s32.totalorder %v8818_v57, 1  ;;  %vm1399_vm3 = vcmp.eq.s32.totalorder %v8819_v44, 1  ;;  %v8828_v57 = vld [vmem:[#allocation189_spill] sm:$0xff] }
 0x281   :  { %v6333_v4 = vpop.permute.xlu1 %2205  ;;  %v1820_v21 = vsel %vm1400_vm1, %v8821_v33, %v8820_v23  ;;  %v8829_v44 = vld [vmem:[#allocation141_spill] sm:$0xff]  ;;  %v8831_v23 = vld [vmem:[#allocation190_spill] sm:$0xff] }
 0x282   :  { %8814 = vst [vmem:[#allocation14_spill] sm:$0xff] %v6333_v4  ;;  %2527 = vrot.lane.b32.xlu1 %v1818_v10, %s4078_s23  ;;  %v6338_v51 = vpop.permute.xlu0 %2202  ;;  %v8824_v4 = vld [vmem:[#allocation140_spill] sm:$0xff]  ;;  %v8826_v10 = vld [vmem:[#allocation34_spill] sm:$0xff] }
 0x283   :  { %8817 = vst [vmem:[#allocation15_spill] sm:$0xff] %v6338_v51  ;;  %2525 = vrot.lane.b32.xlu0 %v1817_v63, %s4078_s23  ;;  %v1819_v16 = vsel %vm1399_vm3, %v8824_v4, %v8823_v17  ;;  %vm1402_vm4 = vcmp.eq.s32.totalorder %v8826_v10, 1  ;;  %v8827_v63 = vld [vmem:[#allocation35_spill] sm:$0xff]  ;;  %v8836_v10 = vld [vmem:[#allocation125_spill] sm:$0xff] }
 0x284   :  { %vm1401_vm5 = vcmp.eq.s32.totalorder %v8827_v63, 1  ;;  %v1822_v51 = vsel %vm1402_vm4, %v8829_v44, %v8828_v57  ;;  %v8837_v63 = vld [vmem:[#allocation40_spill] sm:$0xff]  ;;  %v8839_v57 = vld [vmem:[#allocation126_spill] sm:$0xff] }
 0x285   :  { %v6345_v55 = vpop.permute.xlu1 %2211 }
 0x286   :  { %8822 = vst [vmem:[#allocation99_spill] sm:$0xff] %v6345_v55  ;;  %2531 = vrot.lane.b32.xlu1 %v1820_v21, %s4078_s23  ;;  %v6350_v49 = vpop.permute.xlu0 %2208  ;;  %v8832_v55 = vld [vmem:[#allocation142_spill] sm:$0xff]  ;;  %v8834_v21 = vld [vmem:[#allocation36_spill] sm:$0xff] }
 0x287   :  { %8825 = vst [vmem:[#allocation16_spill] sm:$0xff] %v6350_v49  ;;  %2529 = vrot.lane.b32.xlu0 %v1819_v16, %s4078_s23  ;;  %v1821_v33 = vsel %vm1401_vm5, %v8832_v55, %v8831_v23  ;;  %vm1404_vm6 = vcmp.eq.s32.totalorder %v8834_v21, 1  ;;  %v8835_v16 = vld [vmem:[#allocation37_spill] sm:$0xff]  ;;  %v8844_v21 = vld [vmem:[#allocation131_spill] sm:$0xff] }
 0x288   :  { %vm1403_vm7 = vcmp.eq.s32.totalorder %v8835_v16, 1  ;;  %v1824_v49 = vsel %vm1404_vm6, %v8837_v63, %v8836_v10  ;;  %v8845_v16 = vld [vmem:[#allocation45_spill] sm:$0xff]  ;;  %v8847_v10 = vld [vmem:[#allocation132_spill] sm:$0xff] }
 0x289   :  { %v6357_v32 = vpop.permute.xlu1 %2217 }
 0x28a   :  { %8830 = vst [vmem:[#allocation17_spill] sm:$0xff] %v6357_v32  ;;  %2535 = vrot.lane.b32.xlu1 %v1822_v51, %s4078_s23  ;;  %v6362_v17 = vpop.permute.xlu0 %2214  ;;  %v8840_v32 = vld [vmem:[#allocation41_spill] sm:$0xff]  ;;  %v8842_v51 = vld [vmem:[#allocation38_spill] sm:$0xff] }
 0x28b   :  { %8833 = vst [vmem:[#allocation18_spill] sm:$0xff] %v6362_v17  ;;  %2533 = vrot.lane.b32.xlu0 %v1821_v33, %s4078_s23  ;;  %v1823_v44 = vsel %vm1403_vm7, %v8840_v32, %v8839_v57  ;;  %vm1406_vm8 = vcmp.eq.s32.totalorder %v8842_v51, 1  ;;  %v8843_v33 = vld [vmem:[#allocation39_spill] sm:$0xff]  ;;  %v8852_v51 = vld [vmem:[#allocation137_spill] sm:$0xff] }
 0x28c   :  { %vm1405_vm9 = vcmp.eq.s32.totalorder %v8843_v33, 1  ;;  %v1826_v17 = vsel %vm1406_vm8, %v8845_v16, %v8844_v21  ;;  %v8853_v33 = vld [vmem:[#allocation50_spill] sm:$0xff] }
 0x28d   :  { %v6369_v4 = vpop.permute.xlu1 %2223  ;;  %v8855_v21 = vld [vmem:[#allocation138_spill] sm:$0xff] }
 0x28e   :  { %8838 = vst [vmem:[#allocation19_spill] sm:$0xff] %v6369_v4  ;;  %2539 = vrot.lane.b32.xlu1 %v1824_v49, %s4078_s23  ;;  %v6374_v23 = vpop.permute.xlu0 %2220  ;;  %v8848_v4 = vld [vmem:[#allocation47_spill] sm:$0xff]  ;;  %v8850_v49 = vld [vmem:[#allocation42_spill] sm:$0xff] }
 0x28f   :  { %8841 = vst [vmem:[#allocation20_spill] sm:$0xff] %v6374_v23  ;;  %2537 = vrot.lane.b32.xlu0 %v1823_v44, %s4078_s23  ;;  %v1825_v63 = vsel %vm1405_vm9, %v8848_v4, %v8847_v10  ;;  %vm1408_vm10 = vcmp.eq.s32.totalorder %v8850_v49, 1  ;;  %v8851_v44 = vld [vmem:[#allocation43_spill] sm:$0xff] }
 0x290   :  { %vm1407_vm11 = vcmp.eq.s32.totalorder %v8851_v44, 1  ;;  %v1828_v23 = vsel %vm1408_vm10, %v8853_v33, %v8852_v51  ;;  %v8860_v49 = vld [vmem:[#allocation143_spill] sm:$0xff]  ;;  %v8863_v51 = vld [vmem:[#allocation144_spill] sm:$0xff] }
 0x291   :  { %v6381_v55 = vpop.permute.xlu1 %2229  ;;  %v8861_v44 = vld [vmem:[#allocation55_spill] sm:$0xff] }
 0x292   :  { %8846 = vst [vmem:[#allocation21_spill] sm:$0xff] %v6381_v55  ;;  %2543 = vrot.lane.b32.xlu1 %v1826_v17, %s4078_s23  ;;  %v6386_v57 = vpop.permute.xlu0 %2226  ;;  %v8856_v55 = vld [vmem:[#allocation51_spill] sm:$0xff]  ;;  %v8858_v17 = vld [vmem:[#allocation44_spill] sm:$0xff] }
 0x293   :  { %8849 = vst [vmem:[#allocation22_spill] sm:$0xff] %v6386_v57  ;;  %2541 = vrot.lane.b32.xlu0 %v1825_v63, %s4078_s23  ;;  %v1827_v16 = vsel %vm1407_vm11, %v8856_v55, %v8855_v21  ;;  %vm1410_vm2 = vcmp.eq.s32.totalorder %v8858_v17, 1  ;;  %v8859_v63 = vld [vmem:[#allocation46_spill] sm:$0xff]  ;;  %v8868_v17 = vld [vmem:[#allocation149_spill] sm:$0xff] }
 0x294   :  { %vm1409_vm12 = vcmp.eq.s32.totalorder %v8859_v63, 1  ;;  %v1830_v57 = vsel %vm1410_vm2, %v8861_v44, %v8860_v49  ;;  %v8869_v63 = vld [vmem:[#allocation62_spill] sm:$0xff] }
 0x295   :  { %v6393_v32 = vpop.permute.xlu1 %2235  ;;  %v8871_v49 = vld [vmem:[#allocation150_spill] sm:$0xff] }
 0x296   :  { %8854 = vst [vmem:[#allocation23_spill] sm:$0xff] %v6393_v32  ;;  %2547 = vrot.lane.b32.xlu1 %v1828_v23, %s4078_s23  ;;  %v6398_v10 = vpop.permute.xlu0 %2232  ;;  %v8864_v32 = vld [vmem:[#allocation56_spill] sm:$0xff] }
 0x297   :  { %8857 = vst [vmem:[#allocation118_spill] sm:$0xff] %v6398_v10  ;;  %2545 = vrot.lane.b32.xlu0 %v1827_v16, %s4078_s23  ;;  %v1829_v33 = vsel %vm1409_vm12, %v8864_v32, %v8863_v51  ;;  %v8866_v23 = vld [vmem:[#allocation48_spill] sm:$0xff]  ;;  %v8867_v16 = vld [vmem:[#allocation49_spill] sm:$0xff]  ;;  %vm2789_vm12 = vcmask 64512  }
 0x298   :  { %vm1412_vm13 = vcmp.eq.s32.totalorder %v8866_v23, 1  ;;  %vm1411_vm14 = vcmp.eq.s32.totalorder %v8867_v16, 1  ;;  %v8876_v23 = vld [vmem:[#allocation155_spill] sm:$0xff]  ;;  %v8877_v16 = vld [vmem:[#allocation69_spill] sm:$0xff] }
 0x299   :  { %v6405_v4 = vpop.permute.xlu1 %2241  ;;  %v1832_v10 = vsel %vm1412_vm13, %v8869_v63, %v8868_v17  ;;  %v8879_v17 = vld [vmem:[#allocation156_spill] sm:$0xff] }
 0x29a   :  { %8862 = vst [vmem:[#allocation24_spill] sm:$0xff] %v6405_v4  ;;  %2551 = vrot.lane.b32.xlu1 %v1830_v57, %s4078_s23  ;;  %v6410_v21 = vpop.permute.xlu0 %2238  ;;  %v8872_v4 = vld [vmem:[#allocation64_spill] sm:$0xff] }
 0x29b   :  { %8865 = vst [vmem:[#allocation25_spill] sm:$0xff] %v6410_v21  ;;  %2549 = vrot.lane.b32.xlu0 %v1829_v33, %s4078_s23  ;;  %v1831_v44 = vsel %vm1411_vm14, %v8872_v4, %v8871_v49  ;;  %v8874_v57 = vld [vmem:[#allocation52_spill] sm:$0xff]  ;;  %v8875_v33 = vld [vmem:[#allocation53_spill] sm:$0xff] }
 0x29c   :  { %vm1414_vm15 = vcmp.eq.s32.totalorder %v8874_v57, 1  ;;  %vm1413_vm0 = vcmp.eq.s32.totalorder %v8875_v33, 1  ;;  %v8884_v57 = vld [vmem:[#allocation159_spill] sm:$0xff] }
 0x29d   :  { %v6417_v55 = vpop.permute.xlu1 %2247  ;;  %v1834_v21 = vsel %vm1414_vm15, %v8877_v16, %v8876_v23  ;;  %v8885_v33 = vld [vmem:[#allocation75_spill] sm:$0xff]  ;;  %v8887_v23 = vld [vmem:[#allocation160_spill] sm:$0xff] }
 0x29e   :  { %8870 = vst [vmem:[#allocation177_spill] sm:$0xff] %v6417_v55  ;;  %2555 = vrot.lane.b32.xlu1 %v1832_v10, %s4078_s23  ;;  %v6422_v51 = vpop.permute.xlu0 %2244  ;;  %v8880_v55 = vld [vmem:[#allocation70_spill] sm:$0xff]  ;;  %v8882_v10 = vld [vmem:[#allocation57_spill] sm:$0xff] }
 0x29f   :  { %8873 = vst [vmem:[#allocation123_spill] sm:$0xff] %v6422_v51  ;;  %2553 = vrot.lane.b32.xlu0 %v1831_v44, %s4078_s23  ;;  %v1833_v63 = vsel %vm1413_vm0, %v8880_v55, %v8879_v17  ;;  %vm1416_vm1 = vcmp.eq.s32.totalorder %v8882_v10, 1  ;;  %v8883_v44 = vld [vmem:[#allocation58_spill] sm:$0xff]  ;;  %v8892_v10 = vld [vmem:[#allocation161_spill] sm:$0xff] }
 0x2a0   :  { %vm1415_vm3 = vcmp.eq.s32.totalorder %v8883_v44, 1  ;;  %v1836_v51 = vsel %vm1416_vm1, %v8885_v33, %v8884_v57  ;;  %v8893_v44 = vld [vmem:[#allocation82_spill] sm:$0xff] }
 0x2a1   :  { %v6429_v32 = vpop.permute.xlu1 %2253  ;;  %v8895_v57 = vld [vmem:[#allocation162_spill] sm:$0xff] }
 0x2a2   :  { %8878 = vst [vmem:[#allocation178_spill] sm:$0xff] %v6429_v32  ;;  %2559 = vrot.lane.b32.xlu1 %v1834_v21, %s4078_s23  ;;  %v6434_v49 = vpop.permute.xlu0 %2250  ;;  %v8888_v32 = vld [vmem:[#allocation76_spill] sm:$0xff]  ;;  %v8890_v21 = vld [vmem:[#allocation61_spill] sm:$0xff] }
 0x2a3   :  { %8881 = vst [vmem:[#allocation124_spill] sm:$0xff] %v6434_v49  ;;  %2557 = vrot.lane.b32.xlu0 %v1833_v63, %s4078_s23  ;;  %v1835_v16 = vsel %vm1415_vm3, %v8888_v32, %v8887_v23  ;;  %vm1418_vm4 = vcmp.eq.s32.totalorder %v8890_v21, 1  ;;  %v8891_v63 = vld [vmem:[#allocation63_spill] sm:$0xff] }
 0x2a4   :  { %vm1417_vm5 = vcmp.eq.s32.totalorder %v8891_v63, 1  ;;  %v1838_v49 = vsel %vm1418_vm4, %v8893_v44, %v8892_v10  ;;  %v8900_v21 = vld [vmem:[#allocation163_spill] sm:$0xff]  ;;  %v8901_v63 = vld [vmem:[#allocation89_spill] sm:$0xff]  ;;  %v8903_v10 = vld [vmem:[#allocation164_spill] sm:$0xff] }
 0x2a5   :  { %v6441_v4 = vpop.permute.xlu1 %2259 }
 0x2a6   :  { %8886 = vst [vmem:[#allocation26_spill] sm:$0xff] %v6441_v4  ;;  %2563 = vrot.lane.b32.xlu1 %v1836_v51, %s4078_s23  ;;  %v6446_v17 = vpop.permute.xlu0 %2256  ;;  %v8896_v4 = vld [vmem:[#allocation84_spill] sm:$0xff]  ;;  %v8898_v51 = vld [vmem:[#allocation67_spill] sm:$0xff] }
 0x2a7   :  { %8889 = vst [vmem:[#allocation27_spill] sm:$0xff] %v6446_v17  ;;  %2561 = vrot.lane.b32.xlu0 %v1835_v16, %s4078_s23  ;;  %v1837_v33 = vsel %vm1417_vm5, %v8896_v4, %v8895_v57  ;;  %vm1420_vm6 = vcmp.eq.s32.totalorder %v8898_v51, 1  ;;  %v8899_v16 = vld [vmem:[#allocation68_spill] sm:$0xff]  ;;  %v8908_v51 = vld [vmem:[#allocation165_spill] sm:$0xff] }
 0x2a8   :  { %vm1419_vm7 = vcmp.eq.s32.totalorder %v8899_v16, 1  ;;  %v1840_v17 = vsel %vm1420_vm6, %v8901_v63, %v8900_v21  ;;  %v8909_v16 = vld [vmem:[#allocation95_spill] sm:$0xff]  ;;  %v8911_v21 = vld [vmem:[#allocation166_spill] sm:$0xff] }
 0x2a9   :  { %v6453_v55 = vpop.permute.xlu1 %2265 }
 0x2aa   :  { %8894 = vst [vmem:[#allocation181_spill] sm:$0xff] %v6453_v55  ;;  %2567 = vrot.lane.b32.xlu1 %v1838_v49, %s4078_s23  ;;  %v6458_v23 = vpop.permute.xlu0 %2262  ;;  %v8904_v55 = vld [vmem:[#allocation90_spill] sm:$0xff]  ;;  %v8906_v49 = vld [vmem:[#allocation71_spill] sm:$0xff] }
 0x2ab   :  { %8897 = vst [vmem:[#allocation129_spill] sm:$0xff] %v6458_v23  ;;  %2565 = vrot.lane.b32.xlu0 %v1837_v33, %s4078_s23  ;;  %v1839_v44 = vsel %vm1419_vm7, %v8904_v55, %v8903_v10  ;;  %vm1422_vm8 = vcmp.eq.s32.totalorder %v8906_v49, 1  ;;  %v8907_v33 = vld [vmem:[#allocation73_spill] sm:$0xff]  ;;  %v8916_v49 = vld [vmem:[#allocation167_spill] sm:$0xff] }
 0x2ac   :  { %vm1421_vm9 = vcmp.eq.s32.totalorder %v8907_v33, 1  ;;  %v1842_v23 = vsel %vm1422_vm8, %v8909_v16, %v8908_v51  ;;  %v8917_v33 = vld [vmem:[#allocation101_spill] sm:$0xff]  ;;  %v8919_v51 = vld [vmem:[#allocation168_spill] sm:$0xff] }
 0x2ad   :  { %v6465_v32 = vpop.permute.xlu1 %2271 }
 0x2ae   :  { %8902 = vst [vmem:[#allocation182_spill] sm:$0xff] %v6465_v32  ;;  %2571 = vrot.lane.b32.xlu1 %v1840_v17, %s4078_s23  ;;  %v6470_v57 = vpop.permute.xlu0 %2268  ;;  %v8912_v32 = vld [vmem:[#allocation96_spill] sm:$0xff]  ;;  %v8914_v17 = vld [vmem:[#allocation77_spill] sm:$0xff] }
 0x2af   :  { %8905 = vst [vmem:[#allocation130_spill] sm:$0xff] %v6470_v57  ;;  %2569 = vrot.lane.b32.xlu0 %v1839_v44, %s4078_s23  ;;  %v1841_v63 = vsel %vm1421_vm9, %v8912_v32, %v8911_v21  ;;  %vm1424_vm10 = vcmp.eq.s32.totalorder %v8914_v17, 1  ;;  %v8915_v44 = vld [vmem:[#allocation78_spill] sm:$0xff]  ;;  %v8924_v17 = vld [vmem:[#allocation169_spill] sm:$0xff]  ;;  %v8928_v32 = vld [vmem:[#allocation107_spill] sm:$0xff] }
 0x2b0   :  { %vm1423_vm11 = vcmp.eq.s32.totalorder %v8915_v44, 1  ;;  %v1844_v57 = vsel %vm1424_vm10, %v8917_v33, %v8916_v49  ;;  %v8925_v44 = vld [vmem:[#allocation106_spill] sm:$0xff]  ;;  %v8926_v49 = vld [vmem:[#allocation201_spill] sm:$0xff] }
 0x2b1   :  { %v6477_v4 = vpop.permute.xlu1 %2277  ;;  %vm2286_vm14 = vcmp.eq.s32.totalorder %v8926_v49, 1  ;;  %v8927_v33 = vld [vmem:[#allocation170_spill] sm:$0xff]  ;;  %v8936_v49 = vld [vmem:[#allocation111_spill] sm:$0xff] }
 0x2b2   :  { %8910 = vst [vmem:[#allocation28_spill] sm:$0xff] %v6477_v4  ;;  %2575 = vrot.lane.b32.xlu1 %v1842_v23, %s4078_s23  ;;  %v6482_v10 = vpop.permute.xlu0 %2274  ;;  %v8920_v4 = vld [vmem:[#allocation103_spill] sm:$0xff]  ;;  %v8922_v23 = vld [vmem:[#allocation81_spill] sm:$0xff] }
 0x2b3   :  { %8913 = vst [vmem:[#allocation29_spill] sm:$0xff] %v6482_v10  ;;  %2573 = vrot.lane.b32.xlu0 %v1841_v63, %s4078_s23  ;;  %v1843_v16 = vsel %vm1423_vm11, %v8920_v4, %v8919_v51  ;;  %vm1426_vm2 = vcmp.eq.s32.totalorder %v8922_v23, 1  ;;  %v8923_v63 = vld [vmem:[#allocation83_spill] sm:$0xff]  ;;  %v8929_v4 = vld [vmem:[#allocation202_spill] sm:$0xff] }
 0x2b4   :  { %vm1425_vm13 = vcmp.eq.s32.totalorder %v8923_v63, 1  ;;  %v1846_v10 = vsel %vm1426_vm2, %v8925_v44, %v8924_v17  ;;  %vm2285_vm15 = vcmp.eq.s32.totalorder %v8929_v4, 1  ;;  %v8932_v4 = vld [vmem:[#allocation171_spill] sm:$0xff] }
 0x2b5   :  { %v6489_v55 = vpop.permute.xlu1 %2283  ;;  %v1845_v51 = vsel %vm1425_vm13, %v8928_v32, %v8927_v33  ;;  %v8930_v33 = vld [vmem:[#allocation87_spill] sm:$0xff] }
 0x2b6   :  { %8918 = vst [vmem:[#allocation183_spill] sm:$0xff] %v6489_v55  ;;  %2579 = vrot.lane.b32.xlu1 %v1844_v57, %s4078_s23  ;;  %v6494_v21 = vpop.permute.xlu0 %2280  ;;  %vm1428_vm0 = vcmp.eq.s32.totalorder %v8930_v33, 1  ;;  %v8934_v63 = vld [vmem:[#allocation203_spill] sm:$0xff] }
 0x2b7   :  { %8921 = vst [vmem:[#allocation133_spill] sm:$0xff] %v6494_v21  ;;  %2577 = vrot.lane.b32.xlu0 %v1843_v16, %s4078_s23  ;;  %vm2288_vm3 = vcmp.eq.s32.totalorder %v8934_v63, 1  ;;  %v8941_v63 = vld [vmem:[#allocation115_spill] sm:$0xff] }
 0x2b9   :  { %v2456_v55 = vpop.permute.xlu1 %2455 }
 0x2ba   :  { %v6506_v57 = vsel %vm2286_vm14, %v4912_v8, %v2456_v55  ;;  %2583 = vrot.lane.b32.xlu1 %v1846_v10, %s4078_s23  ;;  %v2454_v16 = vpop.permute.xlu0 %2453  ;;  %v8931_v8 = vld [vmem:[#allocation88_spill] sm:$0xff]  ;;  %v8933_v55 = vld [vmem:[#allocation110_spill] sm:$0xff] }
 0x2bb   :  { %2791 = vst.msk [vmem:[%s8345_s4 + $0x8] sm:$0xff] %vm2789_vm12, %v6506_v57  ;;  %v6515_v23 = vsel %vm2285_vm15, %v4915_v12, %v2454_v16  ;;  %2581 = vrot.lane.b32.xlu0 %v1845_v51, %s4078_s23  ;;  %vm1427_vm1 = vcmp.eq.s32.totalorder %v8931_v8, 1  ;;  %v1848_v10 = vsel %vm1428_vm0, %v8933_v55, %v8932_v4  ;;  %v8935_v12 = vld [vmem:[#allocation172_spill] sm:$0xff]  ;;  %v8938_v4 = vld [vmem:[#allocation91_spill] sm:$0xff] }
 0x2bc   :  { %2790 = vst.msk [vmem:[%s8345_s4] sm:$0xff] %vm2789_vm12, %v6515_v23  ;;  %v1847_v16 = vsel %vm1427_vm1, %v8936_v49, %v8935_v12  ;;  %v8937_v51 = vld [vmem:[#allocation204_spill] sm:$0xff]  ;;  %vm1430_vm5 = vcmp.eq.s32.totalorder %v8938_v4, 1  ;;  %v8942_v12 = vld [vmem:[#allocation205_spill] sm:$0xff] }
 0x2bd   :  { %v2460_v17 = vpop.permute.xlu1 %2459  ;;  %vm2287_vm4 = vcmp.eq.s32.totalorder %v8937_v51, 1  ;;  %vm2290_vm7 = vcmp.eq.s32.totalorder %v8942_v12, 1  ;;  %v8949_v12 = vld [vmem:[#allocation121_spill] sm:$0xff] }
 0x2be   :  { %v6532_v33 = vsel %vm2288_vm3, %v4934_v26, %v2460_v17  ;;  %2587 = vrot.lane.b32.xlu1 %v1848_v10, %s4078_s23  ;;  %v2458_v21 = vpop.permute.xlu0 %2457  ;;  %v8939_v26 = vld [vmem:[#allocation93_spill] sm:$0xff] }
 0x2bf   :  { %2793 = vst.msk [vmem:[%s8345_s4 + $0x18] sm:$0xff] %vm2789_vm12, %v6532_v33  ;;  %v6541_v8 = vsel %vm2287_vm4, %v4937_v30, %v2458_v21  ;;  %2585 = vrot.lane.b32.xlu0 %v1847_v16, %s4078_s23  ;;  %vm1429_vm6 = vcmp.eq.s32.totalorder %v8939_v26, 1  ;;  %v8940_v10 = vld [vmem:[#allocation173_spill] sm:$0xff]  ;;  %v8943_v30 = vld [vmem:[#allocation174_spill] sm:$0xff] }
 0x2c0   :  { %2792 = vst.msk [vmem:[%s8345_s4 + $0x10] sm:$0xff] %vm2789_vm12, %v6541_v8  ;;  %v1850_v17 = vsel %vm1430_vm5, %v8941_v63, %v8940_v10  ;;  %v8944_v21 = vld [vmem:[#allocation117_spill] sm:$0xff]  ;;  %v8945_v16 = vld [vmem:[#allocation206_spill] sm:$0xff] }
 0x2c1   :  { %v2464_v51 = vpop.permute.xlu1 %2463  ;;  %v1849_v49 = vsel %vm1429_vm6, %v8944_v21, %v8943_v30  ;;  %vm2289_vm8 = vcmp.eq.s32.totalorder %v8945_v16, 1  ;;  %v8946_v10 = vld [vmem:[#allocation97_spill] sm:$0xff]  ;;  %v8950_v30 = vld [vmem:[#allocation207_spill] sm:$0xff] }
 0x2c2   :  { %v6558_v4 = vsel %vm2290_vm7, %v4958_v25, %v2464_v51  ;;  %2591 = vrot.lane.b32.xlu1 %v1850_v17, %s4078_s23  ;;  %v2462_v55 = vpop.permute.xlu0 %2461  ;;  %vm1432_vm9 = vcmp.eq.s32.totalorder %v8946_v10, 1  ;;  %v8947_v25 = vld [vmem:[#allocation98_spill] sm:$0xff]  ;;  %v8948_v17 = vld [vmem:[#allocation175_spill] sm:$0xff]  ;;  %vm2292_vm11 = vcmp.eq.s32.totalorder %v8950_v30, 1 }
 0x2c3   :  { %2795 = vst.msk [vmem:[%s8345_s4 + $0x28] sm:$0xff] %vm2789_vm12, %v6558_v4  ;;  %v6567_v26 = vsel %vm2289_vm8, %v4961_v18, %v2462_v55  ;;  %2589 = vrot.lane.b32.xlu0 %v1849_v49, %s4078_s23  ;;  %vm1431_vm10 = vcmp.eq.s32.totalorder %v8947_v25, 1  ;;  %v1852_v51 = vsel %vm1432_vm9, %v8949_v12, %v8948_v17  ;;  %v8951_v18 = vld [vmem:[#allocation176_spill] sm:$0xff]  ;;  %v8952_v55 = vld [vmem:[#allocation122_spill] sm:$0xff]  ;;  %v8957_v30 = vld [vmem:[#allocation127_spill] sm:$0xff] }
 0x2c4   :  { %2794 = vst.msk [vmem:[%s8345_s4 + $0x20] sm:$0xff] %vm2789_vm12, %v6567_v26  ;;  %v1851_v21 = vsel %vm1431_vm10, %v8952_v55, %v8951_v18  ;;  %v8953_v49 = vld [vmem:[#allocation208_spill] sm:$0xff]  ;;  %v8958_v18 = vld [vmem:[#allocation209_spill] sm:$0xff] }
 0x2c5   :  { %v2468_v16 = vpop.permute.xlu1 %2467  ;;  %vm2291_vm2 = vcmp.eq.s32.totalorder %v8953_v49, 1  ;;  %v8954_v17 = vld [vmem:[#allocation100_spill] sm:$0xff]  ;;  %vm2294_vm15 = vcmp.eq.s32.totalorder %v8958_v18, 1  ;;  %v8965_v18 = vld [vmem:[#allocation145_spill] sm:$0xff] }
 0x2c6   :  { %v6584_v10 = vsel %vm2292_vm11, %v4984_v13, %v2468_v16  ;;  %2595 = vrot.lane.b32.xlu1 %v1852_v51, %s4078_s23  ;;  %v2466_v63 = vpop.permute.xlu0 %2465  ;;  %vm1434_vm13 = vcmp.eq.s32.totalorder %v8954_v17, 1  ;;  %v8955_v13 = vld [vmem:[#allocation102_spill] sm:$0xff]  ;;  %v8956_v51 = vld [vmem:[#allocation179_spill] sm:$0xff] }
 0x2c7   :  { %2797 = vst.msk [vmem:[%s8345_s4 + $0x38] sm:$0xff] %vm2789_vm12, %v6584_v10  ;;  %v6593_v25 = vsel %vm2291_vm2, %v8730_v15, %v2466_v63  ;;  %2593 = vrot.lane.b32.xlu0 %v1851_v21, %s4078_s23  ;;  %vm1433_vm14 = vcmp.eq.s32.totalorder %v8955_v13, 1  ;;  %v1854_v16 = vsel %vm1434_vm13, %v8957_v30, %v8956_v51  ;;  %v8959_v15 = vld [vmem:[#allocation180_spill] sm:$0xff]  ;;  %v8961_v21 = vld [vmem:[#allocation210_spill] sm:$0xff] }
 0x2c8   :  { %2796 = vst.msk [vmem:[%s8345_s4 + $0x30] sm:$0xff] %vm2789_vm12, %v6593_v25  ;;  %v8960_v63 = vld [vmem:[#allocation128_spill] sm:$0xff]  ;;  %vm2293_vm0 = vcmp.eq.s32.totalorder %v8961_v21, 1 }
 0x2c9   :  { %v2472_v49 = vpop.permute.xlu1 %2471  ;;  %v1853_v55 = vsel %vm1433_vm14, %v8960_v63, %v8959_v15  ;;  %v8962_v51 = vld [vmem:[#allocation104_spill] sm:$0xff]  ;;  %v8966_v15 = vld [vmem:[#allocation211_spill] sm:$0xff] }
 0x2ca   :  { %v6610_v17 = vsel %vm2294_vm15, %v8733_v60, %v2472_v49  ;;  %2599 = vrot.lane.b32.xlu1 %v1854_v16, %s4078_s23  ;;  %v2470_v12 = vpop.permute.xlu0 %2469  ;;  %vm1436_vm1 = vcmp.eq.s32.totalorder %v8962_v51, 1  ;;  %v8963_v60 = vld [vmem:[#allocation105_spill] sm:$0xff]  ;;  %v8964_v16 = vld [vmem:[#allocation191_spill] sm:$0xff]  ;;  %vm2296_vm4 = vcmp.eq.s32.totalorder %v8966_v15, 1 }
 0x2cb   :  { %2799 = vst.msk [vmem:[%s8345_s4 + $0x48] sm:$0xff] %vm2789_vm12, %v6610_v17  ;;  %v6619_v13 = vsel %vm2293_vm0, %v8734_v52, %v2470_v12  ;;  %2597 = vrot.lane.b32.xlu0 %v1853_v55, %s4078_s23  ;;  %vm1435_vm3 = vcmp.eq.s32.totalorder %v8963_v60, 1  ;;  %v1856_v49 = vsel %vm1436_vm1, %v8965_v18, %v8964_v16  ;;  %v8967_v52 = vld [vmem:[#allocation192_spill] sm:$0xff]  ;;  %v8968_v12 = vld [vmem:[#allocation146_spill] sm:$0xff]  ;;  %v8973_v15 = vld [vmem:[#allocation147_spill] sm:$0xff]  ;;  %vm2302_vm0 = vcmp.eq.s32.totalorder %v6100_v38, 1 }
 0x2cc   :  { %2798 = vst.msk [vmem:[%s8345_s4 + $0x40] sm:$0xff] %vm2789_vm12, %v6619_v13  ;;  %v1855_v63 = vsel %vm1435_vm3, %v8968_v12, %v8967_v52  ;;  %v8969_v55 = vld [vmem:[#allocation212_spill] sm:$0xff]  ;;  %v8974_v52 = vld [vmem:[#allocation213_spill] sm:$0xff]  ;;  %vm2301_vm1 = vcmp.eq.s32.totalorder %v6105_v3, 1 }
 0x2cd   :  { %v2476_v21 = vpop.permute.xlu1 %2475  ;;  %vm2295_vm5 = vcmp.eq.s32.totalorder %v8969_v55, 1  ;;  %v8970_v16 = vld [vmem:[#allocation108_spill] sm:$0xff]  ;;  %vm2298_vm8 = vcmp.eq.s32.totalorder %v8974_v52, 1  ;;  %v8981_v52 = vld [vmem:[#allocation151_spill] sm:$0xff] }
 0x2ce   :  { %v6636_v51 = vsel %vm2296_vm4, %v8737_v42, %v2476_v21  ;;  %2603 = vrot.lane.b32.xlu1 %v1856_v49, %s4078_s23  ;;  %v2474_v30 = vpop.permute.xlu0 %2473  ;;  %vm1438_vm6 = vcmp.eq.s32.totalorder %v8970_v16, 1  ;;  %v8971_v42 = vld [vmem:[#allocation109_spill] sm:$0xff]  ;;  %v8993_v3 = vld [vmem:[#allocation120_spill] sm:$0xff] }
 0x2cf   :  { %2801 = vst.msk [vmem:[%s8345_s4 + $0x58] sm:$0xff] %vm2789_vm12, %v6636_v51  ;;  %v6645_v60 = vsel %vm2295_vm5, %v8738_v46, %v2474_v30  ;;  %2601 = vrot.lane.b32.xlu0 %v1855_v63, %s4078_s23  ;;  %vm1437_vm7 = vcmp.eq.s32.totalorder %v8971_v42, 1  ;;  %v8972_v49 = vld [vmem:[#allocation193_spill] sm:$0xff]  ;;  %v8975_v46 = vld [vmem:[#allocation194_spill] sm:$0xff]  ;;  %v8976_v30 = vld [vmem:[#allocation148_spill] sm:$0xff]  ;;  %vm1443_vm4 = vcmp.eq.s32.totalorder %v8993_v3, 1 }
 0x2d0   :  { %2800 = vst.msk [vmem:[%s8345_s4 + $0x50] sm:$0xff] %vm2789_vm12, %v6645_v60  ;;  %v1858_v21 = vsel %vm1438_vm6, %v8973_v15, %v8972_v49  ;;  %v1857_v12 = vsel %vm1437_vm7, %v8976_v30, %v8975_v46  ;;  %v8977_v63 = vld [vmem:[#allocation214_spill] sm:$0xff]  ;;  %v8978_v49 = vld [vmem:[#allocation112_spill] sm:$0xff]  ;;  %v8982_v46 = vld [vmem:[#allocation215_spill] sm:$0xff]  ;;  %vm2304_vm5 = vcmp.eq.s32.totalorder %v6109_v22, 1  ;;  %vm2303_vm6 = vcmp.eq.s32.totalorder %v6111_v53, 1 }
 0x2d1   :  { %v2480_v55 = vpop.permute.xlu1 %2479  ;;  %vm2297_vm9 = vcmp.eq.s32.totalorder %v8977_v63, 1  ;;  %vm1440_vm10 = vcmp.eq.s32.totalorder %v8978_v49, 1  ;;  %vm2300_vm2 = vcmp.eq.s32.totalorder %v8982_v46, 1  ;;  %v8989_v46 = vld [vmem:[#allocation153_spill] sm:$0xff]  ;;  %vm2306_vm7 = vcmp.eq.s32.totalorder %v6117_v20, 1 }
 0x2d2   :  { %v6662_v16 = vsel %vm2298_vm8, %v8742_v62, %v2480_v55  ;;  %2607 = vrot.lane.b32.xlu1 %v1858_v21, %s4078_s23  ;;  %v2478_v18 = vpop.permute.xlu0 %2477  ;;  %v8979_v62 = vld [vmem:[#allocation113_spill] sm:$0xff]  ;;  %v8980_v21 = vld [vmem:[#allocation195_spill] sm:$0xff]  ;;  %vm2305_vm8 = vcmp.eq.s32.totalorder %v6122_v2, 1 }
 0x2d3   :  { %2803 = vst.msk [vmem:[%s8345_s4 + $0x68] sm:$0xff] %vm2789_vm12, %v6662_v16  ;;  %v6671_v42 = vsel %vm2297_vm9, %v8744_v29, %v2478_v18  ;;  %2605 = vrot.lane.b32.xlu0 %v1857_v12, %s4078_s23  ;;  %vm1439_vm11 = vcmp.eq.s32.totalorder %v8979_v62, 1  ;;  %v1860_v55 = vsel %vm1440_vm10, %v8981_v52, %v8980_v21  ;;  %v8983_v29 = vld [vmem:[#allocation196_spill] sm:$0xff]  ;;  %v8986_v21 = vld [vmem:[#allocation114_spill] sm:$0xff]  ;;  %vm2308_vm9 = vcmp.eq.s32.totalorder %v6129_v50, 1 }
 0x2d4   :  { %2802 = vst.msk [vmem:[%s8345_s4 + $0x60] sm:$0xff] %vm2789_vm12, %v6671_v42  ;;  %v8984_v18 = vld [vmem:[#allocation152_spill] sm:$0xff]  ;;  %vm1442_vm14 = vcmp.eq.s32.totalorder %v8986_v21, 1  ;;  %vm2307_vm10 = vcmp.eq.s32.totalorder %v6134_v1, 1 }
 0x2d5   :  { %v2484_v63 = vpop.permute.xlu1 %2483  ;;  %v1859_v30 = vsel %vm1439_vm11, %v8984_v18, %v8983_v29  ;;  %v8985_v12 = vld [vmem:[#allocation216_spill] sm:$0xff]  ;;  %vm2310_vm11 = vcmp.eq.s32.totalorder %v6141_v48, 1 }
 0x2d6   :  { %vm2299_vm13 = vcmp.eq.s32.totalorder %v8985_v12, 1  ;;  %v6688_v49 = vsel %vm2300_vm2, %v8748_v28, %v2484_v63  ;;  %2611 = vrot.lane.b32.xlu1 %v1860_v55, %s4078_s23  ;;  %v2482_v15 = vpop.permute.xlu0 %2481  ;;  %v8987_v28 = vld [vmem:[#allocation116_spill] sm:$0xff]  ;;  %v8988_v55 = vld [vmem:[#allocation197_spill] sm:$0xff]  ;;  %vm2309_vm2 = vcmp.eq.s32.totalorder %v6146_v61, 1 }
 0x2d7   :  { %2805 = vst.msk [vmem:[%s8345_s4 + $0x78] sm:$0xff] %vm2789_vm12, %v6688_v49  ;;  %v6697_v62 = vsel %vm2299_vm13, %v8750_v27, %v2482_v15  ;;  %2609 = vrot.lane.b32.xlu0 %v1859_v30, %s4078_s23  ;;  %vm1441_vm15 = vcmp.eq.s32.totalorder %v8987_v28, 1  ;;  %v1862_v63 = vsel %vm1442_vm14, %v8989_v46, %v8988_v55  ;;  %v8990_v27 = vld [vmem:[#allocation198_spill] sm:$0xff]  ;;  %v8992_v28 = vld [vmem:[#allocation119_spill] sm:$0xff]  ;;  %v8995_v55 = vld [vmem:[#allocation157_spill] sm:$0xff]  ;;  %vm2312_vm13 = vcmp.eq.s32.totalorder %v6153_v56, 1 }
 0x2d8   :  { %2804 = vst.msk [vmem:[%s8345_s4 + $0x70] sm:$0xff] %vm2789_vm12, %v6697_v62  ;;  %v8991_v15 = vld [vmem:[#allocation154_spill] sm:$0xff]  ;;  %vm1444_vm3 = vcmp.eq.s32.totalorder %v8992_v28, 1  ;;  %vm2311_vm14 = vcmp.eq.s32.totalorder %v6158_v24, 1 }
 0x2d9   :  { %v2488_v29 = vpop.permute.xlu1 %2487  ;;  %v1861_v12 = vsel %vm1441_vm15, %v8991_v15, %v8990_v27  ;;  %v8997_v27 = vld [vmem:[#allocation158_spill] sm:$0xff]  ;;  %vm2314_vm15 = vcmp.eq.s32.totalorder %v6165_v14, 1 }
 0x2da   :  { %v6714_v30 = vsel %vm2302_vm0, %v8754_v34, %v2488_v29  ;;  %2615 = vrot.lane.b32.xlu1 %v1862_v63, %s4078_s23  ;;  %v2486_v21 = vpop.permute.xlu0 %2485  ;;  %v8994_v34 = vld [vmem:[#allocation199_spill] sm:$0xff]  ;;  %vm2313_vm0 = vcmp.eq.s32.totalorder %v6170_v43, 1  ;;  %v9000_v14 = vld [vmem:[#allocation54_spill] sm:$0xff] }
 0x2db   :  { %2807 = vst.msk [vmem:[%s8345_s4 + $0x88] sm:$0xff] %vm2789_vm12, %v6714_v30  ;;  %v6723_v38 = vsel %vm2301_vm1, %v8756_v7, %v2486_v21  ;;  %2613 = vrot.lane.b32.xlu0 %v1861_v12, %s4078_s23  ;;  %v1864_v63 = vsel %vm1444_vm3, %v8995_v55, %v8994_v34  ;;  %v8996_v7 = vld [vmem:[#allocation200_spill] sm:$0xff]  ;;  %vm2316_vm1 = vcmp.eq.s32.totalorder %v6177_v54, 1  ;;  %vm2315_vm3 = vcmp.eq.s32.totalorder %v9000_v14, 1  ;;  %v9003_v54 = vld [vmem:[#allocation2_spill] sm:$0xff] }
 0x2dc   :  { %2806 = vst.msk [vmem:[%s8345_s4 + $0x80] sm:$0xff] %vm2789_vm12, %v6723_v38  ;;  %v1863_v21 = vsel %vm1443_vm4, %v8997_v27, %v8996_v7  ;;  %vm2318_vm4 = vcmp.eq.s32.totalorder %v9003_v54, 1  ;;  %v9020_v54 = vld [vmem:[#allocation139_spill] sm:$0xff] }
 0x2dd   :  { %v2492_v29 = vpop.permute.xlu1 %2491 }
 0x2de   :  { %v6740_v12 = vsel %vm2304_vm5, %v8760_v35, %v2492_v29  ;;  %2619 = vrot.lane.b32.xlu1 %v1864_v63, %s4078_s23  ;;  %v2490_v28 = vpop.permute.xlu0 %2489  ;;  %v9004_v63 = vld [vmem:[#allocation3_spill] sm:$0xff] }
 0x2df   :  { %2809 = vst.msk [vmem:[%s8345_s4 + $0x98] sm:$0xff] %vm2789_vm12, %v6740_v12  ;;  %v6749_v22 = vsel %vm2303_vm6, %v8762_v5, %v2490_v28  ;;  %2617 = vrot.lane.b32.xlu0 %v1863_v21, %s4078_s23  ;;  %vm2317_vm5 = vcmp.eq.s32.totalorder %v9004_v63, 1  ;;  %v9008_v28 = vld [vmem:[#allocation60_spill] sm:$0xff] }
 0x2e0   :  { %2808 = vst.msk [vmem:[%s8345_s4 + $0x90] sm:$0xff] %vm2789_vm12, %v6749_v22 }
 0x2e1   :  { %v2496_v53 = vpop.permute.xlu1 %2495 }
 0x2e2   :  { %v6760_v35 = vsel %vm2306_vm7, %v5271_v41, %v2496_v53  ;;  %2960 = vrot.lane.b32.xlu1 %v6506_v57, %s4079_s21  ;;  %v2494_v5 = vpop.permute.xlu0 %2493  ;;  %vm2319_vm7 = vcmp.eq.s32.totalorder %v9008_v28, 1 }
 0x2e3   :  { %2811 = vst.msk [vmem:[%s8345_s4 + $0xa8] sm:$0xff] %vm2789_vm12, %v6760_v35  ;;  %v6770_v3 = vsel %vm2305_vm8, %v8767_v58, %v2494_v5  ;;  %2958 = vrot.lane.b32.xlu0 %v6515_v23, %s4079_s21  ;;  %v9010_v5 = vld [vmem:[#allocation134_spill] sm:$0xff] }
 0x2e4   :  { %2810 = vst.msk [vmem:[%s8345_s4 + $0xa0] sm:$0xff] %vm2789_vm12, %v6770_v3 }
 0x2e5   :  { %v2500_v41 = vpop.permute.xlu1 %2499 }
 0x2e6   :  { %v6782_v20 = vsel %vm2308_vm9, %v5309_v59, %v2500_v41  ;;  %2964 = vrot.lane.b32.xlu1 %v6532_v33, %s4079_s21  ;;  %v2498_v2 = vpop.permute.xlu0 %2497 }
 0x2e7   :  { %2813 = vst.msk [vmem:[%s8345_s4 + $0xb8] sm:$0xff] %vm2789_vm12, %v6782_v20  ;;  %v6792_v58 = vsel %vm2307_vm10, %v5313_v45, %v2498_v2  ;;  %2962 = vrot.lane.b32.xlu0 %v6541_v8, %s4079_s21 }
 0x2e8   :  { %2812 = vst.msk [vmem:[%s8345_s4 + $0xb0] sm:$0xff] %vm2789_vm12, %v6792_v58 }
 0x2e9   :  { %v2504_v59 = vpop.permute.xlu1 %2503 }
 0x2ea   :  { %v6804_v50 = vsel %vm2310_vm11, %v5339_v0, %v2504_v59  ;;  %2968 = vrot.lane.b32.xlu1 %v6558_v4, %s4079_s21  ;;  %v2502_v45 = vpop.permute.xlu0 %2501  ;;  %v9013_v59 = vld [vmem:[#allocation5_spill] sm:$0xff] }
 0x2eb   :  { %2815 = vst.msk [vmem:[%s8345_s4 + $0xc8] sm:$0xff] %vm2789_vm12, %v6804_v50  ;;  %v6814_v1 = vsel %vm2309_vm2, %v5345_v19, %v2502_v45  ;;  %2966 = vrot.lane.b32.xlu0 %v6567_v26, %s4079_s21  ;;  %vm2321_vm9 = vcmp.eq.s32.totalorder %v9013_v59, 1  ;;  %v9014_v45 = vld [vmem:[#allocation135_spill] sm:$0xff]  ;;  %v9028_v59 = vld [vmem:[#allocation142_spill] sm:$0xff] }
 0x2ec   :  { %2814 = vst.msk [vmem:[%s8345_s4 + $0xc0] sm:$0xff] %vm2789_vm12, %v6814_v1 }
 0x2ed   :  { %v2508_v0 = vpop.permute.xlu1 %2507 }
 0x2ee   :  { %v6826_v48 = vsel %vm2312_vm13, %v5369_v36, %v2508_v0  ;;  %2972 = vrot.lane.b32.xlu1 %v6584_v10, %s4079_s21  ;;  %v2506_v19 = vpop.permute.xlu0 %2505 }
 0x2ef   :  { %2817 = vst.msk [vmem:[%s8345_s4 + $0xd8] sm:$0xff] %vm2789_vm12, %v6826_v48  ;;  %v6836_v61 = vsel %vm2311_vm14, %v5373_v37, %v2506_v19  ;;  %2970 = vrot.lane.b32.xlu0 %v6593_v25, %s4079_s21 }
 0x2f0   :  { %2816 = vst.msk [vmem:[%s8345_s4 + $0xd0] sm:$0xff] %vm2789_vm12, %v6836_v61 }
 0x2f1   :  { %v2512_v36 = vpop.permute.xlu1 %2511 }
 0x2f2   :  { %v6848_v56 = vsel %vm2314_vm15, %v5397_v31, %v2512_v36  ;;  %2976 = vrot.lane.b32.xlu1 %v6610_v17, %s4079_s21  ;;  %v2510_v37 = vpop.permute.xlu0 %2509  ;;  %v9016_v36 = vld [vmem:[#allocation136_spill] sm:$0xff] }
 0x2f3   :  { %8998 = vst [vmem:[#allocation184_spill] sm:$0xff] %v6848_v56  ;;  %2819 = vst.msk [vmem:[%s8345_s4 + $0xe8] sm:$0xff] %vm2789_vm12, %v6848_v56  ;;  %v6858_v24 = vsel %vm2313_vm0, %v8784_v40, %v2510_v37  ;;  %2974 = vrot.lane.b32.xlu0 %v6619_v13, %s4079_s21 }
 0x2f4   :  { %8999 = vst [vmem:[#allocation30_spill] sm:$0xff] %v6858_v24  ;;  %2818 = vst.msk [vmem:[%s8345_s4 + $0xe0] sm:$0xff] %vm2789_vm12, %v6858_v24 }
 0x2f5   :  { %v2516_v31 = vpop.permute.xlu1 %2515 }
 0x2f6   :  { %v6870_v43 = vsel %vm2316_vm1, %v8789_v39, %v2516_v31  ;;  %2980 = vrot.lane.b32.xlu1 %v6636_v51, %s4079_s21  ;;  %v2514_v40 = vpop.permute.xlu0 %2513  ;;  %v9018_v31 = vld [vmem:[#allocation65_spill] sm:$0xff] }
 0x2f7   :  { %9001 = vst [vmem:[#allocation31_spill] sm:$0xff] %v6870_v43  ;;  %2821 = vst.msk [vmem:[%s8345_s4 + $0xf8] sm:$0xff] %vm2789_vm12, %v6870_v43  ;;  %v6880_v34 = vsel %vm2315_vm3, %v8792_v11, %v2514_v40  ;;  %2978 = vrot.lane.b32.xlu0 %v6645_v60, %s4079_s21  ;;  %vm2324_vm10 = vcmp.eq.s32.totalorder %v9018_v31, 1  ;;  %v9019_v40 = vld [vmem:[#allocation66_spill] sm:$0xff] }
 0x2f8   :  { %9002 = vst [vmem:[#allocation185_spill] sm:$0xff] %v6880_v34  ;;  %2820 = vst.msk [vmem:[%s8345_s4 + $0xf0] sm:$0xff] %vm2789_vm12, %v6880_v34  ;;  %vm2323_vm11 = vcmp.eq.s32.totalorder %v9019_v40, 1  ;;  %v9031_v31 = vld [vmem:[#allocation74_spill] sm:$0xff] }
 0x2f9   :  { %v2520_v39 = vpop.permute.xlu1 %2519  ;;  %vm2327_vm15 = vcmp.eq.s32.totalorder %v9031_v31, 1  ;;  %v9040_v31 = vld [vmem:[#allocation79_spill] sm:$0xff] }
 0x2fa   :  { %v6892_v29 = vsel %vm2318_vm4, %v8797_v47, %v2520_v39  ;;  %2984 = vrot.lane.b32.xlu1 %v6662_v16, %s4079_s21  ;;  %v2518_v11 = vpop.permute.xlu0 %2517  ;;  %v9007_v47 = vld [vmem:[#allocation59_spill] sm:$0xff]  ;;  %vm2332_vm3 = vcmp.eq.s32.totalorder %v9040_v31, 1 }
 0x2fb   :  { %9005 = vst [vmem:[#allocation186_spill] sm:$0xff] %v6892_v29  ;;  %2823 = vst.msk [vmem:[%s8345_s4 + $0x108] sm:$0xff] %vm2789_vm12, %v6892_v29  ;;  %v6902_v7 = vsel %vm2317_vm5, %v8800_v9, %v2518_v11  ;;  %2982 = vrot.lane.b32.xlu0 %v6671_v42, %s4079_s21  ;;  %vm2320_vm6 = vcmp.eq.s32.totalorder %v9007_v47, 1  ;;  %v9022_v11 = vld [vmem:[#allocation140_spill] sm:$0xff]  ;;  %v9047_v31 = vld [vmem:[#allocation11_spill] sm:$0xff] }
 0x2fc   :  { %9006 = vst [vmem:[#allocation32_spill] sm:$0xff] %v6902_v7  ;;  %2822 = vst.msk [vmem:[%s8345_s4 + $0x100] sm:$0xff] %vm2789_vm12, %v6902_v7 }
 0x2fd   :  { %v2524_v21 = vpop.permute.xlu1 %2523 }
 0x2fe   :  { %v6914_v53 = vsel %vm2320_vm6, %v8805_v6, %v2524_v21  ;;  %2988 = vrot.lane.b32.xlu1 %v6688_v49, %s4079_s21  ;;  %v2522_v9 = vpop.permute.xlu0 %2521  ;;  %v9012_v6 = vld [vmem:[#allocation4_spill] sm:$0xff]  ;;  %v9024_v21 = vld [vmem:[#allocation6_spill] sm:$0xff]  ;;  %vm2333_vm6 = vcmp.eq.s32.totalorder %v9047_v31, 1 }
 0x2ff   :  { %9009 = vst [vmem:[#allocation33_spill] sm:$0xff] %v6914_v53  ;;  %2825 = vst.msk [vmem:[%s8345_s4 + $0x118] sm:$0xff] %vm2789_vm12, %v6914_v53  ;;  %v6924_v41 = vsel %vm2319_vm7, %v9010_v5, %v2522_v9  ;;  %2986 = vrot.lane.b32.xlu0 %v6697_v62, %s4079_s21  ;;  %vm2322_vm8 = vcmp.eq.s32.totalorder %v9012_v6, 1  ;;  %vm2326_vm2 = vcmp.eq.s32.totalorder %v9024_v21, 1  ;;  %v9025_v9 = vld [vmem:[#allocation7_spill] sm:$0xff]  ;;  %v9026_v5 = vld [vmem:[#allocation141_spill] sm:$0xff] }
 0x300   :  { %9011 = vst [vmem:[#allocation187_spill] sm:$0xff] %v6924_v41  ;;  %2824 = vst.msk [vmem:[%s8345_s4 + $0x110] sm:$0xff] %vm2789_vm12, %v6924_v41  ;;  %vm2325_vm13 = vcmp.eq.s32.totalorder %v9025_v9, 1  ;;  %v9034_v21 = vld [vmem:[#allocation8_spill] sm:$0xff]  ;;  %v9035_v9 = vld [vmem:[#allocation9_spill] sm:$0xff] }
 0x301   :  { %v2528_v2 = vpop.permute.xlu1 %2527  ;;  %vm2330_vm0 = vcmp.eq.s32.totalorder %v9034_v21, 1  ;;  %vm2329_vm1 = vcmp.eq.s32.totalorder %v9035_v9, 1  ;;  %v9044_v9 = vld [vmem:[#allocation51_spill] sm:$0xff]  ;;  %v9053_v31 = vld [vmem:[#allocation86_spill] sm:$0xff] }
 0x302   :  { %v6936_v0 = vsel %vm2322_vm8, %v9014_v45, %v2528_v2  ;;  %2992 = vrot.lane.b32.xlu1 %v6714_v30, %s4079_s21  ;;  %v2526_v19 = vpop.permute.xlu0 %2525  ;;  %vm2335_vm8 = vcmp.eq.s32.totalorder %v9053_v31, 1  ;;  %v9059_v31 = vld [vmem:[#allocation13_spill] sm:$0xff] }
 0x303   :  { %9015 = vst [vmem:[#allocation188_spill] sm:$0xff] %v6936_v0  ;;  %2827 = vst.msk [vmem:[%s8345_s4 + $0x128] sm:$0xff] %vm2789_vm12, %v6936_v0  ;;  %v6946_v37 = vsel %vm2321_vm9, %v9016_v36, %v2526_v19  ;;  %2990 = vrot.lane.b32.xlu0 %v6723_v38, %s4079_s21  ;;  %v9030_v19 = vld [vmem:[#allocation72_spill] sm:$0xff] }
 0x304   :  { %9017 = vst [vmem:[#allocation34_spill] sm:$0xff] %v6946_v37  ;;  %2826 = vst.msk [vmem:[%s8345_s4 + $0x120] sm:$0xff] %vm2789_vm12, %v6946_v37  ;;  %vm2328_vm14 = vcmp.eq.s32.totalorder %v9030_v19, 1  ;;  %v9038_v19 = vld [vmem:[#allocation47_spill] sm:$0xff] }
 0x305   :  { %v2532_v14 = vpop.permute.xlu1 %2531 }
 0x306   :  { %v6958_v39 = vsel %vm2324_vm10, %v9020_v54, %v2532_v14  ;;  %2996 = vrot.lane.b32.xlu1 %v6740_v12, %s4079_s21  ;;  %v2530_v63 = vpop.permute.xlu0 %2529  ;;  %v9032_v14 = vld [vmem:[#allocation40_spill] sm:$0xff]  ;;  %vm2337_vm10 = vcmp.eq.s32.totalorder %v9059_v31, 1  ;;  %v9065_v31 = vld [vmem:[#allocation94_spill] sm:$0xff] }
 0x307   :  { %9021 = vst [vmem:[#allocation35_spill] sm:$0xff] %v6958_v39  ;;  %2829 = vst.msk [vmem:[%s8345_s4 + $0x138] sm:$0xff] %vm2789_vm12, %v6958_v39  ;;  %v6968_v47 = vsel %vm2323_vm11, %v9022_v11, %v2530_v63  ;;  %2994 = vrot.lane.b32.xlu0 %v6749_v22, %s4079_s21  ;;  %v9033_v63 = vld [vmem:[#allocation41_spill] sm:$0xff] }
 0x308   :  { %9023 = vst [vmem:[#allocation189_spill] sm:$0xff] %v6968_v47  ;;  %2828 = vst.msk [vmem:[%s8345_s4 + $0x130] sm:$0xff] %vm2789_vm12, %v6968_v47 }
 0x309   :  { %v2536_v28 = vpop.permute.xlu1 %2535 }
 0x30a   :  { %v6980_v6 = vsel %vm2326_vm2, %v9026_v5, %v2536_v28  ;;  %3000 = vrot.lane.b32.xlu1 %v6760_v35, %s4079_s21  ;;  %v2534_v2 = vpop.permute.xlu0 %2533  ;;  %v9036_v5 = vld [vmem:[#allocation45_spill] sm:$0xff]  ;;  %vm2339_vm2 = vcmp.eq.s32.totalorder %v9065_v31, 1  ;;  %v9071_v31 = vld [vmem:[#allocation15_spill] sm:$0xff] }
 0x30b   :  { %9027 = vst [vmem:[#allocation190_spill] sm:$0xff] %v6980_v6  ;;  %2831 = vst.msk [vmem:[%s8345_s4 + $0x148] sm:$0xff] %vm2789_vm12, %v6980_v6  ;;  %v6990_v45 = vsel %vm2325_vm13, %v9028_v59, %v2534_v2  ;;  %2998 = vrot.lane.b32.xlu0 %v6770_v3, %s4079_s21 }
 0x30c   :  { %9029 = vst [vmem:[#allocation36_spill] sm:$0xff] %v6990_v45  ;;  %2830 = vst.msk [vmem:[%s8345_s4 + $0x140] sm:$0xff] %vm2789_vm12, %v6990_v45 }
 0x30d   :  { %v2540_v36 = vpop.permute.xlu1 %2539 }
 0x30e   :  { %v7002_v40 = vsel %vm2328_vm14, %v9032_v14, %v2540_v36  ;;  %3004 = vrot.lane.b32.xlu1 %v6782_v20, %s4079_s21  ;;  %v2538_v54 = vpop.permute.xlu0 %2537  ;;  %vm2341_vm14 = vcmp.eq.s32.totalorder %v9071_v31, 1  ;;  %v9075_v31 = vld [vmem:[#allocation16_spill] sm:$0xff] }
 0x30f   :  { %2833 = vst.msk [vmem:[%s8345_s4 + $0x158] sm:$0xff] %vm2789_vm12, %v7002_v40  ;;  %v7012_v11 = vsel %vm2327_vm15, %v9033_v63, %v2538_v54  ;;  %3002 = vrot.lane.b32.xlu0 %v6792_v58, %s4079_s21  ;;  %v9041_v54 = vld [vmem:[#allocation80_spill] sm:$0xff]  ;;  %v9042_v63 = vld [vmem:[#allocation50_spill] sm:$0xff] }
 0x310   :  { %2832 = vst.msk [vmem:[%s8345_s4 + $0x150] sm:$0xff] %vm2789_vm12, %v7012_v11  ;;  %vm2331_vm4 = vcmp.eq.s32.totalorder %v9041_v54, 1 }
 0x311   :  { %v2544_v28 = vpop.permute.xlu1 %2543 }
 0x312   :  { %v7024_v2 = vsel %vm2330_vm0, %v9036_v5, %v2544_v28  ;;  %3008 = vrot.lane.b32.xlu1 %v6804_v50, %s4079_s21  ;;  %v2542_v59 = vpop.permute.xlu0 %2541  ;;  %vm2343_vm0 = vcmp.eq.s32.totalorder %v9075_v31, 1  ;;  %v9079_v31 = vld [vmem:[#allocation18_spill] sm:$0xff] }
 0x313   :  { %9037 = vst [vmem:[#allocation37_spill] sm:$0xff] %v7024_v2  ;;  %2835 = vst.msk [vmem:[%s8345_s4 + $0x168] sm:$0xff] %vm2789_vm12, %v7024_v2  ;;  %v7034_v36 = vsel %vm2329_vm1, %v9038_v19, %v2542_v59  ;;  %3006 = vrot.lane.b32.xlu0 %v6814_v1, %s4079_s21  ;;  %v9046_v59 = vld [vmem:[#allocation10_spill] sm:$0xff] }
 0x314   :  { %9039 = vst [vmem:[#allocation125_spill] sm:$0xff] %v7034_v36  ;;  %2834 = vst.msk [vmem:[%s8345_s4 + $0x160] sm:$0xff] %vm2789_vm12, %v7034_v36  ;;  %vm2334_vm5 = vcmp.eq.s32.totalorder %v9046_v59, 1  ;;  %v9052_v59 = vld [vmem:[#allocation85_spill] sm:$0xff] }
 0x315   :  { %v2548_v14 = vpop.permute.xlu1 %2547  ;;  %vm2336_vm7 = vcmp.eq.s32.totalorder %v9052_v59, 1  ;;  %v9058_v59 = vld [vmem:[#allocation12_spill] sm:$0xff] }
 0x316   :  { %v7046_v21 = vsel %vm2332_vm3, %v9042_v63, %v2548_v14  ;;  %3012 = vrot.lane.b32.xlu1 %v6826_v48, %s4079_s21  ;;  %v2546_v28 = vpop.permute.xlu0 %2545  ;;  %v9048_v14 = vld [vmem:[#allocation55_spill] sm:$0xff]  ;;  %vm2338_vm9 = vcmp.eq.s32.totalorder %v9058_v59, 1  ;;  %v9064_v59 = vld [vmem:[#allocation92_spill] sm:$0xff]  ;;  %vm2345_vm3 = vcmp.eq.s32.totalorder %v9079_v31, 1 }
 0x317   :  { %9043 = vst [vmem:[#allocation126_spill] sm:$0xff] %v7046_v21  ;;  %2837 = vst.msk [vmem:[%s8345_s4 + $0x178] sm:$0xff] %vm2789_vm12, %v7046_v21  ;;  %v7056_v5 = vsel %vm2331_vm4, %v9044_v9, %v2546_v28  ;;  %3010 = vrot.lane.b32.xlu0 %v6836_v61, %s4079_s21  ;;  %v9050_v28 = vld [vmem:[#allocation56_spill] sm:$0xff]  ;;  %vm2340_vm11 = vcmp.eq.s32.totalorder %v9064_v59, 1  ;;  %v9070_v59 = vld [vmem:[#allocation14_spill] sm:$0xff] }
 0x318   :  { %9045 = vst [vmem:[#allocation38_spill] sm:$0xff] %v7056_v5  ;;  %2836 = vst.msk [vmem:[%s8345_s4 + $0x170] sm:$0xff] %vm2789_vm12, %v7056_v5  ;;  %vm2342_vm13 = vcmp.eq.s32.totalorder %v9070_v59, 1  ;;  %v9074_v59 = vld [vmem:[#allocation99_spill] sm:$0xff]  ;;  %v9083_v31 = vld [vmem:[#allocation20_spill] sm:$0xff] }
 0x319   :  { %v2552_v19 = vpop.permute.xlu1 %2551  ;;  %vm2344_vm15 = vcmp.eq.s32.totalorder %v9074_v59, 1  ;;  %v9078_v59 = vld [vmem:[#allocation17_spill] sm:$0xff] }
 0x31a   :  { %v7068_v54 = vsel %vm2334_vm5, %v9048_v14, %v2552_v19  ;;  %3016 = vrot.lane.b32.xlu1 %v6848_v56, %s4079_s21  ;;  %v2550_v63 = vpop.permute.xlu0 %2549  ;;  %v9054_v14 = vld [vmem:[#allocation62_spill] sm:$0xff]  ;;  %vm2346_vm1 = vcmp.eq.s32.totalorder %v9078_v59, 1  ;;  %v9082_v59 = vld [vmem:[#allocation19_spill] sm:$0xff]  ;;  %vm2347_vm5 = vcmp.eq.s32.totalorder %v9083_v31, 1 }
 0x31b   :  { %9049 = vst [vmem:[#allocation39_spill] sm:$0xff] %v7068_v54  ;;  %2839 = vst.msk [vmem:[%s8345_s4 + $0x188] sm:$0xff] %vm2789_vm12, %v7068_v54  ;;  %v7078_v9 = vsel %vm2333_vm6, %v9050_v28, %v2550_v63  ;;  %3014 = vrot.lane.b32.xlu0 %v6858_v24, %s4079_s21  ;;  %v9056_v28 = vld [vmem:[#allocation64_spill] sm:$0xff]  ;;  %vm2348_vm4 = vcmp.eq.s32.totalorder %v9082_v59, 1  ;;  %v9086_v59 = vld [vmem:[#allocation21_spill] sm:$0xff] }
 0x31c   :  { %9051 = vst [vmem:[#allocation131_spill] sm:$0xff] %v7078_v9  ;;  %2838 = vst.msk [vmem:[%s8345_s4 + $0x180] sm:$0xff] %vm2789_vm12, %v7078_v9  ;;  %vm2350_vm6 = vcmp.eq.s32.totalorder %v9086_v59, 1  ;;  %v9087_v31 = vld [vmem:[#allocation22_spill] sm:$0xff] }
 0x31d   :  { %v2556_v19 = vpop.permute.xlu1 %2555 }
 0x31e   :  { %v7090_v56 = vsel %vm2336_vm7, %v9054_v14, %v2556_v19  ;;  %3020 = vrot.lane.b32.xlu1 %v6870_v43, %s4079_s21  ;;  %v2554_v63 = vpop.permute.xlu0 %2553  ;;  %v9060_v14 = vld [vmem:[#allocation69_spill] sm:$0xff]  ;;  %vm2349_vm7 = vcmp.eq.s32.totalorder %v9087_v31, 1  ;;  %v9090_v31 = vld [vmem:[#allocation110_spill] sm:$0xff] }
 0x31f   :  { %9055 = vst [vmem:[#allocation132_spill] sm:$0xff] %v7090_v56  ;;  %2841 = vst.msk [vmem:[%s8345_s4 + $0x198] sm:$0xff] %vm2789_vm12, %v7090_v56  ;;  %v7100_v24 = vsel %vm2335_vm8, %v9056_v28, %v2554_v63  ;;  %3018 = vrot.lane.b32.xlu0 %v6880_v34, %s4079_s21  ;;  %v9062_v28 = vld [vmem:[#allocation70_spill] sm:$0xff] }
 0x320   :  { %9057 = vst [vmem:[#allocation42_spill] sm:$0xff] %v7100_v24  ;;  %2840 = vst.msk [vmem:[%s8345_s4 + $0x190] sm:$0xff] %vm2789_vm12, %v7100_v24 }
 0x321   :  { %v2560_v19 = vpop.permute.xlu1 %2559 }
 0x322   :  { %v7112_v43 = vsel %vm2338_vm9, %v9060_v14, %v2560_v19  ;;  %3024 = vrot.lane.b32.xlu1 %v6892_v29, %s4079_s21  ;;  %v2558_v63 = vpop.permute.xlu0 %2557  ;;  %v9066_v14 = vld [vmem:[#allocation75_spill] sm:$0xff] }
 0x323   :  { %9061 = vst [vmem:[#allocation43_spill] sm:$0xff] %v7112_v43  ;;  %2843 = vst.msk [vmem:[%s8345_s4 + $0x1a8] sm:$0xff] %vm2789_vm12, %v7112_v43  ;;  %v7122_v34 = vsel %vm2337_vm10, %v9062_v28, %v2558_v63  ;;  %3022 = vrot.lane.b32.xlu0 %v6902_v7, %s4079_s21  ;;  %v9068_v28 = vld [vmem:[#allocation76_spill] sm:$0xff] }
 0x324   :  { %9063 = vst [vmem:[#allocation137_spill] sm:$0xff] %v7122_v34  ;;  %2842 = vst.msk [vmem:[%s8345_s4 + $0x1a0] sm:$0xff] %vm2789_vm12, %v7122_v34 }
 0x325   :  { %v2564_v19 = vpop.permute.xlu1 %2563 }
 0x326   :  { %v7134_v29 = vsel %vm2340_vm11, %v9066_v14, %v2564_v19  ;;  %3028 = vrot.lane.b32.xlu1 %v6914_v53, %s4079_s21  ;;  %v2562_v63 = vpop.permute.xlu0 %2561  ;;  %v9072_v14 = vld [vmem:[#allocation82_spill] sm:$0xff] }
 0x327   :  { %9067 = vst [vmem:[#allocation138_spill] sm:$0xff] %v7134_v29  ;;  %2845 = vst.msk [vmem:[%s8345_s4 + $0x1b8] sm:$0xff] %vm2789_vm12, %v7134_v29  ;;  %v7144_v7 = vsel %vm2339_vm2, %v9068_v28, %v2562_v63  ;;  %3026 = vrot.lane.b32.xlu0 %v6924_v41, %s4079_s21  ;;  %v9073_v28 = vld [vmem:[#allocation84_spill] sm:$0xff] }
 0x328   :  { %9069 = vst [vmem:[#allocation44_spill] sm:$0xff] %v7144_v7  ;;  %2844 = vst.msk [vmem:[%s8345_s4 + $0x1b0] sm:$0xff] %vm2789_vm12, %v7144_v7 }
 0x329   :  { %v2568_v19 = vpop.permute.xlu1 %2567 }
 0x32a   :  { %v7156_v53 = vsel %vm2342_vm13, %v9072_v14, %v2568_v19  ;;  %3032 = vrot.lane.b32.xlu1 %v6936_v0, %s4079_s21  ;;  %v2566_v63 = vpop.permute.xlu0 %2565  ;;  %v9076_v14 = vld [vmem:[#allocation89_spill] sm:$0xff] }
 0x32b   :  { %2847 = vst.msk [vmem:[%s8345_s4 + $0x1c8] sm:$0xff] %vm2789_vm12, %v7156_v53  ;;  %v7166_v41 = vsel %vm2341_vm14, %v9073_v28, %v2566_v63  ;;  %3030 = vrot.lane.b32.xlu0 %v6946_v37, %s4079_s21  ;;  %v9077_v28 = vld [vmem:[#allocation90_spill] sm:$0xff] }
 0x32c   :  { %2846 = vst.msk [vmem:[%s8345_s4 + $0x1c0] sm:$0xff] %vm2789_vm12, %v7166_v41 }
 0x32d   :  { %v2572_v19 = vpop.permute.xlu1 %2571 }
 0x32e   :  { %v7178_v0 = vsel %vm2344_vm15, %v9076_v14, %v2572_v19  ;;  %3036 = vrot.lane.b32.xlu1 %v6958_v39, %s4079_s21  ;;  %v2570_v63 = vpop.permute.xlu0 %2569  ;;  %v9080_v14 = vld [vmem:[#allocation95_spill] sm:$0xff] }
 0x32f   :  { %2849 = vst.msk [vmem:[%s8345_s4 + $0x1d8] sm:$0xff] %vm2789_vm12, %v7178_v0  ;;  %v7188_v37 = vsel %vm2343_vm0, %v9077_v28, %v2570_v63  ;;  %3034 = vrot.lane.b32.xlu0 %v6968_v47, %s4079_s21  ;;  %v9081_v28 = vld [vmem:[#allocation96_spill] sm:$0xff] }
 0x330   :  { %2848 = vst.msk [vmem:[%s8345_s4 + $0x1d0] sm:$0xff] %vm2789_vm12, %v7188_v37 }
 0x331   :  { %v2576_v19 = vpop.permute.xlu1 %2575 }
 0x332   :  { %v7200_v39 = vsel %vm2346_vm1, %v9080_v14, %v2576_v19  ;;  %3040 = vrot.lane.b32.xlu1 %v6980_v6, %s4079_s21  ;;  %v2574_v63 = vpop.permute.xlu0 %2573  ;;  %v9084_v14 = vld [vmem:[#allocation101_spill] sm:$0xff] }
 0x333   :  { %2851 = vst.msk [vmem:[%s8345_s4 + $0x1e8] sm:$0xff] %vm2789_vm12, %v7200_v39  ;;  %v7210_v47 = vsel %vm2345_vm3, %v9081_v28, %v2574_v63  ;;  %3038 = vrot.lane.b32.xlu0 %v6990_v45, %s4079_s21  ;;  %v9085_v28 = vld [vmem:[#allocation103_spill] sm:$0xff] }
 0x334   :  { %2850 = vst.msk [vmem:[%s8345_s4 + $0x1e0] sm:$0xff] %vm2789_vm12, %v7210_v47 }
 0x335   :  { %v2580_v19 = vpop.permute.xlu1 %2579 }
 0x336   :  { %v7222_v6 = vsel %vm2348_vm4, %v9084_v14, %v2580_v19  ;;  %3044 = vrot.lane.b32.xlu1 %v7002_v40, %s4079_s21  ;;  %v2578_v63 = vpop.permute.xlu0 %2577 }
 0x337   :  { %2853 = vst.msk [vmem:[%s8345_s4 + $0x1f8] sm:$0xff] %vm2789_vm12, %v7222_v6  ;;  %v7232_v45 = vsel %vm2347_vm5, %v9085_v28, %v2578_v63  ;;  %3042 = vrot.lane.b32.xlu0 %v7012_v11, %s4079_s21 }
 0x338   :  { %2852 = vst.msk [vmem:[%s8345_s4 + $0x1f0] sm:$0xff] %vm2789_vm12, %v7232_v45 }
 0x339   :  { %v2584_v19 = vpop.permute.xlu1 %2583 }
 0x33a   :  { %v7244_v14 = vsel %vm2350_vm6, %v8925_v44, %v2584_v19  ;;  %3048 = vrot.lane.b32.xlu1 %v7024_v2, %s4079_s21  ;;  %v2582_v63 = vpop.permute.xlu0 %2581  ;;  %v9088_v44 = vld [vmem:[#allocation23_spill] sm:$0xff]  ;;  %v9089_v19 = vld [vmem:[#allocation118_spill] sm:$0xff] }
 0x33b   :  { %2855 = vst.msk [vmem:[%s8345_s4 + $0x208] sm:$0xff] %vm2789_vm12, %v7244_v14  ;;  %v7254_v28 = vsel %vm2349_vm7, %v8928_v32, %v2582_v63  ;;  %3046 = vrot.lane.b32.xlu0 %v7034_v36, %s4079_s21  ;;  %vm2352_vm8 = vcmp.eq.s32.totalorder %v9088_v44, 1  ;;  %vm2351_vm9 = vcmp.eq.s32.totalorder %v9089_v19, 1  ;;  %v9091_v63 = vld [vmem:[#allocation111_spill] sm:$0xff]  ;;  %v9092_v44 = vld [vmem:[#allocation24_spill] sm:$0xff]  ;;  %v9093_v19 = vld [vmem:[#allocation25_spill] sm:$0xff] }
 0x33c   :  { %2854 = vst.msk [vmem:[%s8345_s4 + $0x200] sm:$0xff] %vm2789_vm12, %v7254_v28  ;;  %vm2354_vm10 = vcmp.eq.s32.totalorder %v9092_v44, 1  ;;  %vm2353_vm11 = vcmp.eq.s32.totalorder %v9093_v19, 1  ;;  %v9096_v44 = vld [vmem:[#allocation177_spill] sm:$0xff]  ;;  %v9097_v19 = vld [vmem:[#allocation123_spill] sm:$0xff] }
 0x33d   :  { %v2588_v59 = vpop.permute.xlu1 %2587  ;;  %vm2356_vm2 = vcmp.eq.s32.totalorder %v9096_v44, 1  ;;  %vm2355_vm13 = vcmp.eq.s32.totalorder %v9097_v19, 1  ;;  %v9100_v44 = vld [vmem:[#allocation178_spill] sm:$0xff]  ;;  %v9101_v19 = vld [vmem:[#allocation124_spill] sm:$0xff] }
 0x33e   :  { %v7266_v2 = vsel %vm2352_vm8, %v9090_v31, %v2588_v59  ;;  %3052 = vrot.lane.b32.xlu1 %v7046_v21, %s4079_s21  ;;  %v2586_v32 = vpop.permute.xlu0 %2585  ;;  %v9094_v31 = vld [vmem:[#allocation115_spill] sm:$0xff]  ;;  %vm2358_vm14 = vcmp.eq.s32.totalorder %v9100_v44, 1  ;;  %vm2357_vm15 = vcmp.eq.s32.totalorder %v9101_v19, 1  ;;  %v9104_v44 = vld [vmem:[#allocation26_spill] sm:$0xff] }
 0x33f   :  { %2857 = vst.msk [vmem:[%s8345_s4 + $0x218] sm:$0xff] %vm2789_vm12, %v7266_v2  ;;  %v7276_v36 = vsel %vm2351_vm9, %v9091_v63, %v2586_v32  ;;  %3050 = vrot.lane.b32.xlu0 %v7056_v5, %s4079_s21  ;;  %v9095_v63 = vld [vmem:[#allocation117_spill] sm:$0xff]  ;;  %vm2360_vm0 = vcmp.eq.s32.totalorder %v9104_v44, 1  ;;  %v9105_v19 = vld [vmem:[#allocation27_spill] sm:$0xff] }
 0x340   :  { %2856 = vst.msk [vmem:[%s8345_s4 + $0x210] sm:$0xff] %vm2789_vm12, %v7276_v36  ;;  %vm2359_vm1 = vcmp.eq.s32.totalorder %v9105_v19, 1  ;;  %v9108_v44 = vld [vmem:[#allocation181_spill] sm:$0xff] }
 0x341   :  { %v2592_v59 = vpop.permute.xlu1 %2591  ;;  %vm2362_vm3 = vcmp.eq.s32.totalorder %v9108_v44, 1  ;;  %v9109_v19 = vld [vmem:[#allocation129_spill] sm:$0xff]  ;;  %v9112_v44 = vld [vmem:[#allocation182_spill] sm:$0xff] }
 0x342   :  { %v7288_v21 = vsel %vm2354_vm10, %v9094_v31, %v2592_v59  ;;  %3056 = vrot.lane.b32.xlu1 %v7068_v54, %s4079_s21  ;;  %v2590_v32 = vpop.permute.xlu0 %2589  ;;  %v9098_v31 = vld [vmem:[#allocation121_spill] sm:$0xff]  ;;  %vm2361_vm4 = vcmp.eq.s32.totalorder %v9109_v19, 1  ;;  %vm2364_vm5 = vcmp.eq.s32.totalorder %v9112_v44, 1  ;;  %v9113_v19 = vld [vmem:[#allocation130_spill] sm:$0xff] }
 0x343   :  { %2859 = vst.msk [vmem:[%s8345_s4 + $0x228] sm:$0xff] %vm2789_vm12, %v7288_v21  ;;  %v7298_v5 = vsel %vm2353_vm11, %v9095_v63, %v2590_v32  ;;  %3054 = vrot.lane.b32.xlu0 %v7078_v9, %s4079_s21  ;;  %v9099_v63 = vld [vmem:[#allocation122_spill] sm:$0xff]  ;;  %vm2363_vm6 = vcmp.eq.s32.totalorder %v9113_v19, 1  ;;  %vm3210_vm11 = vcmask 31744  }
 0x344   :  { %2858 = vst.msk [vmem:[%s8345_s4 + $0x220] sm:$0xff] %vm2789_vm12, %v7298_v5 }
 0x345   :  { %v2596_v59 = vpop.permute.xlu1 %2595 }
 0x346   :  { %v7310_v54 = vsel %vm2356_vm2, %v9098_v31, %v2596_v59  ;;  %3060 = vrot.lane.b32.xlu1 %v7090_v56, %s4079_s21  ;;  %v2594_v32 = vpop.permute.xlu0 %2593  ;;  %v9102_v31 = vld [vmem:[#allocation127_spill] sm:$0xff] }
 0x347   :  { %2861 = vst.msk [vmem:[%s8345_s4 + $0x238] sm:$0xff] %vm2789_vm12, %v7310_v54  ;;  %v7320_v9 = vsel %vm2355_vm13, %v9099_v63, %v2594_v32  ;;  %3058 = vrot.lane.b32.xlu0 %v7100_v24, %s4079_s21  ;;  %v9103_v63 = vld [vmem:[#allocation128_spill] sm:$0xff] }
 0x348   :  { %2860 = vst.msk [vmem:[%s8345_s4 + $0x230] sm:$0xff] %vm2789_vm12, %v7320_v9 }
 0x349   :  { %v2600_v59 = vpop.permute.xlu1 %2599 }
 0x34a   :  { %v7332_v56 = vsel %vm2358_vm14, %v9102_v31, %v2600_v59  ;;  %3064 = vrot.lane.b32.xlu1 %v7112_v43, %s4079_s21  ;;  %v2598_v32 = vpop.permute.xlu0 %2597  ;;  %v9106_v31 = vld [vmem:[#allocation145_spill] sm:$0xff] }
 0x34b   :  { %2863 = vst.msk [vmem:[%s8345_s4 + $0x248] sm:$0xff] %vm2789_vm12, %v7332_v56  ;;  %v7342_v24 = vsel %vm2357_vm15, %v9103_v63, %v2598_v32  ;;  %3062 = vrot.lane.b32.xlu0 %v7122_v34, %s4079_s21  ;;  %v9107_v63 = vld [vmem:[#allocation146_spill] sm:$0xff] }
 0x34c   :  { %2862 = vst.msk [vmem:[%s8345_s4 + $0x240] sm:$0xff] %vm2789_vm12, %v7342_v24 }
 0x34d   :  { %v2604_v59 = vpop.permute.xlu1 %2603 }
 0x34e   :  { %v7354_v43 = vsel %vm2360_vm0, %v9106_v31, %v2604_v59  ;;  %3068 = vrot.lane.b32.xlu1 %v7134_v29, %s4079_s21  ;;  %v2602_v32 = vpop.permute.xlu0 %2601  ;;  %v9110_v31 = vld [vmem:[#allocation147_spill] sm:$0xff] }
 0x34f   :  { %2865 = vst.msk [vmem:[%s8345_s4 + $0x258] sm:$0xff] %vm2789_vm12, %v7354_v43  ;;  %v7364_v34 = vsel %vm2359_vm1, %v9107_v63, %v2602_v32  ;;  %3066 = vrot.lane.b32.xlu0 %v7144_v7, %s4079_s21  ;;  %v9111_v63 = vld [vmem:[#allocation148_spill] sm:$0xff] }
 0x350   :  { %2864 = vst.msk [vmem:[%s8345_s4 + $0x250] sm:$0xff] %vm2789_vm12, %v7364_v34 }
 0x351   :  { %v2608_v59 = vpop.permute.xlu1 %2607 }
 0x352   :  { %v7376_v29 = vsel %vm2362_vm3, %v9110_v31, %v2608_v59  ;;  %3072 = vrot.lane.b32.xlu1 %v7156_v53, %s4079_s21  ;;  %v2606_v32 = vpop.permute.xlu0 %2605 }
 0x353   :  { %2867 = vst.msk [vmem:[%s8345_s4 + $0x268] sm:$0xff] %vm2789_vm12, %v7376_v29  ;;  %v7386_v7 = vsel %vm2361_vm4, %v9111_v63, %v2606_v32  ;;  %3070 = vrot.lane.b32.xlu0 %v7166_v41, %s4079_s21 }
 0x354   :  { %2866 = vst.msk [vmem:[%s8345_s4 + $0x260] sm:$0xff] %vm2789_vm12, %v7386_v7 }
 0x355   :  { %v2612_v59 = vpop.permute.xlu1 %2611 }
 0x356   :  { %v7398_v31 = vsel %vm2364_vm5, %v8981_v52, %v2612_v59  ;;  %3076 = vrot.lane.b32.xlu1 %v7178_v0, %s4079_s21  ;;  %v2610_v32 = vpop.permute.xlu0 %2609  ;;  %v9114_v52 = vld [vmem:[#allocation28_spill] sm:$0xff]  ;;  %v9115_v59 = vld [vmem:[#allocation29_spill] sm:$0xff] }
 0x357   :  { %2869 = vst.msk [vmem:[%s8345_s4 + $0x278] sm:$0xff] %vm2789_vm12, %v7398_v31  ;;  %v7408_v63 = vsel %vm2363_vm6, %v8984_v18, %v2610_v32  ;;  %3074 = vrot.lane.b32.xlu0 %v7188_v37, %s4079_s21  ;;  %vm2366_vm7 = vcmp.eq.s32.totalorder %v9114_v52, 1  ;;  %vm2365_vm8 = vcmp.eq.s32.totalorder %v9115_v59, 1 }
 0x358   :  { %2868 = vst.msk [vmem:[%s8345_s4 + $0x270] sm:$0xff] %vm2789_vm12, %v7408_v63 }
 0x359   :  { %v2616_v44 = vpop.permute.xlu1 %2615 }
 0x35a   :  { %v7420_v19 = vsel %vm2366_vm7, %v8989_v46, %v2616_v44  ;;  %3080 = vrot.lane.b32.xlu1 %v7200_v39, %s4079_s21  ;;  %v2614_v18 = vpop.permute.xlu0 %2613  ;;  %v9116_v46 = vld [vmem:[#allocation183_spill] sm:$0xff]  ;;  %v9117_v44 = vld [vmem:[#allocation133_spill] sm:$0xff] }
 0x35b   :  { %2871 = vst.msk [vmem:[%s8345_s4 + $0x288] sm:$0xff] %vm2789_vm12, %v7420_v19  ;;  %v7430_v32 = vsel %vm2365_vm8, %v8991_v15, %v2614_v18  ;;  %3078 = vrot.lane.b32.xlu0 %v7210_v47, %s4079_s21  ;;  %vm2368_vm9 = vcmp.eq.s32.totalorder %v9116_v46, 1  ;;  %vm2367_vm10 = vcmp.eq.s32.totalorder %v9117_v44, 1 }
 0x35c   :  { %2870 = vst.msk [vmem:[%s8345_s4 + $0x280] sm:$0xff] %vm2789_vm12, %v7430_v32 }
 0x35d   :  { %v2620_v52 = vpop.permute.xlu1 %2619 }
 0x35e   :  { %v7442_v59 = vsel %vm2368_vm9, %v8995_v55, %v2620_v52  ;;  %3084 = vrot.lane.b32.xlu1 %v7222_v6, %s4079_s21  ;;  %v2618_v15 = vpop.permute.xlu0 %2617 }
 0x35f   :  { %2873 = vst.msk [vmem:[%s8345_s4 + $0x298] sm:$0xff] %vm2789_vm12, %v7442_v59  ;;  %v7452_v18 = vsel %vm2367_vm10, %v8997_v27, %v2618_v15  ;;  %3082 = vrot.lane.b32.xlu0 %v7232_v45, %s4079_s21 }
 0x360   :  { %2872 = vst.msk [vmem:[%s8345_s4 + $0x290] sm:$0xff] %vm2789_vm12, %v7452_v18  ;;  %vm3547_vm12 = vcmask 162816  }
 0x361   :  { %v2961_v55 = vpop.permute.xlu1 %2960 }
 0x362   :  { %3212 = vst.msk [vmem:[%s8346_s5 + $0x8] sm:$0xff] %vm3210_vm11, %v2961_v55  ;;  %3088 = vrot.lane.b32.xlu1 %v7244_v14, %s4079_s21  ;;  %v2959_v27 = vpop.permute.xlu0 %2958 }
 0x363   :  { %3211 = vst.msk [vmem:[%s8346_s5] sm:$0xff] %vm3210_vm11, %v2959_v27  ;;  %3086 = vrot.lane.b32.xlu0 %v7254_v28, %s4079_s21 }
 0x365   :  { %v2965_v46 = vpop.permute.xlu1 %2964 }
 0x366   :  { %3214 = vst.msk [vmem:[%s8346_s5 + $0x18] sm:$0xff] %vm3210_vm11, %v2965_v46  ;;  %3092 = vrot.lane.b32.xlu1 %v7266_v2, %s4079_s21  ;;  %v2963_v52 = vpop.permute.xlu0 %2962 }
 0x367   :  { %3213 = vst.msk [vmem:[%s8346_s5 + $0x10] sm:$0xff] %vm3210_vm11, %v2963_v52  ;;  %3090 = vrot.lane.b32.xlu0 %v7276_v36, %s4079_s21 }
 0x369   :  { %v2969_v44 = vpop.permute.xlu1 %2968 }
 0x36a   :  { %3216 = vst.msk [vmem:[%s8346_s5 + $0x28] sm:$0xff] %vm3210_vm11, %v2969_v44  ;;  %3096 = vrot.lane.b32.xlu1 %v7288_v21, %s4079_s21  ;;  %v2967_v15 = vpop.permute.xlu0 %2966 }
 0x36b   :  { %3215 = vst.msk [vmem:[%s8346_s5 + $0x20] sm:$0xff] %vm3210_vm11, %v2967_v15  ;;  %3094 = vrot.lane.b32.xlu0 %v7298_v5, %s4079_s21 }
 0x36d   :  { %v2973_v55 = vpop.permute.xlu1 %2972 }
 0x36e   :  { %3218 = vst.msk [vmem:[%s8346_s5 + $0x38] sm:$0xff] %vm3210_vm11, %v2973_v55  ;;  %3100 = vrot.lane.b32.xlu1 %v7310_v54, %s4079_s21  ;;  %v2971_v27 = vpop.permute.xlu0 %2970 }
 0x36f   :  { %3217 = vst.msk [vmem:[%s8346_s5 + $0x30] sm:$0xff] %vm3210_vm11, %v2971_v27  ;;  %3098 = vrot.lane.b32.xlu0 %v7320_v9, %s4079_s21 }
 0x371   :  { %v2977_v46 = vpop.permute.xlu1 %2976 }
 0x372   :  { %3220 = vst.msk [vmem:[%s8346_s5 + $0x48] sm:$0xff] %vm3210_vm11, %v2977_v46  ;;  %3104 = vrot.lane.b32.xlu1 %v7332_v56, %s4079_s21  ;;  %v2975_v52 = vpop.permute.xlu0 %2974 }
 0x373   :  { %3219 = vst.msk [vmem:[%s8346_s5 + $0x40] sm:$0xff] %vm3210_vm11, %v2975_v52  ;;  %3102 = vrot.lane.b32.xlu0 %v7342_v24, %s4079_s21 }
 0x375   :  { %v2981_v44 = vpop.permute.xlu1 %2980 }
 0x376   :  { %3222 = vst.msk [vmem:[%s8346_s5 + $0x58] sm:$0xff] %vm3210_vm11, %v2981_v44  ;;  %3108 = vrot.lane.b32.xlu1 %v7354_v43, %s4079_s21  ;;  %v2979_v15 = vpop.permute.xlu0 %2978 }
 0x377   :  { %3221 = vst.msk [vmem:[%s8346_s5 + $0x50] sm:$0xff] %vm3210_vm11, %v2979_v15  ;;  %3106 = vrot.lane.b32.xlu0 %v7364_v34, %s4079_s21 }
 0x379   :  { %v2985_v55 = vpop.permute.xlu1 %2984 }
 0x37a   :  { %3224 = vst.msk [vmem:[%s8346_s5 + $0x68] sm:$0xff] %vm3210_vm11, %v2985_v55  ;;  %3112 = vrot.lane.b32.xlu1 %v7376_v29, %s4079_s21  ;;  %v2983_v27 = vpop.permute.xlu0 %2982 }
 0x37b   :  { %3223 = vst.msk [vmem:[%s8346_s5 + $0x60] sm:$0xff] %vm3210_vm11, %v2983_v27  ;;  %3110 = vrot.lane.b32.xlu0 %v7386_v7, %s4079_s21 }
 0x37d   :  { %v2989_v46 = vpop.permute.xlu1 %2988 }
 0x37e   :  { %3226 = vst.msk [vmem:[%s8346_s5 + $0x78] sm:$0xff] %vm3210_vm11, %v2989_v46  ;;  %3116 = vrot.lane.b32.xlu1 %v7398_v31, %s4079_s21  ;;  %v2987_v52 = vpop.permute.xlu0 %2986 }
 0x37f   :  { %3225 = vst.msk [vmem:[%s8346_s5 + $0x70] sm:$0xff] %vm3210_vm11, %v2987_v52  ;;  %3114 = vrot.lane.b32.xlu0 %v7408_v63, %s4079_s21 }
 0x381   :  { %v2993_v44 = vpop.permute.xlu1 %2992 }
 0x382   :  { %3228 = vst.msk [vmem:[%s8346_s5 + $0x88] sm:$0xff] %vm3210_vm11, %v2993_v44  ;;  %3120 = vrot.lane.b32.xlu1 %v7420_v19, %s4079_s21  ;;  %v2991_v15 = vpop.permute.xlu0 %2990 }
 0x383   :  { %3227 = vst.msk [vmem:[%s8346_s5 + $0x80] sm:$0xff] %vm3210_vm11, %v2991_v15  ;;  %3118 = vrot.lane.b32.xlu0 %v7430_v32, %s4079_s21 }
 0x385   :  { %v2997_v55 = vpop.permute.xlu1 %2996 }
 0x386   :  { %3230 = vst.msk [vmem:[%s8346_s5 + $0x98] sm:$0xff] %vm3210_vm11, %v2997_v55  ;;  %3124 = vrot.lane.b32.xlu1 %v7442_v59, %s4079_s21  ;;  %v2995_v27 = vpop.permute.xlu0 %2994 }
 0x387   :  { %3229 = vst.msk [vmem:[%s8346_s5 + $0x90] sm:$0xff] %vm3210_vm11, %v2995_v27  ;;  %3122 = vrot.lane.b32.xlu0 %v7452_v18, %s4079_s21 }
 0x389   :  { %v3001_v46 = vpop.permute.xlu1 %3000 }
 0x38a   :  { %3232 = vst.msk [vmem:[%s8346_s5 + $0xa8] sm:$0xff] %vm3210_vm11, %v3001_v46  ;;  %3297 = vrot.lane.b32.xlu1 %v6506_v57, %s4080_s27  ;;  %v2999_v52 = vpop.permute.xlu0 %2998 }
 0x38b   :  { %3231 = vst.msk [vmem:[%s8346_s5 + $0xa0] sm:$0xff] %vm3210_vm11, %v2999_v52  ;;  %3295 = vrot.lane.b32.xlu0 %v6515_v23, %s4080_s27  ;;  %v9121_v52 = vld [vmem:[#allocation185_spill] sm:$0xff] }
 0x38d   :  { %v3005_v44 = vpop.permute.xlu1 %3004 }
 0x38e   :  { %3234 = vst.msk [vmem:[%s8346_s5 + $0xb8] sm:$0xff] %vm3210_vm11, %v3005_v44  ;;  %3301 = vrot.lane.b32.xlu1 %v6532_v33, %s4080_s27  ;;  %v3003_v15 = vpop.permute.xlu0 %3002 }
 0x38f   :  { %3233 = vst.msk [vmem:[%s8346_s5 + $0xb0] sm:$0xff] %vm3210_vm11, %v3003_v15  ;;  %3299 = vrot.lane.b32.xlu0 %v6541_v8, %s4080_s27  ;;  %v9122_v15 = vld [vmem:[#allocation186_spill] sm:$0xff] }
 0x391   :  { %v3009_v57 = vpop.permute.xlu1 %3008 }
 0x392   :  { %3236 = vst.msk [vmem:[%s8346_s5 + $0xc8] sm:$0xff] %vm3210_vm11, %v3009_v57  ;;  %3305 = vrot.lane.b32.xlu1 %v6558_v4, %s4080_s27  ;;  %v3007_v23 = vpop.permute.xlu0 %3006 }
 0x393   :  { %3235 = vst.msk [vmem:[%s8346_s5 + $0xc0] sm:$0xff] %vm3210_vm11, %v3007_v23  ;;  %3303 = vrot.lane.b32.xlu0 %v6567_v26, %s4080_s27  ;;  %v9123_v23 = vld [vmem:[#allocation32_spill] sm:$0xff] }
 0x395   :  { %v3013_v33 = vpop.permute.xlu1 %3012 }
 0x396   :  { %3238 = vst.msk [vmem:[%s8346_s5 + $0xd8] sm:$0xff] %vm3210_vm11, %v3013_v33  ;;  %3309 = vrot.lane.b32.xlu1 %v6584_v10, %s4080_s27  ;;  %v3011_v8 = vpop.permute.xlu0 %3010 }
 0x397   :  { %3237 = vst.msk [vmem:[%s8346_s5 + $0xd0] sm:$0xff] %vm3210_vm11, %v3011_v8  ;;  %3307 = vrot.lane.b32.xlu0 %v6593_v25, %s4080_s27  ;;  %v9124_v8 = vld [vmem:[#allocation33_spill] sm:$0xff] }
 0x399   :  { %v3017_v4 = vpop.permute.xlu1 %3016 }
 0x39a   :  { %3240 = vst.msk [vmem:[%s8346_s5 + $0xe8] sm:$0xff] %vm3210_vm11, %v3017_v4  ;;  %3313 = vrot.lane.b32.xlu1 %v6610_v17, %s4080_s27  ;;  %v3015_v26 = vpop.permute.xlu0 %3014 }
 0x39b   :  { %3239 = vst.msk [vmem:[%s8346_s5 + $0xe0] sm:$0xff] %vm3210_vm11, %v3015_v26  ;;  %3311 = vrot.lane.b32.xlu0 %v6619_v13, %s4080_s27  ;;  %v9125_v26 = vld [vmem:[#allocation187_spill] sm:$0xff] }
 0x39d   :  { %v3021_v10 = vpop.permute.xlu1 %3020 }
 0x39e   :  { %3242 = vst.msk [vmem:[%s8346_s5 + $0xf8] sm:$0xff] %vm3210_vm11, %v3021_v10  ;;  %3317 = vrot.lane.b32.xlu1 %v6636_v51, %s4080_s27  ;;  %v3019_v25 = vpop.permute.xlu0 %3018 }
 0x39f   :  { %3241 = vst.msk [vmem:[%s8346_s5 + $0xf0] sm:$0xff] %vm3210_vm11, %v3019_v25  ;;  %3315 = vrot.lane.b32.xlu0 %v6645_v60, %s4080_s27  ;;  %v9126_v25 = vld [vmem:[#allocation188_spill] sm:$0xff] }
 0x3a1   :  { %v3025_v17 = vpop.permute.xlu1 %3024 }
 0x3a2   :  { %3244 = vst.msk [vmem:[%s8346_s5 + $0x108] sm:$0xff] %vm3210_vm11, %v3025_v17  ;;  %3321 = vrot.lane.b32.xlu1 %v6662_v16, %s4080_s27  ;;  %v3023_v13 = vpop.permute.xlu0 %3022 }
 0x3a3   :  { %3243 = vst.msk [vmem:[%s8346_s5 + $0x100] sm:$0xff] %vm3210_vm11, %v3023_v13  ;;  %3319 = vrot.lane.b32.xlu0 %v6671_v42, %s4080_s27  ;;  %v9127_v13 = vld [vmem:[#allocation34_spill] sm:$0xff] }
 0x3a5   :  { %v3029_v51 = vpop.permute.xlu1 %3028 }
 0x3a6   :  { %3246 = vst.msk [vmem:[%s8346_s5 + $0x118] sm:$0xff] %vm3210_vm11, %v3029_v51  ;;  %3325 = vrot.lane.b32.xlu1 %v6688_v49, %s4080_s27  ;;  %v3027_v60 = vpop.permute.xlu0 %3026 }
 0x3a7   :  { %3245 = vst.msk [vmem:[%s8346_s5 + $0x110] sm:$0xff] %vm3210_vm11, %v3027_v60  ;;  %3323 = vrot.lane.b32.xlu0 %v6697_v62, %s4080_s27  ;;  %v9128_v60 = vld [vmem:[#allocation35_spill] sm:$0xff] }
 0x3a9   :  { %v3033_v16 = vpop.permute.xlu1 %3032 }
 0x3aa   :  { %3248 = vst.msk [vmem:[%s8346_s5 + $0x128] sm:$0xff] %vm3210_vm11, %v3033_v16  ;;  %3329 = vrot.lane.b32.xlu1 %v6714_v30, %s4080_s27  ;;  %v3031_v42 = vpop.permute.xlu0 %3030 }
 0x3ab   :  { %3247 = vst.msk [vmem:[%s8346_s5 + $0x120] sm:$0xff] %vm3210_vm11, %v3031_v42  ;;  %3327 = vrot.lane.b32.xlu0 %v6723_v38, %s4080_s27  ;;  %v9129_v42 = vld [vmem:[#allocation189_spill] sm:$0xff] }
 0x3ad   :  { %v3037_v49 = vpop.permute.xlu1 %3036 }
 0x3ae   :  { %3250 = vst.msk [vmem:[%s8346_s5 + $0x138] sm:$0xff] %vm3210_vm11, %v3037_v49  ;;  %3333 = vrot.lane.b32.xlu1 %v6740_v12, %s4080_s27  ;;  %v3035_v62 = vpop.permute.xlu0 %3034 }
 0x3af   :  { %3249 = vst.msk [vmem:[%s8346_s5 + $0x130] sm:$0xff] %vm3210_vm11, %v3035_v62  ;;  %3331 = vrot.lane.b32.xlu0 %v6749_v22, %s4080_s27  ;;  %v9130_v62 = vld [vmem:[#allocation190_spill] sm:$0xff] }
 0x3b1   :  { %v3041_v30 = vpop.permute.xlu1 %3040 }
 0x3b2   :  { %3252 = vst.msk [vmem:[%s8346_s5 + $0x148] sm:$0xff] %vm3210_vm11, %v3041_v30  ;;  %3337 = vrot.lane.b32.xlu1 %v6760_v35, %s4080_s27  ;;  %v3039_v38 = vpop.permute.xlu0 %3038 }
 0x3b3   :  { %3251 = vst.msk [vmem:[%s8346_s5 + $0x140] sm:$0xff] %vm3210_vm11, %v3039_v38  ;;  %3335 = vrot.lane.b32.xlu0 %v6770_v3, %s4080_s27  ;;  %v9131_v38 = vld [vmem:[#allocation36_spill] sm:$0xff] }
 0x3b5   :  { %v3045_v12 = vpop.permute.xlu1 %3044 }
 0x3b6   :  { %3254 = vst.msk [vmem:[%s8346_s5 + $0x158] sm:$0xff] %vm3210_vm11, %v3045_v12  ;;  %3341 = vrot.lane.b32.xlu1 %v6782_v20, %s4080_s27  ;;  %v3043_v22 = vpop.permute.xlu0 %3042 }
 0x3b7   :  { %3253 = vst.msk [vmem:[%s8346_s5 + $0x150] sm:$0xff] %vm3210_vm11, %v3043_v22  ;;  %3339 = vrot.lane.b32.xlu0 %v6792_v58, %s4080_s27 }
 0x3b9   :  { %v3049_v35 = vpop.permute.xlu1 %3048 }
 0x3ba   :  { %3256 = vst.msk [vmem:[%s8346_s5 + $0x168] sm:$0xff] %vm3210_vm11, %v3049_v35  ;;  %3345 = vrot.lane.b32.xlu1 %v6804_v50, %s4080_s27  ;;  %v3047_v3 = vpop.permute.xlu0 %3046 }
 0x3bb   :  { %3255 = vst.msk [vmem:[%s8346_s5 + $0x160] sm:$0xff] %vm3210_vm11, %v3047_v3  ;;  %3343 = vrot.lane.b32.xlu0 %v6814_v1, %s4080_s27  ;;  %v9118_v1 = vld [vmem:[#allocation184_spill] sm:$0xff]  ;;  %v9132_v3 = vld [vmem:[#allocation37_spill] sm:$0xff] }
 0x3bd   :  { %v3053_v20 = vpop.permute.xlu1 %3052 }
 0x3be   :  { %3258 = vst.msk [vmem:[%s8346_s5 + $0x178] sm:$0xff] %vm3210_vm11, %v3053_v20  ;;  %3349 = vrot.lane.b32.xlu1 %v6826_v48, %s4080_s27  ;;  %v3051_v58 = vpop.permute.xlu0 %3050  ;;  %v9119_v48 = vld [vmem:[#allocation30_spill] sm:$0xff] }
 0x3bf   :  { %3257 = vst.msk [vmem:[%s8346_s5 + $0x170] sm:$0xff] %vm3210_vm11, %v3051_v58  ;;  %3347 = vrot.lane.b32.xlu0 %v6836_v61, %s4080_s27  ;;  %v9120_v61 = vld [vmem:[#allocation31_spill] sm:$0xff] }
 0x3c1   :  { %v3057_v50 = vpop.permute.xlu1 %3056 }
 0x3c2   :  { %3260 = vst.msk [vmem:[%s8346_s5 + $0x188] sm:$0xff] %vm3210_vm11, %v3057_v50  ;;  %3353 = vrot.lane.b32.xlu1 %v9118_v1, %s4080_s27  ;;  %v3055_v55 = vpop.permute.xlu0 %3054  ;;  %v9135_v1 = vld [vmem:[#allocation38_spill] sm:$0xff] }
 0x3c3   :  { %3259 = vst.msk [vmem:[%s8346_s5 + $0x180] sm:$0xff] %vm3210_vm11, %v3055_v55  ;;  %3351 = vrot.lane.b32.xlu0 %v9119_v48, %s4080_s27  ;;  %v9136_v48 = vld [vmem:[#allocation39_spill] sm:$0xff] }
 0x3c5   :  { %v3061_v27 = vpop.permute.xlu1 %3060 }
 0x3c6   :  { %3262 = vst.msk [vmem:[%s8346_s5 + $0x198] sm:$0xff] %vm3210_vm11, %v3061_v27  ;;  %3357 = vrot.lane.b32.xlu1 %v9120_v61, %s4080_s27  ;;  %v3059_v46 = vpop.permute.xlu0 %3058  ;;  %v9137_v61 = vld [vmem:[#allocation131_spill] sm:$0xff] }
 0x3c7   :  { %3261 = vst.msk [vmem:[%s8346_s5 + $0x190] sm:$0xff] %vm3210_vm11, %v3059_v46  ;;  %3355 = vrot.lane.b32.xlu0 %v9121_v52, %s4080_s27  ;;  %v9138_v52 = vld [vmem:[#allocation132_spill] sm:$0xff] }
 0x3c9   :  { %v3065_v44 = vpop.permute.xlu1 %3064 }
 0x3ca   :  { %3264 = vst.msk [vmem:[%s8346_s5 + $0x1a8] sm:$0xff] %vm3210_vm11, %v3065_v44  ;;  %3361 = vrot.lane.b32.xlu1 %v9122_v15, %s4080_s27  ;;  %v3063_v57 = vpop.permute.xlu0 %3062  ;;  %v9139_v15 = vld [vmem:[#allocation42_spill] sm:$0xff] }
 0x3cb   :  { %3263 = vst.msk [vmem:[%s8346_s5 + $0x1a0] sm:$0xff] %vm3210_vm11, %v3063_v57  ;;  %3359 = vrot.lane.b32.xlu0 %v9123_v23, %s4080_s27  ;;  %v9140_v23 = vld [vmem:[#allocation43_spill] sm:$0xff] }
 0x3cd   :  { %v3069_v33 = vpop.permute.xlu1 %3068 }
 0x3ce   :  { %3266 = vst.msk [vmem:[%s8346_s5 + $0x1b8] sm:$0xff] %vm3210_vm11, %v3069_v33  ;;  %3365 = vrot.lane.b32.xlu1 %v9124_v8, %s4080_s27  ;;  %v3067_v4 = vpop.permute.xlu0 %3066  ;;  %v9141_v8 = vld [vmem:[#allocation137_spill] sm:$0xff] }
 0x3cf   :  { %3265 = vst.msk [vmem:[%s8346_s5 + $0x1b0] sm:$0xff] %vm3210_vm11, %v3067_v4  ;;  %3363 = vrot.lane.b32.xlu0 %v9125_v26, %s4080_s27  ;;  %v9142_v26 = vld [vmem:[#allocation138_spill] sm:$0xff] }
 0x3d1   :  { %v3073_v10 = vpop.permute.xlu1 %3072 }
 0x3d2   :  { %3268 = vst.msk [vmem:[%s8346_s5 + $0x1c8] sm:$0xff] %vm3210_vm11, %v3073_v10  ;;  %3369 = vrot.lane.b32.xlu1 %v9126_v25, %s4080_s27  ;;  %v3071_v17 = vpop.permute.xlu0 %3070  ;;  %v9143_v25 = vld [vmem:[#allocation44_spill] sm:$0xff] }
 0x3d3   :  { %3267 = vst.msk [vmem:[%s8346_s5 + $0x1c0] sm:$0xff] %vm3210_vm11, %v3071_v17  ;;  %3367 = vrot.lane.b32.xlu0 %v9127_v13, %s4080_s27 }
 0x3d5   :  { %v3077_v51 = vpop.permute.xlu1 %3076 }
 0x3d6   :  { %3270 = vst.msk [vmem:[%s8346_s5 + $0x1d8] sm:$0xff] %vm3210_vm11, %v3077_v51  ;;  %3373 = vrot.lane.b32.xlu1 %v9128_v60, %s4080_s27  ;;  %v3075_v16 = vpop.permute.xlu0 %3074 }
 0x3d7   :  { %3269 = vst.msk [vmem:[%s8346_s5 + $0x1d0] sm:$0xff] %vm3210_vm11, %v3075_v16  ;;  %3371 = vrot.lane.b32.xlu0 %v9129_v42, %s4080_s27 }
 0x3d9   :  { %v3081_v49 = vpop.permute.xlu1 %3080 }
 0x3da   :  { %3272 = vst.msk [vmem:[%s8346_s5 + $0x1e8] sm:$0xff] %vm3210_vm11, %v3081_v49  ;;  %3377 = vrot.lane.b32.xlu1 %v9130_v62, %s4080_s27  ;;  %v3079_v30 = vpop.permute.xlu0 %3078 }
 0x3db   :  { %3271 = vst.msk [vmem:[%s8346_s5 + $0x1e0] sm:$0xff] %vm3210_vm11, %v3079_v30  ;;  %3375 = vrot.lane.b32.xlu0 %v9131_v38, %s4080_s27 }
 0x3dd   :  { %v3085_v12 = vpop.permute.xlu1 %3084 }
 0x3de   :  { %3274 = vst.msk [vmem:[%s8346_s5 + $0x1f8] sm:$0xff] %vm3210_vm11, %v3085_v12  ;;  %3381 = vrot.lane.b32.xlu1 %v7002_v40, %s4080_s27  ;;  %v3083_v22 = vpop.permute.xlu0 %3082  ;;  %v9133_v40 = vld [vmem:[#allocation125_spill] sm:$0xff] }
 0x3df   :  { %3273 = vst.msk [vmem:[%s8346_s5 + $0x1f0] sm:$0xff] %vm3210_vm11, %v3083_v22  ;;  %3379 = vrot.lane.b32.xlu0 %v7012_v11, %s4080_s27  ;;  %v9134_v11 = vld [vmem:[#allocation126_spill] sm:$0xff] }
 0x3e1   :  { %v3089_v35 = vpop.permute.xlu1 %3088 }
 0x3e2   :  { %3276 = vst.msk [vmem:[%s8346_s5 + $0x208] sm:$0xff] %vm3210_vm11, %v3089_v35  ;;  %3385 = vrot.lane.b32.xlu1 %v9132_v3, %s4080_s27  ;;  %v3087_v20 = vpop.permute.xlu0 %3086 }
 0x3e3   :  { %3275 = vst.msk [vmem:[%s8346_s5 + $0x200] sm:$0xff] %vm3210_vm11, %v3087_v20  ;;  %3383 = vrot.lane.b32.xlu0 %v9133_v40, %s4080_s27 }
 0x3e5   :  { %v3093_v58 = vpop.permute.xlu1 %3092 }
 0x3e6   :  { %3278 = vst.msk [vmem:[%s8346_s5 + $0x218] sm:$0xff] %vm3210_vm11, %v3093_v58  ;;  %3389 = vrot.lane.b32.xlu1 %v9134_v11, %s4080_s27  ;;  %v3091_v50 = vpop.permute.xlu0 %3090 }
 0x3e7   :  { %3277 = vst.msk [vmem:[%s8346_s5 + $0x210] sm:$0xff] %vm3210_vm11, %v3091_v50  ;;  %3387 = vrot.lane.b32.xlu0 %v9135_v1, %s4080_s27 }
 0x3e9   :  { %v3097_v55 = vpop.permute.xlu1 %3096 }
 0x3ea   :  { %3280 = vst.msk [vmem:[%s8346_s5 + $0x228] sm:$0xff] %vm3210_vm11, %v3097_v55  ;;  %3393 = vrot.lane.b32.xlu1 %v9136_v48, %s4080_s27  ;;  %v3095_v27 = vpop.permute.xlu0 %3094 }
 0x3eb   :  { %3279 = vst.msk [vmem:[%s8346_s5 + $0x220] sm:$0xff] %vm3210_vm11, %v3095_v27  ;;  %3391 = vrot.lane.b32.xlu0 %v9137_v61, %s4080_s27 }
 0x3ed   :  { %v3101_v46 = vpop.permute.xlu1 %3100 }
 0x3ee   :  { %3282 = vst.msk [vmem:[%s8346_s5 + $0x238] sm:$0xff] %vm3210_vm11, %v3101_v46  ;;  %3397 = vrot.lane.b32.xlu1 %v9138_v52, %s4080_s27  ;;  %v3099_v44 = vpop.permute.xlu0 %3098 }
 0x3ef   :  { %3281 = vst.msk [vmem:[%s8346_s5 + $0x230] sm:$0xff] %vm3210_vm11, %v3099_v44  ;;  %3395 = vrot.lane.b32.xlu0 %v9139_v15, %s4080_s27 }
 0x3f1   :  { %v3105_v57 = vpop.permute.xlu1 %3104 }
 0x3f2   :  { %3284 = vst.msk [vmem:[%s8346_s5 + $0x248] sm:$0xff] %vm3210_vm11, %v3105_v57  ;;  %3401 = vrot.lane.b32.xlu1 %v9140_v23, %s4080_s27  ;;  %v3103_v33 = vpop.permute.xlu0 %3102 }
 0x3f3   :  { %3283 = vst.msk [vmem:[%s8346_s5 + $0x240] sm:$0xff] %vm3210_vm11, %v3103_v33  ;;  %3399 = vrot.lane.b32.xlu0 %v9141_v8, %s4080_s27 }
 0x3f5   :  { %v3109_v4 = vpop.permute.xlu1 %3108 }
 0x3f6   :  { %3286 = vst.msk [vmem:[%s8346_s5 + $0x258] sm:$0xff] %vm3210_vm11, %v3109_v4  ;;  %3405 = vrot.lane.b32.xlu1 %v9142_v26, %s4080_s27  ;;  %v3107_v10 = vpop.permute.xlu0 %3106 }
 0x3f7   :  { %3285 = vst.msk [vmem:[%s8346_s5 + $0x250] sm:$0xff] %vm3210_vm11, %v3107_v10  ;;  %3403 = vrot.lane.b32.xlu0 %v9143_v25, %s4080_s27 }
 0x3f9   :  { %v3113_v17 = vpop.permute.xlu1 %3112 }
 0x3fa   :  { %3288 = vst.msk [vmem:[%s8346_s5 + $0x268] sm:$0xff] %vm3210_vm11, %v3113_v17  ;;  %3409 = vrot.lane.b32.xlu1 %v7156_v53, %s4080_s27  ;;  %v3111_v13 = vpop.permute.xlu0 %3110 }
 0x3fb   :  { %3287 = vst.msk [vmem:[%s8346_s5 + $0x260] sm:$0xff] %vm3210_vm11, %v3111_v13  ;;  %3407 = vrot.lane.b32.xlu0 %v7166_v41, %s4080_s27 }
 0x3fd   :  { %v3117_v51 = vpop.permute.xlu1 %3116 }
 0x3fe   :  { %3290 = vst.msk [vmem:[%s8346_s5 + $0x278] sm:$0xff] %vm3210_vm11, %v3117_v51  ;;  %3413 = vrot.lane.b32.xlu1 %v7178_v0, %s4080_s27  ;;  %v3115_v60 = vpop.permute.xlu0 %3114 }
 0x3ff   :  { %3289 = vst.msk [vmem:[%s8346_s5 + $0x270] sm:$0xff] %vm3210_vm11, %v3115_v60  ;;  %3411 = vrot.lane.b32.xlu0 %v7188_v37, %s4080_s27 }
 0x401   :  { %v3121_v53 = vpop.permute.xlu1 %3120 }
 0x402   :  { %3292 = vst.msk [vmem:[%s8346_s5 + $0x288] sm:$0xff] %vm3210_vm11, %v3121_v53  ;;  %3417 = vrot.lane.b32.xlu1 %v7200_v39, %s4080_s27  ;;  %v3119_v41 = vpop.permute.xlu0 %3118 }
 0x403   :  { %3291 = vst.msk [vmem:[%s8346_s5 + $0x280] sm:$0xff] %vm3210_vm11, %v3119_v41  ;;  %3415 = vrot.lane.b32.xlu0 %v7210_v47, %s4080_s27 }
 0x405   :  { %v3125_v0 = vpop.permute.xlu1 %3124 }
 0x406   :  { %3294 = vst.msk [vmem:[%s8346_s5 + $0x298] sm:$0xff] %vm3210_vm11, %v3125_v0  ;;  %3421 = vrot.lane.b32.xlu1 %v7222_v6, %s4080_s27  ;;  %v3123_v37 = vpop.permute.xlu0 %3122 }
 0x407   :  { %3293 = vst.msk [vmem:[%s8346_s5 + $0x290] sm:$0xff] %vm3210_vm11, %v3123_v37  ;;  %3419 = vrot.lane.b32.xlu0 %v7232_v45, %s4080_s27 }
 0x409   :  { %v3298_v39 = vpop.permute.xlu1 %3297 }
 0x40a   :  { %3549 = vst.msk [vmem:[%s8347_s6 + $0x8] sm:$0xff] %vm3547_vm12, %v3298_v39  ;;  %3425 = vrot.lane.b32.xlu1 %v7244_v14, %s4080_s27  ;;  %v3296_v47 = vpop.permute.xlu0 %3295 }
 0x40b   :  { %3548 = vst.msk [vmem:[%s8347_s6] sm:$0xff] %vm3547_vm12, %v3296_v47  ;;  %3423 = vrot.lane.b32.xlu0 %v7254_v28, %s4080_s27 }
 0x40d   :  { %v3302_v6 = vpop.permute.xlu1 %3301 }
 0x40e   :  { %3551 = vst.msk [vmem:[%s8347_s6 + $0x18] sm:$0xff] %vm3547_vm12, %v3302_v6  ;;  %3429 = vrot.lane.b32.xlu1 %v7266_v2, %s4080_s27  ;;  %v3300_v45 = vpop.permute.xlu0 %3299 }
 0x40f   :  { %3550 = vst.msk [vmem:[%s8347_s6 + $0x10] sm:$0xff] %vm3547_vm12, %v3300_v45  ;;  %3427 = vrot.lane.b32.xlu0 %v7276_v36, %s4080_s27 }
 0x411   :  { %v3306_v14 = vpop.permute.xlu1 %3305 }
 0x412   :  { %3553 = vst.msk [vmem:[%s8347_s6 + $0x28] sm:$0xff] %vm3547_vm12, %v3306_v14  ;;  %3433 = vrot.lane.b32.xlu1 %v7288_v21, %s4080_s27  ;;  %v3304_v28 = vpop.permute.xlu0 %3303 }
 0x413   :  { %3552 = vst.msk [vmem:[%s8347_s6 + $0x20] sm:$0xff] %vm3547_vm12, %v3304_v28  ;;  %3431 = vrot.lane.b32.xlu0 %v7298_v5, %s4080_s27 }
 0x415   :  { %v3310_v2 = vpop.permute.xlu1 %3309 }
 0x416   :  { %3555 = vst.msk [vmem:[%s8347_s6 + $0x38] sm:$0xff] %vm3547_vm12, %v3310_v2  ;;  %3437 = vrot.lane.b32.xlu1 %v7310_v54, %s4080_s27  ;;  %v3308_v36 = vpop.permute.xlu0 %3307 }
 0x417   :  { %3554 = vst.msk [vmem:[%s8347_s6 + $0x30] sm:$0xff] %vm3547_vm12, %v3308_v36  ;;  %3435 = vrot.lane.b32.xlu0 %v7320_v9, %s4080_s27 }
 0x419   :  { %v3314_v21 = vpop.permute.xlu1 %3313 }
 0x41a   :  { %3557 = vst.msk [vmem:[%s8347_s6 + $0x48] sm:$0xff] %vm3547_vm12, %v3314_v21  ;;  %3441 = vrot.lane.b32.xlu1 %v7332_v56, %s4080_s27  ;;  %v3312_v5 = vpop.permute.xlu0 %3311 }
 0x41b   :  { %3556 = vst.msk [vmem:[%s8347_s6 + $0x40] sm:$0xff] %vm3547_vm12, %v3312_v5  ;;  %3439 = vrot.lane.b32.xlu0 %v7342_v24, %s4080_s27 }
 0x41d   :  { %v3318_v54 = vpop.permute.xlu1 %3317 }
 0x41e   :  { %3559 = vst.msk [vmem:[%s8347_s6 + $0x58] sm:$0xff] %vm3547_vm12, %v3318_v54  ;;  %3445 = vrot.lane.b32.xlu1 %v7354_v43, %s4080_s27  ;;  %v3316_v9 = vpop.permute.xlu0 %3315 }
 0x41f   :  { %3558 = vst.msk [vmem:[%s8347_s6 + $0x50] sm:$0xff] %vm3547_vm12, %v3316_v9  ;;  %3443 = vrot.lane.b32.xlu0 %v7364_v34, %s4080_s27 }
 0x421   :  { %v3322_v56 = vpop.permute.xlu1 %3321 }
 0x422   :  { %3561 = vst.msk [vmem:[%s8347_s6 + $0x68] sm:$0xff] %vm3547_vm12, %v3322_v56  ;;  %3449 = vrot.lane.b32.xlu1 %v7376_v29, %s4080_s27  ;;  %v3320_v24 = vpop.permute.xlu0 %3319 }
 0x423   :  { %3560 = vst.msk [vmem:[%s8347_s6 + $0x60] sm:$0xff] %vm3547_vm12, %v3320_v24  ;;  %3447 = vrot.lane.b32.xlu0 %v7386_v7, %s4080_s27 }
 0x425   :  { %v3326_v43 = vpop.permute.xlu1 %3325 }
 0x426   :  { %3563 = vst.msk [vmem:[%s8347_s6 + $0x78] sm:$0xff] %vm3547_vm12, %v3326_v43  ;;  %3453 = vrot.lane.b32.xlu1 %v7398_v31, %s4080_s27  ;;  %v3324_v34 = vpop.permute.xlu0 %3323 }
 0x427   :  { %3562 = vst.msk [vmem:[%s8347_s6 + $0x70] sm:$0xff] %vm3547_vm12, %v3324_v34  ;;  %3451 = vrot.lane.b32.xlu0 %v7408_v63, %s4080_s27 }
 0x429   :  { %v3330_v29 = vpop.permute.xlu1 %3329 }
 0x42a   :  { %3565 = vst.msk [vmem:[%s8347_s6 + $0x88] sm:$0xff] %vm3547_vm12, %v3330_v29  ;;  %3457 = vrot.lane.b32.xlu1 %v7420_v19, %s4080_s27  ;;  %v3328_v7 = vpop.permute.xlu0 %3327 }
 0x42b   :  { %3564 = vst.msk [vmem:[%s8347_s6 + $0x80] sm:$0xff] %vm3547_vm12, %v3328_v7  ;;  %3455 = vrot.lane.b32.xlu0 %v7430_v32, %s4080_s27 }
 0x42d   :  { %v3334_v31 = vpop.permute.xlu1 %3333 }
 0x42e   :  { %3567 = vst.msk [vmem:[%s8347_s6 + $0x98] sm:$0xff] %vm3547_vm12, %v3334_v31  ;;  %3461 = vrot.lane.b32.xlu1 %v7442_v59, %s4080_s27  ;;  %v3332_v63 = vpop.permute.xlu0 %3331 }
 0x42f   :  { %3566 = vst.msk [vmem:[%s8347_s6 + $0x90] sm:$0xff] %vm3547_vm12, %v3332_v63  ;;  %3459 = vrot.lane.b32.xlu0 %v7452_v18, %s4080_s27 }
 0x431   :  { %v3338_v19 = vpop.permute.xlu1 %3337 }
 0x432   :  { %3569 = vst.msk [vmem:[%s8347_s6 + $0xa8] sm:$0xff] %vm3547_vm12, %v3338_v19  ;;  %v3336_v32 = vpop.permute.xlu0 %3335 }
 0x433   :  { %3568 = vst.msk [vmem:[%s8347_s6 + $0xa0] sm:$0xff] %vm3547_vm12, %v3336_v32 }
 0x435   :  { %v3342_v59 = vpop.permute.xlu1 %3341 }
 0x436   :  { %3571 = vst.msk [vmem:[%s8347_s6 + $0xb8] sm:$0xff] %vm3547_vm12, %v3342_v59  ;;  %v3340_v16 = vpop.permute.xlu0 %3339 }
 0x437   :  { %3570 = vst.msk [vmem:[%s8347_s6 + $0xb0] sm:$0xff] %vm3547_vm12, %v3340_v16 }
 0x439   :  { %v3346_v18 = vpop.permute.xlu1 %3345 }
 0x43a   :  { %3573 = vst.msk [vmem:[%s8347_s6 + $0xc8] sm:$0xff] %vm3547_vm12, %v3346_v18  ;;  %v3344_v42 = vpop.permute.xlu0 %3343 }
 0x43b   :  { %3572 = vst.msk [vmem:[%s8347_s6 + $0xc0] sm:$0xff] %vm3547_vm12, %v3344_v42 }
 0x43d   :  { %v3350_v49 = vpop.permute.xlu1 %3349 }
 0x43e   :  { %3575 = vst.msk [vmem:[%s8347_s6 + $0xd8] sm:$0xff] %vm3547_vm12, %v3350_v49  ;;  %v3348_v62 = vpop.permute.xlu0 %3347 }
 0x43f   :  { %3574 = vst.msk [vmem:[%s8347_s6 + $0xd0] sm:$0xff] %vm3547_vm12, %v3348_v62 }
 0x441   :  { %v3354_v30 = vpop.permute.xlu1 %3353 }
 0x442   :  { %3577 = vst.msk [vmem:[%s8347_s6 + $0xe8] sm:$0xff] %vm3547_vm12, %v3354_v30  ;;  %v3352_v38 = vpop.permute.xlu0 %3351 }
 0x443   :  { %3576 = vst.msk [vmem:[%s8347_s6 + $0xe0] sm:$0xff] %vm3547_vm12, %v3352_v38 }
 0x445   :  { %v3358_v12 = vpop.permute.xlu1 %3357 }
 0x446   :  { %3579 = vst.msk [vmem:[%s8347_s6 + $0xf8] sm:$0xff] %vm3547_vm12, %v3358_v12  ;;  %v3356_v22 = vpop.permute.xlu0 %3355 }
 0x447   :  { %3578 = vst.msk [vmem:[%s8347_s6 + $0xf0] sm:$0xff] %vm3547_vm12, %v3356_v22 }
 0x449   :  { %v3362_v35 = vpop.permute.xlu1 %3361 }
 0x44a   :  { %3581 = vst.msk [vmem:[%s8347_s6 + $0x108] sm:$0xff] %vm3547_vm12, %v3362_v35  ;;  %v3360_v3 = vpop.permute.xlu0 %3359 }
 0x44b   :  { %3580 = vst.msk [vmem:[%s8347_s6 + $0x100] sm:$0xff] %vm3547_vm12, %v3360_v3 }
 0x44d   :  { %v3366_v20 = vpop.permute.xlu1 %3365 }
 0x44e   :  { %3583 = vst.msk [vmem:[%s8347_s6 + $0x118] sm:$0xff] %vm3547_vm12, %v3366_v20  ;;  %v3364_v40 = vpop.permute.xlu0 %3363 }
 0x44f   :  { %3582 = vst.msk [vmem:[%s8347_s6 + $0x110] sm:$0xff] %vm3547_vm12, %v3364_v40 }
 0x451   :  { %v3370_v58 = vpop.permute.xlu1 %3369 }
 0x452   :  { %3585 = vst.msk [vmem:[%s8347_s6 + $0x128] sm:$0xff] %vm3547_vm12, %v3370_v58  ;;  %v3368_v11 = vpop.permute.xlu0 %3367 }
 0x453   :  { %3584 = vst.msk [vmem:[%s8347_s6 + $0x120] sm:$0xff] %vm3547_vm12, %v3368_v11 }
 0x455   :  { %v3374_v50 = vpop.permute.xlu1 %3373 }
 0x456   :  { %3587 = vst.msk [vmem:[%s8347_s6 + $0x138] sm:$0xff] %vm3547_vm12, %v3374_v50  ;;  %v3372_v1 = vpop.permute.xlu0 %3371 }
 0x457   :  { %3586 = vst.msk [vmem:[%s8347_s6 + $0x130] sm:$0xff] %vm3547_vm12, %v3372_v1 }
 0x459   :  { %v3378_v55 = vpop.permute.xlu1 %3377 }
 0x45a   :  { %3589 = vst.msk [vmem:[%s8347_s6 + $0x148] sm:$0xff] %vm3547_vm12, %v3378_v55  ;;  %v3376_v48 = vpop.permute.xlu0 %3375 }
 0x45b   :  { %3588 = vst.msk [vmem:[%s8347_s6 + $0x140] sm:$0xff] %vm3547_vm12, %v3376_v48 }
 0x45d   :  { %v3382_v27 = vpop.permute.xlu1 %3381 }
 0x45e   :  { %3591 = vst.msk [vmem:[%s8347_s6 + $0x158] sm:$0xff] %vm3547_vm12, %v3382_v27  ;;  %v3380_v61 = vpop.permute.xlu0 %3379 }
 0x45f   :  { %3590 = vst.msk [vmem:[%s8347_s6 + $0x150] sm:$0xff] %vm3547_vm12, %v3380_v61 }
 0x461   :  { %v3386_v46 = vpop.permute.xlu1 %3385 }
 0x462   :  { %3593 = vst.msk [vmem:[%s8347_s6 + $0x168] sm:$0xff] %vm3547_vm12, %v3386_v46  ;;  %v3384_v52 = vpop.permute.xlu0 %3383 }
 0x463   :  { %3592 = vst.msk [vmem:[%s8347_s6 + $0x160] sm:$0xff] %vm3547_vm12, %v3384_v52 }
 0x465   :  { %v3390_v44 = vpop.permute.xlu1 %3389 }
 0x466   :  { %3595 = vst.msk [vmem:[%s8347_s6 + $0x178] sm:$0xff] %vm3547_vm12, %v3390_v44  ;;  %v3388_v15 = vpop.permute.xlu0 %3387 }
 0x467   :  { %3594 = vst.msk [vmem:[%s8347_s6 + $0x170] sm:$0xff] %vm3547_vm12, %v3388_v15 }
 0x469   :  { %v3394_v57 = vpop.permute.xlu1 %3393 }
 0x46a   :  { %3597 = vst.msk [vmem:[%s8347_s6 + $0x188] sm:$0xff] %vm3547_vm12, %v3394_v57  ;;  %v3392_v23 = vpop.permute.xlu0 %3391 }
 0x46b   :  { %3596 = vst.msk [vmem:[%s8347_s6 + $0x180] sm:$0xff] %vm3547_vm12, %v3392_v23 }
 0x46d   :  { %v3398_v33 = vpop.permute.xlu1 %3397 }
 0x46e   :  { %3599 = vst.msk [vmem:[%s8347_s6 + $0x198] sm:$0xff] %vm3547_vm12, %v3398_v33  ;;  %v3396_v8 = vpop.permute.xlu0 %3395 }
 0x46f   :  { %3598 = vst.msk [vmem:[%s8347_s6 + $0x190] sm:$0xff] %vm3547_vm12, %v3396_v8 }
 0x471   :  { %v3402_v4 = vpop.permute.xlu1 %3401 }
 0x472   :  { %3601 = vst.msk [vmem:[%s8347_s6 + $0x1a8] sm:$0xff] %vm3547_vm12, %v3402_v4  ;;  %v3400_v26 = vpop.permute.xlu0 %3399 }
 0x473   :  { %3600 = vst.msk [vmem:[%s8347_s6 + $0x1a0] sm:$0xff] %vm3547_vm12, %v3400_v26 }
 0x475   :  { %v3406_v10 = vpop.permute.xlu1 %3405 }
 0x476   :  { %3603 = vst.msk [vmem:[%s8347_s6 + $0x1b8] sm:$0xff] %vm3547_vm12, %v3406_v10  ;;  %v3404_v25 = vpop.permute.xlu0 %3403 }
 0x477   :  { %3602 = vst.msk [vmem:[%s8347_s6 + $0x1b0] sm:$0xff] %vm3547_vm12, %v3404_v25 }
 0x479   :  { %v3410_v17 = vpop.permute.xlu1 %3409 }
 0x47a   :  { %3605 = vst.msk [vmem:[%s8347_s6 + $0x1c8] sm:$0xff] %vm3547_vm12, %v3410_v17  ;;  %v3408_v13 = vpop.permute.xlu0 %3407 }
 0x47b   :  { %3604 = vst.msk [vmem:[%s8347_s6 + $0x1c0] sm:$0xff] %vm3547_vm12, %v3408_v13 }
 0x47d   :  { %v3414_v51 = vpop.permute.xlu1 %3413 }
 0x47e   :  { %3607 = vst.msk [vmem:[%s8347_s6 + $0x1d8] sm:$0xff] %vm3547_vm12, %v3414_v51  ;;  %v3412_v60 = vpop.permute.xlu0 %3411 }
 0x47f   :  { %3606 = vst.msk [vmem:[%s8347_s6 + $0x1d0] sm:$0xff] %vm3547_vm12, %v3412_v60 }
 0x481   :  { %v3418_v53 = vpop.permute.xlu1 %3417 }
 0x482   :  { %3609 = vst.msk [vmem:[%s8347_s6 + $0x1e8] sm:$0xff] %vm3547_vm12, %v3418_v53  ;;  %v3416_v41 = vpop.permute.xlu0 %3415 }
 0x483   :  { %3608 = vst.msk [vmem:[%s8347_s6 + $0x1e0] sm:$0xff] %vm3547_vm12, %v3416_v41 }
 0x485   :  { %v3422_v0 = vpop.permute.xlu1 %3421 }
 0x486   :  { %3611 = vst.msk [vmem:[%s8347_s6 + $0x1f8] sm:$0xff] %vm3547_vm12, %v3422_v0  ;;  %v3420_v37 = vpop.permute.xlu0 %3419 }
 0x487   :  { %3610 = vst.msk [vmem:[%s8347_s6 + $0x1f0] sm:$0xff] %vm3547_vm12, %v3420_v37 }
 0x489   :  { %v3426_v39 = vpop.permute.xlu1 %3425 }
 0x48a   :  { %3613 = vst.msk [vmem:[%s8347_s6 + $0x208] sm:$0xff] %vm3547_vm12, %v3426_v39  ;;  %v3424_v47 = vpop.permute.xlu0 %3423 }
 0x48b   :  { %3612 = vst.msk [vmem:[%s8347_s6 + $0x200] sm:$0xff] %vm3547_vm12, %v3424_v47 }
 0x48d   :  { %v3430_v6 = vpop.permute.xlu1 %3429 }
 0x48e   :  { %3615 = vst.msk [vmem:[%s8347_s6 + $0x218] sm:$0xff] %vm3547_vm12, %v3430_v6  ;;  %v3428_v45 = vpop.permute.xlu0 %3427 }
 0x48f   :  { %3614 = vst.msk [vmem:[%s8347_s6 + $0x210] sm:$0xff] %vm3547_vm12, %v3428_v45 }
 0x491   :  { %v3434_v14 = vpop.permute.xlu1 %3433 }
 0x492   :  { %3617 = vst.msk [vmem:[%s8347_s6 + $0x228] sm:$0xff] %vm3547_vm12, %v3434_v14  ;;  %v3432_v28 = vpop.permute.xlu0 %3431 }
 0x493   :  { %3616 = vst.msk [vmem:[%s8347_s6 + $0x220] sm:$0xff] %vm3547_vm12, %v3432_v28 }
 0x495   :  { %v3438_v2 = vpop.permute.xlu1 %3437 }
 0x496   :  { %3619 = vst.msk [vmem:[%s8347_s6 + $0x238] sm:$0xff] %vm3547_vm12, %v3438_v2  ;;  %v3436_v36 = vpop.permute.xlu0 %3435 }
 0x497   :  { %3618 = vst.msk [vmem:[%s8347_s6 + $0x230] sm:$0xff] %vm3547_vm12, %v3436_v36 }
 0x499   :  { %v3442_v21 = vpop.permute.xlu1 %3441 }
 0x49a   :  { %3621 = vst.msk [vmem:[%s8347_s6 + $0x248] sm:$0xff] %vm3547_vm12, %v3442_v21  ;;  %v3440_v5 = vpop.permute.xlu0 %3439 }
 0x49b   :  { %3620 = vst.msk [vmem:[%s8347_s6 + $0x240] sm:$0xff] %vm3547_vm12, %v3440_v5 }
 0x49d   :  { %v3446_v54 = vpop.permute.xlu1 %3445 }
 0x49e   :  { %3623 = vst.msk [vmem:[%s8347_s6 + $0x258] sm:$0xff] %vm3547_vm12, %v3446_v54  ;;  %v3444_v9 = vpop.permute.xlu0 %3443 }
 0x49f   :  { %3622 = vst.msk [vmem:[%s8347_s6 + $0x250] sm:$0xff] %vm3547_vm12, %v3444_v9 }
 0x4a1   :  { %v3450_v56 = vpop.permute.xlu1 %3449 }
 0x4a2   :  { %3625 = vst.msk [vmem:[%s8347_s6 + $0x268] sm:$0xff] %vm3547_vm12, %v3450_v56  ;;  %v3448_v24 = vpop.permute.xlu0 %3447 }
 0x4a3   :  { %3624 = vst.msk [vmem:[%s8347_s6 + $0x260] sm:$0xff] %vm3547_vm12, %v3448_v24 }
 0x4a5   :  { %v3454_v43 = vpop.permute.xlu1 %3453 }
 0x4a6   :  { %3627 = vst.msk [vmem:[%s8347_s6 + $0x278] sm:$0xff] %vm3547_vm12, %v3454_v43  ;;  %v3452_v34 = vpop.permute.xlu0 %3451 }
 0x4a7   :  { %3626 = vst.msk [vmem:[%s8347_s6 + $0x270] sm:$0xff] %vm3547_vm12, %v3452_v34 }
 0x4a9   :  { %v3458_v29 = vpop.permute.xlu1 %3457 }
 0x4aa   :  { %3629 = vst.msk [vmem:[%s8347_s6 + $0x288] sm:$0xff] %vm3547_vm12, %v3458_v29  ;;  %v3456_v7 = vpop.permute.xlu0 %3455 }
 0x4ab   :  { %3628 = vst.msk [vmem:[%s8347_s6 + $0x280] sm:$0xff] %vm3547_vm12, %v3456_v7 }
 0x4ad   :  { %v3462_v31 = vpop.permute.xlu1 %3461 }
 0x4ae   :  { %3631 = vst.msk [vmem:[%s8347_s6 + $0x298] sm:$0xff] %vm3547_vm12, %v3462_v31  ;;  %v3460_v63 = vpop.permute.xlu0 %3459 }
 0x4af   :  { %3630 = vst.msk [vmem:[%s8347_s6 + $0x290] sm:$0xff] %vm3547_vm12, %v3460_v63 }

</bundles_post_ra>
